<compile_context>
chip_gen: v5e
topology: v5e:2x2
jax: 0.10.0
libtpu: 0.0.40
codegen_flags: <defaults>
</compile_context>

<pallas_src>
import math

import numpy as np

import jax
import jax.numpy as jnp
from jax.experimental import pallas as pl
from jax.experimental.pallas import tpu as pltpu


# ----------------------------------------------------------------------------
# Clenshaw-Curtis weights / nodes (verbatim port of compute_cc_weights)
# ----------------------------------------------------------------------------
def compute_cc_weights_np(nb_steps):
    lam = np.arange(0, nb_steps + 1, 1).reshape(-1, 1)
    lam = np.cos(lam @ lam.T * math.pi / nb_steps)
    lam[:, 0] = 0.5
    lam[:, -1] = 0.5 * lam[:, -1]
    lam = lam * 2 / nb_steps
    W = np.arange(0, nb_steps + 1, 1).reshape(-1, 1)
    W[np.arange(1, nb_steps + 1, 2)] = 0
    W = 2 / (1 - W ** 2)
    W[0] = 1
    W[np.arange(1, nb_steps + 1, 2)] = 0
    cc_weights = (lam.T @ W).astype(np.float32)                       # (S, 1)
    steps = np.cos(
        np.arange(0, nb_steps + 1, 1).reshape(-1, 1) * math.pi / nb_steps
    ).astype(np.float32)                                              # (S, 1)
    return cc_weights, steps


# ----------------------------------------------------------------------------
# Builder: packs params ONCE, returns a jitted forward(x) -> (B, C)
# ----------------------------------------------------------------------------
def build_mono_forward(params, num_classes, hidden, nb_steps, *,
                       tile_b=8, matmul_dtype=jnp.float32):
    assert tile_b % 8 == 0, "tile_b must be a multiple of 8 (sublane granularity)"
    C, H = int(num_classes), int(hidden)
    CH = C * H
    npf = lambda a: np.asarray(a, np.float32)
    f32 = jnp.float32

    # ---- quadrature constants; built per TILE so they are independent of total B ----
    cc_np, steps_np = compute_cc_weights_np(nb_steps)
    S = nb_steps + 1
    # NOTE: choosing nb_steps with (nb_steps + 1) % 8 == 0 (e.g. 47 or 55) would avoid the padded
    # quadrature rows running the hidden stack for nothing; we keep the module default (50).
    S_pad = ((S + 7) // 8) * 8
    t = np.zeros((S_pad,), np.float32)
    cc = np.zeros((S_pad,), np.float32)
    t[:S] = (steps_np[:, 0] + 1.0) * 0.5
    cc[:S] = cc_np[:, 0]

    tile_bs = tile_b * S_pad
    E = np.zeros((tile_bs, tile_b), np.float32)     # repeats each batch row S_pad times
    Q = np.zeros((tile_b, tile_bs), np.float32)     # Clenshaw-Curtis reduction weights
    tmask = np.ones((tile_bs, C), np.float32)       # lane 0 carries the node abscissa t_s
    for b in range(tile_b):
        rows = slice(b * S_pad, (b + 1) * S_pad)
        E[rows, b] = 1.0
        Q[b, rows] = cc
        tmask[rows, 0] = t

    # ---- packed parameter buffers (all C heads fused along the lane axis) ----
    w1v1 = np.zeros((2 * C, CH), np.float32)        # rows 0:C  = integrand W1 (block packed)
                                                    # rows C:2C = offset-net V1 (block packed)
    wstack = np.zeros((4 * CH, CH), np.float32)     # [W2; W3; V2; V3], block-diagonal
    tailw = np.zeros((CH, 3 * C), np.float32)       # cols 0:C=W4, C:2C=V4(offset), 2C:3C=V4(scale)
    biases = np.zeros((8, CH), np.float32)          # rows: b1,b2,b3,c1,c2,c3,[b4|0],[c4|0]

    for i, p in enumerate(params):
        sl = slice(i * H, (i + 1) * H)
        w1 = npf(p["W1"])                           # (C, H)
        w1v1[0, sl] = w1[0, :]                      # X (integration variable) row
        if i >= 1:
            w1v1[i, sl] = w1[i, :]                  # only column i of x survives the indicator mask
            w1v1[C + i, sl] = npf(p["V1"])[i - 1, :]
        biases[0, sl] = npf(p["b1"])[0]
        biases[1, sl] = npf(p["b2"])[0]
        biases[2, sl] = npf(p["b3"])[0]
        biases[3, sl] = npf(p["c1"])[0]
        biases[4, sl] = npf(p["c2"])[0]
        biases[5, sl] = npf(p["c3"])[0]
        wstack[0 * CH + i * H:0 * CH + (i + 1) * H, sl] = npf(p["W2"])
        wstack[1 * CH + i * H:1 * CH + (i + 1) * H, sl] = npf(p["W3"])
        wstack[2 * CH + i * H:2 * CH + (i + 1) * H, sl] = npf(p["V2"])
        wstack[3 * CH + i * H:3 * CH + (i + 1) * H, sl] = npf(p["V3"])
        tailw[sl, i] = npf(p["W4"])[:, 0]
        tailw[sl, C + i] = npf(p["V4"])[:, 0]
        tailw[sl, 2 * C + i] = npf(p["V4"])[:, 1]
        biases[6, i] = npf(p["b4"])[0, 0]
        biases[7, i] = npf(p["c4"])[0, 0]
        biases[7, C + i] = npf(p["c4"])[0, 1]

    # Device-side constants (uploaded once, captured by the jitted closure).
    # Only the dominant (CH, CH) stack is cast to matmul_dtype (bf16 on v6e/v7x); everything
    # elementwise and the tiny expansion / head matmuls stay f32.
    E_d = jnp.asarray(E)
    Q_d = jnp.asarray(Q)
    tmask_d = jnp.asarray(tmask)
    w1v1_d = jnp.asarray(w1v1)
    wstack_d = jnp.asarray(wstack, dtype=matmul_dtype)
    tailw_d = jnp.asarray(tailw)
    bias_d = jnp.asarray(biases)
    const_args = (E_d, tmask_d, Q_d, w1v1_d, wstack_d, tailw_d, bias_d)

    # ---- fused kernel: one grid step = one tile of tile_b batch rows, all C heads ----
    def kernel(x_ref, e_ref, tmask_ref, q_ref, w1v1_ref, wstack_ref, tailw_ref, bias_ref, out_ref):
        x = x_ref[...]                                           # (tile_b, C)
        x0 = x[:, 0:1]                                           # integration upper limit

        def mm(a, w):                                            # MXU matmul, f32 accumulation
            return jnp.dot(a.astype(w.dtype), w, preferred_element_type=f32)

        # ---- offset / scaling net (batch rows only), all heads fused on lanes ----
        u = jnp.maximum(mm(x, w1v1_ref[C:2 * C, :]) + bias_ref[3:4, :], 0.0)
        u = jnp.maximum(mm(u, wstack_ref[2 * CH:3 * CH, :]) + bias_ref[4:5, :], 0.0)
        u = jnp.maximum(mm(u, wstack_ref[3 * CH:4 * CH, :]) + bias_ref[5:6, :], 0.0)
        o = mm(u, tailw_ref[:, C:3 * C]) + bias_ref[7:8, 0:2 * C]          # (tile_b, 2C)
        offset = o[:, :C]
        scaling = jnp.exp(o[:, C:])

        # ---- integrand at every Clenshaw-Curtis node (tile_b * S_pad rows) ----
        # Rows are expanded on the C-wide input (cheap, N=C) instead of the CH-wide hidden
        # pre-activation; the node abscissa t only scales lane 0 (rank-1), so the old Et
        # matmul is eliminated entirely.
        xrep = jnp.dot(e_ref[...], x, preferred_element_type=f32)          # (tile_bs, C)
        xin = xrep * tmask_ref[...]                                        # lane 0 *= t_s
        a = jnp.maximum(mm(xin, w1v1_ref[0:C, :]) + bias_ref[0:1, :], 0.0)  # (tile_bs, CH)
        a = jnp.maximum(mm(a, wstack_ref[0:CH, :]) + bias_ref[1:2, :], 0.0)
        a = jnp.maximum(mm(a, wstack_ref[CH:2 * CH, :]) + bias_ref[2:3, :], 0.0)
        z4 = mm(a, tailw_ref[:, 0:C]) + bias_ref[6:7, 0:C]                  # (tile_bs, C)
        # ELU(z) + 1 with a clamped exp so the unselected where-branch never produces inf.
        # TODO(synk): the tail is lane-sparse (C=4 of 128 lanes live); restructure if C grows.
        fz = jnp.where(z4 > 0.0, z4 + 1.0, jnp.exp(jnp.minimum(z4, 0.0)))

        # ---- Clenshaw-Curtis reduction as an MXU matmul (cc weights, zeros on padding) ----
        z_est = jnp.dot(q_ref[...], fz, preferred_element_type=f32)         # (tile_b, C)
        out_ref[...] = scaling * (z_est * x0 * 0.5) + offset                 # lane-dense (tile_b, C)

    # ---- per-tile VMEM footprint estimate; only raise the scoped limit if we need to ----
    act_bytes = tile_bs * 128 * 4                       # one lane-padded f32 activation buffer
    resident_bytes = sum(int(a.size) * a.dtype.itemsize
                         for a in (E_d, Q_d, w1v1_d, wstack_d, tailw_d, bias_d))
    resident_bytes += tile_bs * 128 * 4                 # tmask, lane-padded
    est = resident_bytes + 12 * act_bytes + 4 * tile_b * 128 * 4 + (2 << 20)
    vmem_limit = None if est <= (28 << 20) else int(min(est, 100 << 20))

    @jax.jit
    def forward(x):
        x = jnp.asarray(x, f32)
        B = x.shape[0]
        n_tiles = (B + tile_b - 1) // tile_b
        Bp = n_tiles * tile_b
        xp = jnp.pad(x, ((0, Bp - B), (0, 0))) if Bp != B else x

        out = pl.pallas_call(
            kernel,
            out_shape=jax.ShapeDtypeStruct((Bp, C), f32),
            grid_spec=pltpu.PrefetchScalarGridSpec(
                num_scalar_prefetch=0,
                grid=(n_tiles,),
                in_specs=[
                    pl.BlockSpec((tile_b, C), lambda i: (i, 0)),     # x tile (pipelined)
                    pl.BlockSpec(E.shape, lambda i: (0, 0)),         # resident per-tile constants:
                    pl.BlockSpec(tmask.shape, lambda i: (0, 0)),
                    pl.BlockSpec(Q.shape, lambda i: (0, 0)),
                    pl.BlockSpec(w1v1.shape, lambda i: (0, 0)),      # resident packed weights:
                    pl.BlockSpec(wstack.shape, lambda i: (0, 0)),
                    pl.BlockSpec(tailw.shape, lambda i: (0, 0)),
                    pl.BlockSpec(biases.shape, lambda i: (0, 0)),
                ],
                out_specs=pl.BlockSpec((tile_b, C), lambda i: (i, 0)),
            ),
            compiler_params=pltpu.CompilerParams(
                dimension_semantics=("parallel",),                   # shard tiles over v7x's 2 TCs
                vmem_limit_bytes=vmem_limit,
            ),
        )(xp, *const_args)
        return out[:B]

    return forward


# ----------------------------------------------------------------------------
# Deterministic parameter init (PyTorch nn.Linear-style uniform), per class
# ----------------------------------------------------------------------------
def _init_linear(key, fan_in, fan_out):
    k1, k2 = jax.random.split(key)
    bound = 1.0 / math.sqrt(fan_in)
    W = jax.random.uniform(k1, (fan_in, fan_out), jnp.float32, -bound, bound)
    b = jax.random.uniform(k2, (1, fan_out), jnp.float32, -bound, bound)
    return W, b


def init_params(key, num_classes, hidden):
    params = []
    for i in range(num_classes):
        ks = jax.random.split(jax.random.fold_in(key, i), 8)
        p = {}
        # IntegrandNN:  C -> H -> H -> H -> 1
        p["W1"], p["b1"] = _init_linear(ks[0], num_classes, hidden)
        p["W2"], p["b2"] = _init_linear(ks[1], hidden, hidden)
        p["W3"], p["b3"] = _init_linear(ks[2], hidden, hidden)
        p["W4"], p["b4"] = _init_linear(ks[3], hidden, 1)
        # offset/scaling net:  C-1 -> H -> H -> H -> 2
        p["V1"], p["c1"] = _init_linear(ks[4], num_classes - 1, hidden)
        p["V2"], p["c2"] = _init_linear(ks[5], hidden, hidden)
        p["V3"], p["c3"] = _init_linear(ks[6], hidden, hidden)
        p["V4"], p["c4"] = _init_linear(ks[7], hidden, 2)
        params.append(p)
    return params


# ----------------------------------------------------------------------------
# Pure-JAX reference (mirrors the PyTorch forward semantics exactly)
# ----------------------------------------------------------------------------
def reference_forward(x, params, nb_steps):
    B, C = x.shape
    cc_np, steps_np = compute_cc_weights_np(nb_steps)
    cc = jnp.asarray(cc_np)            # (S, 1)
    steps = jnp.asarray(steps_np)      # (S, 1)
    S = nb_steps + 1
    outs = []
    for i in range(C):
        mask = np.zeros((C,), np.float32)
        mask[0] = 1.0
        mask[i] = 1.0
        xx = x * jnp.asarray(mask)[None, :]
        xs = xx[:, 0:1]
        h = xx[:, 1:]
        p = params[i]
        u = jax.nn.relu(h @ p["V1"] + p["c1"])
        u = jax.nn.relu(u @ p["V2"] + p["c2"])
        u = jax.nn.relu(u @ p["V3"] + p["c3"])
        o = u @ p["V4"] + p["c4"]
        offset = o[:, 0:1]
        scaling = jnp.exp(o[:, 1:2])

        X_steps = xs[:, None, :] * (steps[None, :, :] + 1.0) / 2.0      # (B, S, 1)
        X_flat = X_steps.reshape(B * S, 1)
        h_flat = jnp.broadcast_to(h[:, None, :], (B, S, C - 1)).reshape(B * S, C - 1)
        inp = jnp.concatenate([X_flat, h_flat], axis=1)
        z = jax.nn.relu(inp @ p["W1"] + p["b1"])
        z = jax.nn.relu(z @ p["W2"] + p["b2"])
        z = jax.nn.relu(z @ p["W3"] + p["b3"])
        z = z @ p["W4"] + p["b4"]
        f = jax.nn.elu(z) + 1.0
        dzs = f.reshape(B, S, 1) * cc[None, :, :]
        z_est = dzs.sum(axis=1)                                         # (B, 1)
        outs.append(scaling * (z_est * xs / 2.0) + offset)
    return jnp.concatenate(outs, axis=-1)


if __name__ == "__main__":
    # output_dim=4, hidden_dims=[16,16,16], nb_steps=50 (module defaults); B=12 exercises
    # both the batch grid (2 tiles of 8) and the tail-padding path.
    B, C, H, NB_STEPS = 12, 4, 16, 50
    TILE_B = 8

    key = jax.random.PRNGKey(0)
    kx, kp = jax.random.split(key)
    x = jax.random.normal(kx, (B, C), jnp.float32)
    params = init_params(kp, C, H)

    ref = reference_forward(x, params, NB_STEPS)

    # f32 path (bit-comparable to the reference).
    fwd_f32 = build_mono_forward(params, C, H, NB_STEPS, tile_b=TILE_B)
    out = jax.block_until_ready(fwd_f32(x))
    assert out.shape == (B, C), out.shape
    np.testing.assert_allclose(np.asarray(out), np.asarray(ref), rtol=2e-3, atol=2e-3)
    # Second call re-uses the compiled executable + cached packed constants (no host packing).
    out2 = jax.block_until_ready(fwd_f32(x))
    np.testing.assert_allclose(np.asarray(out2), np.asarray(out), rtol=0, atol=0)

    # bf16 matmul-input path (v6e/v7x MXU); f32 accumulation + f32 elementwise, looser tolerance.
    fwd_bf16 = build_mono_forward(params, C, H, NB_STEPS, tile_b=TILE_B,
                                  matmul_dtype=jnp.bfloat16)
    out_bf = jax.block_until_ready(fwd_bf16(x))
    assert out_bf.shape == (B, C), out_bf.shape
    np.testing.assert_allclose(np.asarray(out_bf), np.asarray(ref), rtol=5e-2, atol=5e-2)

    print("KERNEL_OK")
</pallas_src>

<mosaic_0001>
module attributes {stable_mosaic.version = 11 : i64} {
  func.func @kernel(%arg0: i32, %arg1: memref<8x4xf32, #tpu.memory_space<vmem>>, %arg2: memref<448x8xf32, #tpu.memory_space<vmem>>, %arg3: memref<448x4xf32, #tpu.memory_space<vmem>>, %arg4: memref<8x448xf32, #tpu.memory_space<vmem>>, %arg5: memref<8x64xf32, #tpu.memory_space<vmem>>, %arg6: memref<256x64xf32, #tpu.memory_space<vmem>>, %arg7: memref<64x12xf32, #tpu.memory_space<vmem>>, %arg8: memref<8x64xf32, #tpu.memory_space<vmem>>, %arg9: memref<8x4xf32, #tpu.memory_space<vmem>>) attributes {dimension_semantics = [#tpu.dimension_semantics<parallel>], iteration_bounds = array<i64: 2>, scalar_prefetch = 0 : i64, scratch_operands = 0 : i64, tpu.core_type = #tpu.core_type<tc>, window_params = [{transform_indices = @transform_0, window_bounds = array<i64: 8, 4>}, {pipeline_mode = #tpu.pipeline_mode<synchronous>, transform_indices = @transform_1, window_bounds = array<i64: 448, 8>}, {pipeline_mode = #tpu.pipeline_mode<synchronous>, transform_indices = @transform_2, window_bounds = array<i64: 448, 4>}, {pipeline_mode = #tpu.pipeline_mode<synchronous>, transform_indices = @transform_3, window_bounds = array<i64: 8, 448>}, {pipeline_mode = #tpu.pipeline_mode<synchronous>, transform_indices = @transform_4, window_bounds = array<i64: 8, 64>}, {pipeline_mode = #tpu.pipeline_mode<synchronous>, transform_indices = @transform_5, window_bounds = array<i64: 256, 64>}, {pipeline_mode = #tpu.pipeline_mode<synchronous>, transform_indices = @transform_6, window_bounds = array<i64: 64, 12>}, {pipeline_mode = #tpu.pipeline_mode<synchronous>, transform_indices = @transform_7, window_bounds = array<i64: 8, 64>}, {transform_indices = @transform_8, window_bounds = array<i64: 8, 4>}]} {
    %c0 = arith.constant 0 : index
    %c0_0 = arith.constant 0 : index
    %0 = vector.load %arg1[%c0, %c0_0] : memref<8x4xf32, #tpu.memory_space<vmem>>, vector<8x4xf32>
    %1 = vector.extract_strided_slice %0 {offsets = [0, 0], sizes = [8, 1], strides = [1, 1]} : vector<8x4xf32> to vector<8x1xf32>
    %c4 = arith.constant 4 : index
    %c0_1 = arith.constant 0 : index
    %2 = vector.load %arg5[%c4, %c0_1] : memref<8x64xf32, #tpu.memory_space<vmem>>, vector<4x64xf32>
    %cst = arith.constant dense<0.000000e+00> : vector<8x64xf32>
    %3 = tpu.matmul %0, %2, %cst {dimension_numbers = #tpu.dot_dimension_numbers<[1], [0], [0], [1], [0, 0, 1, 1], [], []>} : vector<8x4xf32>, vector<4x64xf32>, vector<8x64xf32> -> vector<8x64xf32>
    %c3 = arith.constant 3 : index
    %c0_2 = arith.constant 0 : index
    %4 = vector.load %arg8[%c3, %c0_2] : memref<8x64xf32, #tpu.memory_space<vmem>>, vector<1x64xf32>
    %5 = vector.broadcast %4 : vector<1x64xf32> to vector<8x64xf32>
    %6 = arith.addf %3, %5 : vector<8x64xf32>
    %cst_3 = arith.constant 0.000000e+00 : f32
    %7 = vector.broadcast %cst_3 : f32 to vector<8x64xf32>
    %8 = arith.maximumf %6, %7 : vector<8x64xf32>
    %c128 = arith.constant 128 : index
    %c0_4 = arith.constant 0 : index
    %9 = vector.load %arg6[%c128, %c0_4] : memref<256x64xf32, #tpu.memory_space<vmem>>, vector<64x64xf32>
    %cst_5 = arith.constant dense<0.000000e+00> : vector<8x64xf32>
    %10 = tpu.matmul %8, %9, %cst_5 {dimension_numbers = #tpu.dot_dimension_numbers<[1], [0], [0], [1], [0, 0, 1, 1], [], []>} : vector<8x64xf32>, vector<64x64xf32>, vector<8x64xf32> -> vector<8x64xf32>
    %c4_6 = arith.constant 4 : index
    %c0_7 = arith.constant 0 : index
    %11 = vector.load %arg8[%c4_6, %c0_7] : memref<8x64xf32, #tpu.memory_space<vmem>>, vector<1x64xf32>
    %12 = vector.broadcast %11 : vector<1x64xf32> to vector<8x64xf32>
    %13 = arith.addf %10, %12 : vector<8x64xf32>
    %cst_8 = arith.constant 0.000000e+00 : f32
    %14 = vector.broadcast %cst_8 : f32 to vector<8x64xf32>
    %15 = arith.maximumf %13, %14 : vector<8x64xf32>
    %c192 = arith.constant 192 : index
    %c0_9 = arith.constant 0 : index
    %16 = vector.load %arg6[%c192, %c0_9] : memref<256x64xf32, #tpu.memory_space<vmem>>, vector<64x64xf32>
    %cst_10 = arith.constant dense<0.000000e+00> : vector<8x64xf32>
    %17 = tpu.matmul %15, %16, %cst_10 {dimension_numbers = #tpu.dot_dimension_numbers<[1], [0], [0], [1], [0, 0, 1, 1], [], []>} : vector<8x64xf32>, vector<64x64xf32>, vector<8x64xf32> -> vector<8x64xf32>
    %c5 = arith.constant 5 : index
    %c0_11 = arith.constant 0 : index
    %18 = vector.load %arg8[%c5, %c0_11] : memref<8x64xf32, #tpu.memory_space<vmem>>, vector<1x64xf32>
    %19 = vector.broadcast %18 : vector<1x64xf32> to vector<8x64xf32>
    %20 = arith.addf %17, %19 : vector<8x64xf32>
    %cst_12 = arith.constant 0.000000e+00 : f32
    %21 = vector.broadcast %cst_12 : f32 to vector<8x64xf32>
    %22 = arith.maximumf %20, %21 : vector<8x64xf32>
    %c0_13 = arith.constant 0 : index
    %c4_14 = arith.constant 4 : index
    %23 = vector.load %arg7[%c0_13, %c4_14] : memref<64x12xf32, #tpu.memory_space<vmem>>, vector<64x8xf32>
    %cst_15 = arith.constant dense<0.000000e+00> : vector<8x8xf32>
    %24 = tpu.matmul %22, %23, %cst_15 {dimension_numbers = #tpu.dot_dimension_numbers<[1], [0], [0], [1], [0, 0, 1, 1], [], []>} : vector<8x64xf32>, vector<64x8xf32>, vector<8x8xf32> -> vector<8x8xf32>
    %c7 = arith.constant 7 : index
    %c0_16 = arith.constant 0 : index
    %25 = vector.load %arg8[%c7, %c0_16] : memref<8x64xf32, #tpu.memory_space<vmem>>, vector<1x8xf32>
    %26 = vector.broadcast %25 : vector<1x8xf32> to vector<8x8xf32>
    %27 = arith.addf %24, %26 : vector<8x8xf32>
    %28 = vector.extract_strided_slice %27 {offsets = [0, 0], sizes = [8, 4], strides = [1, 1]} : vector<8x8xf32> to vector<8x4xf32>
    %29 = vector.extract_strided_slice %27 {offsets = [0, 4], sizes = [8, 4], strides = [1, 1]} : vector<8x8xf32> to vector<8x4xf32>
    %30 = math.exp %29 : vector<8x4xf32>
    %c0_17 = arith.constant 0 : index
    %c0_18 = arith.constant 0 : index
    %31 = vector.load %arg2[%c0_17, %c0_18] : memref<448x8xf32, #tpu.memory_space<vmem>>, vector<448x8xf32>
    %cst_19 = arith.constant dense<0.000000e+00> : vector<448x4xf32>
    %32 = tpu.matmul %31, %0, %cst_19 {dimension_numbers = #tpu.dot_dimension_numbers<[1], [0], [0], [1], [0, 0, 1, 1], [], []>} : vector<448x8xf32>, vector<8x4xf32>, vector<448x4xf32> -> vector<448x4xf32>
    %c0_20 = arith.constant 0 : index
    %c0_21 = arith.constant 0 : index
    %33 = vector.load %arg3[%c0_20, %c0_21] : memref<448x4xf32, #tpu.memory_space<vmem>>, vector<448x4xf32>
    %34 = arith.mulf %32, %33 : vector<448x4xf32>
    %c0_22 = arith.constant 0 : index
    %c0_23 = arith.constant 0 : index
    %35 = vector.load %arg5[%c0_22, %c0_23] : memref<8x64xf32, #tpu.memory_space<vmem>>, vector<4x64xf32>
    %cst_24 = arith.constant dense<0.000000e+00> : vector<448x64xf32>
    %36 = tpu.matmul %34, %35, %cst_24 {dimension_numbers = #tpu.dot_dimension_numbers<[1], [0], [0], [1], [0, 0, 1, 1], [], []>} : vector<448x4xf32>, vector<4x64xf32>, vector<448x64xf32> -> vector<448x64xf32>
    %c0_25 = arith.constant 0 : index
    %c0_26 = arith.constant 0 : index
    %37 = vector.load %arg8[%c0_25, %c0_26] : memref<8x64xf32, #tpu.memory_space<vmem>>, vector<1x64xf32>
    %38 = vector.broadcast %37 : vector<1x64xf32> to vector<448x64xf32>
    %39 = arith.addf %36, %38 : vector<448x64xf32>
    %cst_27 = arith.constant 0.000000e+00 : f32
    %40 = vector.broadcast %cst_27 : f32 to vector<448x64xf32>
    %41 = arith.maximumf %39, %40 : vector<448x64xf32>
    %c0_28 = arith.constant 0 : index
    %c0_29 = arith.constant 0 : index
    %42 = vector.load %arg6[%c0_28, %c0_29] : memref<256x64xf32, #tpu.memory_space<vmem>>, vector<64x64xf32>
    %cst_30 = arith.constant dense<0.000000e+00> : vector<448x64xf32>
    %43 = tpu.matmul %41, %42, %cst_30 {dimension_numbers = #tpu.dot_dimension_numbers<[1], [0], [0], [1], [0, 0, 1, 1], [], []>} : vector<448x64xf32>, vector<64x64xf32>, vector<448x64xf32> -> vector<448x64xf32>
    %c1 = arith.constant 1 : index
    %c0_31 = arith.constant 0 : index
    %44 = vector.load %arg8[%c1, %c0_31] : memref<8x64xf32, #tpu.memory_space<vmem>>, vector<1x64xf32>
    %45 = vector.broadcast %44 : vector<1x64xf32> to vector<448x64xf32>
    %46 = arith.addf %43, %45 : vector<448x64xf32>
    %cst_32 = arith.constant 0.000000e+00 : f32
    %47 = vector.broadcast %cst_32 : f32 to vector<448x64xf32>
    %48 = arith.maximumf %46, %47 : vector<448x64xf32>
    %c64 = arith.constant 64 : index
    %c0_33 = arith.constant 0 : index
    %49 = vector.load %arg6[%c64, %c0_33] : memref<256x64xf32, #tpu.memory_space<vmem>>, vector<64x64xf32>
    %cst_34 = arith.constant dense<0.000000e+00> : vector<448x64xf32>
    %50 = tpu.matmul %48, %49, %cst_34 {dimension_numbers = #tpu.dot_dimension_numbers<[1], [0], [0], [1], [0, 0, 1, 1], [], []>} : vector<448x64xf32>, vector<64x64xf32>, vector<448x64xf32> -> vector<448x64xf32>
    %c2 = arith.constant 2 : index
    %c0_35 = arith.constant 0 : index
    %51 = vector.load %arg8[%c2, %c0_35] : memref<8x64xf32, #tpu.memory_space<vmem>>, vector<1x64xf32>
    %52 = vector.broadcast %51 : vector<1x64xf32> to vector<448x64xf32>
    %53 = arith.addf %50, %52 : vector<448x64xf32>
    %cst_36 = arith.constant 0.000000e+00 : f32
    %54 = vector.broadcast %cst_36 : f32 to vector<448x64xf32>
    %55 = arith.maximumf %53, %54 : vector<448x64xf32>
    %c0_37 = arith.constant 0 : index
    %c0_38 = arith.constant 0 : index
    %56 = vector.load %arg7[%c0_37, %c0_38] : memref<64x12xf32, #tpu.memory_space<vmem>>, vector<64x4xf32>
    %cst_39 = arith.constant dense<0.000000e+00> : vector<448x4xf32>
    %57 = tpu.matmul %55, %56, %cst_39 {dimension_numbers = #tpu.dot_dimension_numbers<[1], [0], [0], [1], [0, 0, 1, 1], [], []>} : vector<448x64xf32>, vector<64x4xf32>, vector<448x4xf32> -> vector<448x4xf32>
    %c6 = arith.constant 6 : index
    %c0_40 = arith.constant 0 : index
    %58 = vector.load %arg8[%c6, %c0_40] : memref<8x64xf32, #tpu.memory_space<vmem>>, vector<1x4xf32>
    %59 = vector.broadcast %58 : vector<1x4xf32> to vector<448x4xf32>
    %60 = arith.addf %57, %59 : vector<448x4xf32>
    %cst_41 = arith.constant 0.000000e+00 : f32
    %61 = vector.broadcast %cst_41 : f32 to vector<448x4xf32>
    %62 = arith.cmpf ogt, %60, %61 : vector<448x4xf32>
    %cst_42 = arith.constant 1.000000e+00 : f32
    %63 = vector.broadcast %cst_42 : f32 to vector<448x4xf32>
    %64 = arith.addf %60, %63 : vector<448x4xf32>
    %cst_43 = arith.constant 0.000000e+00 : f32
    %65 = vector.broadcast %cst_43 : f32 to vector<448x4xf32>
    %66 = arith.minimumf %60, %65 : vector<448x4xf32>
    %67 = math.exp %66 : vector<448x4xf32>
    %68 = arith.select %62, %64, %67 : vector<448x4xi1>, vector<448x4xf32>
    %c0_44 = arith.constant 0 : index
    %c0_45 = arith.constant 0 : index
    %69 = vector.load %arg4[%c0_44, %c0_45] : memref<8x448xf32, #tpu.memory_space<vmem>>, vector<8x448xf32>
    %cst_46 = arith.constant dense<0.000000e+00> : vector<8x4xf32>
    %70 = tpu.matmul %69, %68, %cst_46 {dimension_numbers = #tpu.dot_dimension_numbers<[1], [0], [0], [1], [0, 0, 1, 1], [], []>} : vector<8x448xf32>, vector<448x4xf32>, vector<8x4xf32> -> vector<8x4xf32>
    %71 = vector.broadcast %1 : vector<8x1xf32> to vector<8x4xf32>
    %72 = arith.mulf %70, %71 : vector<8x4xf32>
    %cst_47 = arith.constant 5.000000e-01 : f32
    %73 = vector.broadcast %cst_47 : f32 to vector<8x4xf32>
    %74 = arith.mulf %72, %73 : vector<8x4xf32>
    %75 = arith.mulf %30, %74 : vector<8x4xf32>
    %76 = arith.addf %75, %28 : vector<8x4xf32>
    %c0_48 = arith.constant 0 : index
    %c0_49 = arith.constant 0 : index
    %77 = vector.load %arg9[%c0_48, %c0_49] : memref<8x4xf32, #tpu.memory_space<vmem>>, vector<8x4xf32>
    tpu.vector_store %arg9[%c0_48, %c0_49], %76 {strides = array<i32>} : memref<8x4xf32, #tpu.memory_space<vmem>>, vector<8x4xf32>,
    return
  }
  func.func @transform_0(%arg0: i32) -> (i32, i32) {
    %c0_i32 = arith.constant 0 : i32
    %c0_i32_0 = arith.constant 0 : i32
    return %arg0, %c0_i32 : i32, i32
  }
  func.func @transform_1(%arg0: i32) -> (i32, i32) {
    %c0_i32 = arith.constant 0 : i32
    %c0_i32_0 = arith.constant 0 : i32
    %c0_i32_1 = arith.constant 0 : i32
    return %c0_i32, %c0_i32_0 : i32, i32
  }
  func.func @transform_2(%arg0: i32) -> (i32, i32) {
    %c0_i32 = arith.constant 0 : i32
    %c0_i32_0 = arith.constant 0 : i32
    %c0_i32_1 = arith.constant 0 : i32
    return %c0_i32, %c0_i32_0 : i32, i32
  }
  func.func @transform_3(%arg0: i32) -> (i32, i32) {
    %c0_i32 = arith.constant 0 : i32
    %c0_i32_0 = arith.constant 0 : i32
    %c0_i32_1 = arith.constant 0 : i32
    return %c0_i32, %c0_i32_0 : i32, i32
  }
  func.func @transform_4(%arg0: i32) -> (i32, i32) {
    %c0_i32 = arith.constant 0 : i32
    %c0_i32_0 = arith.constant 0 : i32
    %c0_i32_1 = arith.constant 0 : i32
    return %c0_i32, %c0_i32_0 : i32, i32
  }
  func.func @transform_5(%arg0: i32) -> (i32, i32) {
    %c0_i32 = arith.constant 0 : i32
    %c0_i32_0 = arith.constant 0 : i32
    %c0_i32_1 = arith.constant 0 : i32
    return %c0_i32, %c0_i32_0 : i32, i32
  }
  func.func @transform_6(%arg0: i32) -> (i32, i32) {
    %c0_i32 = arith.constant 0 : i32
    %c0_i32_0 = arith.constant 0 : i32
    %c0_i32_1 = arith.constant 0 : i32
    return %c0_i32, %c0_i32_0 : i32, i32
  }
  func.func @transform_7(%arg0: i32) -> (i32, i32) {
    %c0_i32 = arith.constant 0 : i32
    %c0_i32_0 = arith.constant 0 : i32
    %c0_i32_1 = arith.constant 0 : i32
    return %c0_i32, %c0_i32_0 : i32, i32
  }
  func.func @transform_8(%arg0: i32) -> (i32, i32) {
    %c0_i32 = arith.constant 0 : i32
    %c0_i32_0 = arith.constant 0 : i32
    return %arg0, %c0_i32 : i32, i32
  }
}

</mosaic_0001>

<bundles_post_ra>
// kernel: forward.1
= control target key start
LH: loop header
LB: loop body
LE: loop exit
PB: predicated region body
PF: predicated region fallthrough
CT: control target
= control target key end

     0   :  { %13 = vsyncpa [#allocation3], 0  ;;  %s4947_s0 = inlined_call_operand.vmem [shape: f32[16,4], index: 0, kind: input, shape index: {}]   ;;  %s4948_s1 = inlined_call_operand.hbm [shape: f32[448,8], index: 1, kind: input, shape index: {}]   ;;  %s4949_s2 = inlined_call_operand.hbm [shape: f32[448,4], index: 2, kind: input, shape index: {}]   ;;  %s4950_s3 = inlined_call_operand.vmem [shape: f32[8,448], index: 3, kind: input, shape index: {}]   ;;  %s4951_s4 = inlined_call_operand.vmem [shape: f32[8,64], index: 4, kind: input, shape index: {}]   ;;  %s4952_s5 = inlined_call_operand.hbm [shape: f32[256,64], index: 5, kind: input, shape index: {}]   ;;  %s4953_s6 = inlined_call_operand.hbm [shape: f32[64,12], index: 6, kind: input, shape index: {}]   ;;  %s4954_s7 = inlined_call_operand.vmem [shape: f32[8,64], index: 7, kind: input, shape index: {}]   ;;  %s4955_s8 = inlined_call_operand.vmem [shape: f32[16,4], index: 8, kind: output, shape index: {}]  }
   0x1   :  { %14 = vsyncpa [#allocation5], 0 }
   0x2   :  { %15 = vsyncpa [#allocation8], 0  ;;  %s3909_s27 = smov 0  }
   0x3 LB: > { %s3915_s28 = sadd.s32 4294967295, %s3853_s27   ;;  %p3207_p0 = scmp.ge.s32.totalorder %s3853_s27, 1  ;;  %s3853_s27 = sphi %s3909_s27, %s21_s27  }
   0x4   : > { %p225_p1 = scmp.lt.s32.totalorder %s3853_s27, 3  ;;  %p3541_p2 = scmp.eq.s32.totalorder %s3915_s28, 0 }
   0x5   : > { %s250_s9 = sshll.u32 %s4949_s2, 4  ;;  %s236_s13 = sshll.u32 %s4948_s1, 4  ;;  %s251_s9 = int_to_ptr.hbm [resolvable:$true] %s250_s9  ;;  %s237_s13 = int_to_ptr.hbm [resolvable:$true] %s236_s13 }
   0x6   : > { %p3923_p3 = pnand %p3207_p0, %p225_p1  ;;  %s3855_s14 = smov [#allocation4]  }
   0x7   : > { %s252_s15 = sshll.u32 %s3855_s14, 4  ;;  %s3856_s17 = smov [#allocation2]   ;;  %s253_s15 = int_to_ptr.vmem [resolvable:$true] %s252_s15 }
   0x8   : > { %p3528_p4 = pneg %p3923_p3  ;;  %s238_s18 = sshll.u32 %s3856_s17, 4  ;;  %s239_s18 = int_to_ptr.vmem [resolvable:$true] %s238_s18 }
   0x9   : > { %s270_s21 = sshll.u32 %s4952_s5, 4  ;;  %s3857_s22 = smov 128   ;;  %s271_s21 = int_to_ptr.hbm [resolvable:$true] %s270_s21 }
   0xa   : > { %p3934_p5 = pnand %p3541_p2, %p3528_p4  ;;  %s3858_s23 = smov 8  }
   0xb   : > { %s3859_s24 = smov [#allocation6]   ;;  %s284_s30 = sshll.u32 %s4953_s6, 4  ;;  %s285_s30 = int_to_ptr.hbm [resolvable:$true] %s284_s30 }
   0xc   : > { %3534 = dma.hbm_to_vmem [thread:$0]  (!%p3934_p5), %s251_s9, 7168, %s253_s15, [#allocation5], %s3857_s22, %s3857_s22, %s3858_s23  }
   0xd   : > { %3531 = dma.hbm_to_vmem [thread:$0]  (!%p3934_p5), %s237_s13, 7168, %s239_s18, [#allocation3], %s3857_s22, %s3857_s22, %s3858_s23  }
   0xe   : > { %s272_s25 = sshll.u32 %s3859_s24, 4  ;;  %s3860_s11 = smov [#allocation7]   ;;  %s273_s25 = int_to_ptr.vmem [resolvable:$true] %s272_s25 }
   0xf   : > { %3537 = dma.hbm_to_vmem [thread:$0]  (!%p3934_p5), %s271_s21, 4096, %s273_s25, [#allocation5], %s3857_s22, %s3857_s22, %s3858_s23  }
  0x10   : > { %s286_s12 = sshll.u32 %s3860_s11, 4  ;;  %312 = sbr.rel (%p3923_p3) target bundleno = 1623 (0x657), region = 52  ;;  %s287_s12 = int_to_ptr.vmem [resolvable:$true] %s286_s12 }
  0x11   : > { %3540 = dma.hbm_to_vmem [thread:$0]  (!%p3934_p5), %s285_s30, 1024, %s287_s12, [#allocation8], %s3857_s22, %s3857_s22, %s3858_s23  }
  0x15   : > { %3840 = dma.done.wait (%p3541_p2), [#allocation3], 7168  }
  0x16   : > { %3842 = vsyncadd (%p3541_p2), [#allocation3], 4294960128 }
  0x17   : > { %3844 = dma.done.wait (%p3541_p2), [#allocation5], 11264  }
  0x18   : > { %3846 = vsyncadd (%p3541_p2), [#allocation5], 4294956032 }
  0x19   : > { %3848 = dma.done.wait (%p3541_p2), [#allocation8], 1024  }
  0x1a   : > { %3850 = vsyncadd (%p3541_p2), [#allocation8], 4294966272  ;;  %p360_p6 = scmp.lt.s32.totalorder %s3915_s28, 1  ;;  %vm376_vm0 = vcmask 1043456   ;;  %vm372_vm1 = vcmask 31744   ;;  %vm593_vm2 = vcmask 64512  }
  0x1b   : > { %v369_v0 = vld [vmem:[%s4951_s4 + $0x4] sm:$0xf]  ;;  %v408_v3 = vld [vmem:[#allocation6 + $0xb8] sm:$0xff]  ;;  %v407_v4 = vld [vmem:[#allocation6 + $0xb0] sm:$0xff]  ;;  %vm411_vm3 = vcmask 523264   ;;  %s3861_s21 = smov 124  }
  0x1c   : > { %s4959_s28 = smov (!%p360_p6, %s3915_s28), 1  ;;  %v537_v2 = vld [vmem:[#allocation2] sm:$0xff]  ;;  %3220 = vmatpush.msk.msra.mxu1 %vm376_vm0, %v369_v0  ;;  %v406_v5 = vld [vmem:[#allocation6 + $0xa8] sm:$0xff]  ;;  %v404_v8 = vld [vmem:[#allocation6 + $0x98] sm:$0xff]  ;;  %s3862_s13 = smov 4  }
  0x1d   : > { %s3218_s9 = sshll.u32 %s4959_s28, 3  ;;  %v405_v6 = vld [vmem:[#allocation6 + $0xa0] sm:$0xff]  ;;  %v538_v7 = vld [vmem:[#allocation2 + $0x8] sm:$0xff]  ;;  %v539_v9 = vld [vmem:[#allocation2 + $0x10] sm:$0xff] }
  0x1e   : > { %s3976_s14 = scalar_lea.vmem %s4947_s0, %s3218_s9  ;;  %423 = vmatpush.msrb.mxu1 %v408_v3  ;;  %v540_v10 = vld [vmem:[#allocation2 + $0x18] sm:$0xff]  ;;  %v403_v11 = vld [vmem:[#allocation6 + $0x90] sm:$0xff]  ;;  %v402_v12 = vld [vmem:[#allocation6 + $0x88] sm:$0xff]  ;;  %s367_s20 = scalar_lea.vmem %s4955_s8, %s3218_s9 }
  0x1f   : > { %v3982_v1 = vld [vmem:[%s3976_s14] sm:$0xff]  ;;  %v542_v15 = vld [vmem:[#allocation2 + $0x28] sm:$0xff]  ;;  %v543_v16 = vld [vmem:[#allocation2 + $0x30] sm:$0xff] }
  0x20   : > { %777 = vmatpush.msra.mxu0 %v3982_v1  ;;  %3221 = vmatmul.msk.f32.vlgmr.msra.gmra.mxu1 %vm372_vm1, %v3982_v1  ;;  %v401_v13 = vld [vmem:[#allocation6 + $0x80] sm:$0xff]  ;;  %v544_v17 = vld [vmem:[#allocation2 + $0x38] sm:$0xff]  ;;  %v554_v23 = vld [vmem:[#allocation2 + $0x88] sm:$0xff] }
  0x21   : > { %3225 = vmatmul.msk.f32.vlgmr.msra.gmra.mxu0 %vm593_vm2, %v537_v2  ;;  %424 = vmatpush.msrb.mxu1 %v407_v4  ;;  %v541_v14 = vld [vmem:[#allocation2 + $0x20] sm:$0xff]  ;;  %v546_v24 = vld [vmem:[#allocation2 + $0x48] sm:$0xff]  ;;  %v555_v25 = vld [vmem:[#allocation2 + $0x90] sm:$0xff] }
  0x22   : > { %v3588_v18 = vld [vmem:[%s4954_s7 + $0x3] ss:$0 sm:$0xff]  ;;  %v547_v26 = vld [vmem:[#allocation2 + $0x50] sm:$0xff]  ;;  %v556_v27 = vld [vmem:[#allocation2 + $0x98] sm:$0xff] }
  0x23   : > { %425 = vmatpush.msrb.mxu1 %v406_v5  ;;  %v545_v21 = vld [vmem:[#allocation2 + $0x40] sm:$0xff]  ;;  %v548_v28 = vld [vmem:[#allocation2 + $0x58] sm:$0xff]  ;;  %v558_v31 = vld [vmem:[#allocation2 + $0xa8] sm:$0xff] }
  0x24   : > { %v557_v29 = vld [vmem:[#allocation2 + $0xa0] sm:$0xff]  ;;  %v550_v32 = vld [vmem:[#allocation2 + $0x68] sm:$0xff]  ;;  %v559_v33 = vld [vmem:[#allocation2 + $0xb0] sm:$0xff] }
  0x25   : > { %426 = vmatpush.msrb.mxu1 %v405_v6  ;;  %v549_v30 = vld [vmem:[#allocation2 + $0x60] sm:$0xff]  ;;  %v551_v34 = vld [vmem:[#allocation2 + $0x70] sm:$0xff]  ;;  %v560_v35 = vld [vmem:[#allocation2 + $0xb8] sm:$0xff] }
  0x26   : > { %v552_v36 = vld [vmem:[#allocation2 + $0x78] sm:$0xff]  ;;  %v1059_v37 = vld [vmem:[%s4951_s4] sm:$0xf]  ;;  %v562_v42 = vld [vmem:[#allocation2 + $0xc8] sm:$0xff] }
  0x27   : > { %427 = vmatpush.msrb.mxu1 %v404_v8  ;;  %v561_v39 = vld [vmem:[#allocation2 + $0xc0] sm:$0xff]  ;;  %v563_v43 = vld [vmem:[#allocation2 + $0xd0] sm:$0xff]  ;;  %v443_v45 = vld [vmem:[#allocation6 + $0xf8] sm:$0xff] }
  0x28   : > { %v553_v40 = vld [vmem:[#allocation2 + $0x80] sm:$0xff]  ;;  %v442_v46 = vld [vmem:[#allocation6 + $0xf0] sm:$0xff]  ;;  %457 = vmatpush.msra.mxu2 %v443_v45  ;;  %v441_v47 = vld [vmem:[#allocation6 + $0xe8] sm:$0xff] }
  0x29   : > { %3226 = vmatmul.msk.f32.gmra.mxu0 %vm593_vm2, %v538_v7  ;;  %428 = vmatpush.msrb.mxu1 %v403_v11  ;;  %v564_v48 = vld [vmem:[#allocation2 + $0xd8] sm:$0xff]  ;;  %v440_v50 = vld [vmem:[#allocation6 + $0xe0] sm:$0xff]  ;;  %v476_v52 = vld [vmem:[#allocation7 + $0x30] sm:$0xff] }
  0x2a   : > { %458 = vmatpush.msra.mxu2 %v442_v46  ;;  %v439_v51 = vld [vmem:[#allocation6 + $0xd8] sm:$0xff]  ;;  %v947_v53 = vld [vmem:[#allocation4] sm:$0xff]  ;;  %v438_v57 = vld [vmem:[#allocation6 + $0xd0] sm:$0xff] }
  0x2b   : > { %429 = vmatpush.msrb.mxu1 %v402_v12  ;;  %v477_v54 = vld [vmem:[#allocation7 + $0x38] sm:$0xff]  ;;  %v437_v58 = vld [vmem:[#allocation6 + $0xc8] sm:$0xff]  ;;  %v436_v59 = vld [vmem:[#allocation6 + $0xc0] sm:$0xff] }
  0x2c   : > { %459 = vmatpush.msra.mxu2 %v441_v47  ;;  %v3566_v55 = vpack.i.bf16 %v476_v52, %v477_v54  ;;  %2490 = vmatpush.msrb.mxu0 %v477_v54  ;;  %v948_v60 = vld [vmem:[#allocation4 + $0x8] sm:$0xff]  ;;  %v474_v62 = vld [vmem:[#allocation7 + $0x20] sm:$0xff]  ;;  %v472_v3 = vld [vmem:[#allocation7 + $0x10] sm:$0xff] }
  0x2d   : > { %430 = vmatpush.msrb.mxu1 %v401_v13  ;;  %v475_v63 = vld [vmem:[#allocation7 + $0x28] sm:$0xff]  ;;  %v473_v4 = vld [vmem:[#allocation7 + $0x18] sm:$0xff]  ;;  %v949_v6 = vld [vmem:[#allocation4 + $0x10] sm:$0xff] }
  0x2e   : > { %460 = vmatpush.msra.mxu2 %v440_v50  ;;  %3567 = vrot.lane.b32.xlu0 %v3566_v55, %s3861_s21  ;;  %v3571_v0 = vpack.i.bf16 %v474_v62, %v475_v63  ;;  %v3576_v5 = vpack.i.bf16 %v472_v3, %v473_v4  ;;  %v950_v12 = vld [vmem:[#allocation4 + $0x18] sm:$0xff]  ;;  %v957_v46 = vld [vmem:[#allocation4 + $0x50] sm:$0xff]  ;;  %v959_v55 = vld [vmem:[#allocation4 + $0x60] sm:$0xff] }
  0x2f   : > { %3509 = vmatpush.msra.mxu1 %v3982_v1  ;;  %2491 = vmatpush.msrb.mxu0 %v476_v52  ;;  %v958_v50 = vld [vmem:[#allocation4 + $0x58] sm:$0xff]  ;;  %v571_v54 = vld [vmem:[#allocation2 + $0x110] sm:$0xff] }
  0x30   : > { %461 = vmatpush.msra.mxu2 %v439_v51  ;;  %3577 = vrot.lane.b32.xlu1 %v3576_v5, %s3861_s21  ;;  %v1480_v5 = vld [vmem:[#allocation6 + $0x30] sm:$0xff] }
  0x31   : > { %3227 = vmatmul.msk.f32.gmra.mxu0 %vm593_vm2, %v539_v9  ;;  %v470_v9 = vld [vmem:[#allocation7] sm:$0xff] }
  0x32   : > { %462 = vmatpush.msra.mxu2 %v438_v57  ;;  %2492 = vmatpush.msrb.mxu0 %v475_v63 }
  0x34   : > { %463 = vmatpush.msra.mxu2 %v437_v58  ;;  %2493 = vmatpush.msrb.mxu0 %v474_v62 }
  0x36   : > { %464 = vmatpush.msra.mxu2 %v436_v59  ;;  %3572 = vrot.lane.b32.xlu0 %v3571_v0, %s3861_s21  ;;  %v572_v59 = vld [vmem:[#allocation2 + $0x118] sm:$0xff]  ;;  %v573_v0 = vld [vmem:[#allocation2 + $0x120] sm:$0xff] }
  0x37   : > { %2494 = vmatpush.msrb.mxu0 %v473_v4 }
  0x38   : > { %3510 = vmatpush.msrb.mxu2 %v3982_v1 }
  0x39   : > { %3228 = vmatmul.msk.f32.gmra.mxu0 %vm593_vm2, %v540_v10  ;;  %v471_v10 = vld [vmem:[#allocation7 + $0x8] sm:$0xff] }
  0x3a   : > { %2495 = vmatpush.msrb.mxu0 %v472_v3  ;;  %v3581_v11 = vpack.i.bf16 %v470_v9, %v471_v10  ;;  %v1481_v3 = vld [vmem:[#allocation6 + $0x38] sm:$0xff] }
  0x3c   : > { %2496 = vmatpush.msrb.mxu0 %v471_v10  ;;  %3582 = vrot.lane.b32.xlu1 %v3581_v11, %s3861_s21  ;;  %v1478_v11 = vld [vmem:[#allocation6 + $0x20] sm:$0xff] }
  0x3e   : > { %2497 = vmatpush.msrb.mxu0 %v470_v9  ;;  %v574_v9 = vld [vmem:[#allocation2 + $0x128] sm:$0xff] }
  0x41   : > { %3229 = vmatmul.msk.f32.gmra.mxu0 %vm593_vm2, %v541_v14 }
  0x49   : > { %3230 = vmatmul.msk.f32.gmra.mxu0 %vm593_vm2, %v542_v15  ;;  %v951_v15 = vld [vmem:[#allocation4 + $0x20] sm:$0xff] }
  0x51   : > { %3231 = vmatmul.msk.f32.gmra.mxu0 %vm593_vm2, %v543_v16  ;;  %v3589_v16 = vld [vmem:[%s4954_s7 + $0x4] ss:$0 sm:$0xff] }
  0x59   : > { %3232 = vmatmul.msk.f32.gmra.mxu0 %vm593_vm2, %v544_v17 }
  0x61   : > { %3233 = vmatmul.msk.f32.gmra.mxu0 %vm593_vm2, %v545_v21 }
  0x69   : > { %3234 = vmatmul.msk.f32.gmra.mxu0 %vm593_vm2, %v546_v24 }
  0x71   : > { %3235 = vmatmul.msk.f32.gmra.mxu0 %vm593_vm2, %v547_v26  ;;  %v953_v26 = vld [vmem:[#allocation4 + $0x30] sm:$0xff] }
  0x79   : > { %3236 = vmatmul.msk.f32.gmra.mxu0 %vm593_vm2, %v548_v28 }
  0x81   : > { %3237 = vmatmul.msk.f32.gmra.mxu0 %vm593_vm2, %v549_v30  ;;  %v566_v30 = vld [vmem:[#allocation2 + $0xe8] sm:$0xff] }
  0x89   : > { %3238 = vmatmul.msk.f32.gmra.mxu0 %vm593_vm2, %v550_v32 }
  0x91   : > { %3239 = vmatmul.msk.f32.gmra.mxu0 %vm593_vm2, %v551_v34 }
  0x99   : > { %3240 = vmatmul.msk.f32.gmra.mxu0 %vm593_vm2, %v552_v36  ;;  %v955_v36 = vld [vmem:[#allocation4 + $0x40] sm:$0xff] }
  0x9d   : > { %v397_v19 = vpop.f32.mrf.mxu1 }
  0x9e   : > { %v398_v20 = vadd.f32 %v3588_v18, %v397_v19  ;;  %v779_v38 = vpop.f32.mrf.mxu0 }
  0x9f   : > { %v1003_v56 = vmul.f32 %v947_v53, %v779_v38 }
  0xa0   : > { %v400_v22 = vmax.f32 %v398_v20, 0.0 }
  0xa1   : > { %3241 = vmatmul.msk.f32.gmra.mxu0 %vm593_vm2, %v553_v40  ;;  %v568_v40 = vld [vmem:[#allocation2 + $0xf8] sm:$0xff] }
  0xa2   : > { %3222 = vmatmul.msk.f32.vlgmr.msrb.gmra.mxu1 %vm411_vm3, %v400_v22  ;;  %v952_v22 = vld [vmem:[#allocation4 + $0x28] sm:$0xff] }
  0xa3   : > { %3281 = vmatpush.msk.msrb.mxu1 %vm376_vm0, %v1059_v37 }
  0xa6   : > { %v782_v41 = vpop.f32.mrf.mxu0 }
  0xa7   : > { %v1004_v2 = vmul.f32 %v948_v60, %v782_v41  ;;  %v956_v41 = vld [vmem:[#allocation4 + $0x48] sm:$0xff] }
  0xa8   : > { %v960_v60 = vld [vmem:[#allocation4 + $0x68] sm:$0xff] }
  0xaa   : > { %3242 = vmatmul.msk.f32.vlgmr.msra.gmra.mxu1 %vm593_vm2, %v554_v23 }
  0xae   : > { %v785_v44 = vpop.f32.mrf.mxu0 }
  0xaf   : > { %v1005_v8 = vmul.f32 %v949_v6, %v785_v44  ;;  %v569_v44 = vld [vmem:[#allocation2 + $0x100] sm:$0xff] }
  0xb2   : > { %3243 = vmatmul.msk.f32.gmra.mxu1 %vm593_vm2, %v555_v25  ;;  %v565_v25 = vld [vmem:[#allocation2 + $0xe0] sm:$0xff] }
  0xb6   : > { %v788_v49 = vpop.f32.mrf.mxu0 }
  0xb7   : > { %v1006_v13 = vmul.f32 %v950_v12, %v788_v49  ;;  %v570_v49 = vld [vmem:[#allocation2 + $0x108] sm:$0xff]  ;;  %v962_v12 = vld [vmem:[#allocation4 + $0x78] sm:$0xff] }
  0xba   : > { %3244 = vmatmul.msk.f32.gmra.mxu1 %vm593_vm2, %v556_v27 }
  0xbe   : > { %v791_v61 = vpop.f32.mrf.mxu0 }
  0xbf   : > { %v1007_v17 = vmul.f32 %v951_v15, %v791_v61 }
  0xc2   : > { %3245 = vmatmul.msk.f32.gmra.mxu1 %vm593_vm2, %v557_v29 }
  0xc6   : > { %v794_v7 = vpop.f32.mrf.mxu0 }
  0xc7   : > { %v1008_v23 = vmul.f32 %v952_v22, %v794_v7  ;;  %v3568_v7 = vpop.permute.xlu0 %3567 }
  0xca   : > { %3246 = vmatmul.msk.f32.gmra.mxu1 %vm593_vm2, %v558_v31  ;;  %v954_v31 = vld [vmem:[#allocation4 + $0x38] sm:$0xff] }
  0xce   : > { %v797_v14 = vpop.f32.mrf.mxu0 }
  0xcf   : > { %v1009_v28 = vmul.f32 %v953_v26, %v797_v14  ;;  %v3569_v14 = vunpack.i.l.bf16 %v3568_v7  ;;  %v963_v26 = vld [vmem:[#allocation4 + $0x80] sm:$0xff] }
  0xd1   : > { %523 = vmatpush.msra.mxu3 %v3569_v14 }
  0xd2   : > { %3247 = vmatmul.msk.f32.gmra.mxu1 %vm593_vm2, %v559_v33 }
  0xd6   : > { %v800_v20 = vpop.f32.mrf.mxu0 }
  0xd7   : > { %v1010_v33 = vmul.f32 %v954_v31, %v800_v20  ;;  %v1475_v20 = vld [vmem:[#allocation6 + $0x8] sm:$0xff] }
  0xda   : > { %3248 = vmatmul.msk.f32.gmra.mxu1 %vm593_vm2, %v560_v35  ;;  %v567_v35 = vld [vmem:[#allocation2 + $0xf0] sm:$0xff] }
  0xde   : > { %v803_v27 = vpop.f32.mrf.mxu0 }
  0xdf   : > { %v1011_v37 = vmul.f32 %v955_v36, %v803_v27 }
  0xe2   : > { %3249 = vmatmul.msk.f32.gmra.mxu1 %vm593_vm2, %v561_v39 }
  0xe6   : > { %v806_v32 = vpop.f32.mrf.mxu0 }
  0xea   : > { %3250 = vmatmul.msk.f32.gmra.mxu1 %vm593_vm2, %v562_v42  ;;  %v1012_v42 = vmul.f32 %v956_v41, %v806_v32 }
  0xee   : > { %v809_v39 = vpop.f32.mrf.mxu0 }
  0xef   : > { %v1013_v47 = vmul.f32 %v957_v46, %v809_v39 }
  0xf2   : > { %3251 = vmatmul.msk.f32.gmra.mxu1 %vm593_vm2, %v563_v43 }
  0xf6   : > { %v812_v45 = vpop.f32.mrf.mxu0 }
  0xf7   : > { %v1014_v52 = vmul.f32 %v958_v50, %v812_v45  ;;  %v965_v45 = vld [vmem:[#allocation4 + $0x90] sm:$0xff]  ;;  %v578_v50 = vld [vmem:[#allocation2 + $0x148] sm:$0xff] }
  0xfa   : > { %3252 = vmatmul.msk.f32.gmra.mxu1 %vm593_vm2, %v564_v48 }
  0xfe   : > { %v815_v51 = vpop.f32.mrf.mxu0 }
  0xff   : > { %v1015_v57 = vmul.f32 %v959_v55, %v815_v51  ;;  %v966_v51 = vld [vmem:[#allocation4 + $0x98] sm:$0xff]  ;;  %v967_v55 = vld [vmem:[#allocation4 + $0xa0] sm:$0xff] }
 0x102   : > { %3282 = vmatmul.msk.f32.vlgmr.msrb.gmra.mxu1 %vm372_vm1, %v1003_v56 }
 0x106   : > { %v818_v56 = vpop.f32.mrf.mxu0 }
 0x107   : > { %v1016_v61 = vmul.f32 %v960_v60, %v818_v56 }
 0x10a   : > { %3283 = vmatmul.msk.f32.gmra.mxu1 %vm372_vm1, %v1004_v2  ;;  %v961_v2 = vld [vmem:[#allocation4 + $0x70] sm:$0xff] }
 0x10e   : > { %v821_v63 = vpop.f32.mrf.mxu0 }
 0x10f   : > { %v1017_v4 = vmul.f32 %v961_v2, %v821_v63 }
 0x112   : > { %3284 = vmatmul.msk.f32.gmra.mxu1 %vm372_vm1, %v1005_v8  ;;  %v1479_v8 = vld [vmem:[#allocation6 + $0x28] sm:$0xff] }
 0x116   : > { %v824_v10 = vpop.f32.mrf.mxu0 }
 0x117   : > { %v1018_v15 = vmul.f32 %v962_v12, %v824_v10  ;;  %v579_v12 = vld [vmem:[#allocation2 + $0x150] sm:$0xff] }
 0x11a   : > { %3285 = vmatmul.msk.f32.gmra.mxu1 %vm372_vm1, %v1006_v13  ;;  %v1477_v13 = vld [vmem:[#allocation6 + $0x18] sm:$0xff] }
 0x11f   : > { %v432_v18 = vpop.f32.mrf.mxu1 }
 0x120   : > { %v433_v19 = vadd.f32 %v3589_v16, %v432_v18  ;;  %v1476_v16 = vld [vmem:[#allocation6 + $0x10] sm:$0xff]  ;;  %v3570_v18 = vunpack.i.h.bf16 %v3568_v7 }
 0x121   : > { %v969_v7 = vld [vmem:[#allocation4 + $0xb0] sm:$0xff] }
 0x122   : > { %v435_v21 = vmax.f32 %v433_v19, 0.0  ;;  %3286 = vmatmul.msk.f32.gmra.mxu1 %vm372_vm1, %v1007_v17  ;;  %v3573_v19 = vpop.permute.xlu0 %3572  ;;  %524 = vmatpush.msra.mxu3 %v3570_v18 }
 0x123   : > { %v3574_v22 = vunpack.i.l.bf16 %v3573_v19  ;;  %v3575_v27 = vunpack.i.h.bf16 %v3573_v19  ;;  %v580_v19 = vld [vmem:[#allocation2 + $0x158] sm:$0xff] }
 0x124   : > { %3223 = vmatmul.msk.f32.vlgmr.msra.gmra.mxu2 %vm411_vm3, %v435_v21  ;;  %v575_v21 = vld [vmem:[#allocation2 + $0x130] sm:$0xff] }
 0x125   : > { %1660 = vmatpush.msra.mxu2 %v1481_v3  ;;  %525 = vmatpush.msra.mxu3 %v3574_v22 }
 0x127   : > { %v4039_v24 = vpop.f32.mrf.mxu1  ;;  %1661 = vmatpush.msra.mxu2 %v1480_v5  ;;  %526 = vmatpush.msra.mxu3 %v3575_v27  ;;  %v972_v27 = vld [vmem:[#allocation4 + $0xc8] sm:$0xff] }
 0x129   : > { %1662 = vmatpush.msra.mxu2 %v1479_v8 }
 0x12a   : > { %3287 = vmatmul.msk.f32.gmra.mxu1 %vm372_vm1, %v1008_v23  ;;  %v1474_v23 = vld [vmem:[#allocation6] sm:$0xff] }
 0x12b   : > { %1663 = vmatpush.msra.mxu2 %v1478_v11 }
 0x12c   : > { %3253 = vmatmul.msk.f32.vlgmr.msrb.gmra.mxu2 %vm593_vm2, %v565_v25  ;;  %v827_v25 = vpop.f32.mrf.mxu0 }
 0x12d   : > { %1664 = vmatpush.msra.mxu2 %v1477_v13  ;;  %v1019_v31 = vmul.f32 %v963_v26, %v827_v25  ;;  %v970_v13 = vld [vmem:[#allocation4 + $0xb8] sm:$0xff]  ;;  %v581_v26 = vld [vmem:[#allocation2 + $0x160] sm:$0xff] }
 0x12f   : > { %v4043_v29 = vpop.f32.mrf.mxu1  ;;  %1665 = vmatpush.msra.mxu2 %v1476_v16 }
 0x131   : > { %1666 = vmatpush.msra.mxu2 %v1475_v20  ;;  %v971_v20 = vld [vmem:[#allocation4 + $0xc0] sm:$0xff] }
 0x132   : > { %3288 = vmatmul.msk.f32.gmra.mxu1 %vm372_vm1, %v1009_v28  ;;  %v3578_v28 = vpop.permute.xlu1 %3577 }
 0x133   : > { %1667 = vmatpush.msra.mxu2 %v1474_v23 }
 0x134   : > { %3254 = vmatmul.msk.f32.gmra.mxu2 %vm593_vm2, %v566_v30  ;;  %v3579_v30 = vunpack.i.l.bf16 %v3578_v28 }
 0x136   : > { %527 = vmatpush.msra.mxu3 %v3579_v30 }
 0x137   : > { %v4047_v34 = vpop.f32.mrf.mxu1 }
 0x13a   : > { %3289 = vmatmul.msk.f32.gmra.mxu1 %vm372_vm1, %v1010_v33  ;;  %v3580_v33 = vunpack.i.h.bf16 %v3578_v28  ;;  %v3583_v36 = vpop.permute.xlu1 %3582 }
 0x13b   : > { %v3584_v39 = vunpack.i.l.bf16 %v3583_v36  ;;  %v3585_v41 = vunpack.i.h.bf16 %v3583_v36 }
 0x13c   : > { %3255 = vmatmul.msk.f32.gmra.mxu2 %vm593_vm2, %v567_v35  ;;  %v576_v35 = vld [vmem:[#allocation2 + $0x138] sm:$0xff]  ;;  %528 = vmatpush.msra.mxu3 %v3580_v33  ;;  %v582_v33 = vld [vmem:[#allocation2 + $0x168] sm:$0xff] }
 0x13e   : > { %529 = vmatpush.msra.mxu3 %v3584_v39 }
 0x13f   : > { %v4051_v38 = vpop.f32.mrf.mxu1 }
 0x140   : > { %530 = vmatpush.msra.mxu3 %v3585_v41  ;;  %v583_v41 = vld [vmem:[#allocation2 + $0x170] sm:$0xff] }
 0x142   : > { %3290 = vmatmul.msk.f32.gmra.mxu1 %vm372_vm1, %v1011_v37  ;;  %v964_v37 = vld [vmem:[#allocation4 + $0x88] sm:$0xff]  ;;  %3511 = vmatpush.msrb.mxu3 %v3982_v1 }
 0x144   : > { %3256 = vmatmul.msk.f32.gmra.mxu2 %vm593_vm2, %v568_v40 }
 0x147   : > { %v4055_v43 = vpop.f32.mrf.mxu1 }
 0x14a   : > { %3291 = vmatmul.msk.f32.gmra.mxu1 %vm372_vm1, %v1012_v42  ;;  %v1020_v42 = vmul.f32 %v964_v37, %v4039_v24 }
 0x14c   : > { %3257 = vmatmul.msk.f32.gmra.mxu2 %vm593_vm2, %v569_v44  ;;  %v577_v44 = vld [vmem:[#allocation2 + $0x140] sm:$0xff] }
 0x14f   : > { %v4059_v48 = vpop.f32.mrf.mxu1 }
 0x150   : > { %v1025_v10 = vmul.f32 %v969_v7, %v4059_v48  ;;  %v1900_v7 = vld [vmem:[#allocation6 + $0x78] sm:$0xff] }
 0x152   : > { %3292 = vmatmul.msk.f32.gmra.mxu1 %vm372_vm1, %v1013_v47  ;;  %v1021_v47 = vmul.f32 %v965_v45, %v4043_v29 }
 0x154   : > { %3258 = vmatmul.msk.f32.gmra.mxu2 %vm593_vm2, %v570_v49  ;;  %v4093_v49 = vld [vmem:[%s4954_s7] ss:$0 sm:$0xff] }
 0x157   : > { %v4063_v53 = vpop.f32.mrf.mxu1 }
 0x158   : > { %v1026_v16 = vmul.f32 %v970_v13, %v4063_v53  ;;  %v1898_v13 = vld [vmem:[#allocation6 + $0x68] sm:$0xff] }
 0x15a   : > { %3293 = vmatmul.msk.f32.gmra.mxu1 %vm372_vm1, %v1014_v52  ;;  %v1022_v52 = vmul.f32 %v966_v51, %v4047_v34  ;;  %v3591_v34 = vld [vmem:[%s4954_s7 + $0x5] ss:$0 sm:$0xff] }
 0x15c   : > { %3259 = vmatmul.msk.f32.gmra.mxu2 %vm593_vm2, %v571_v54 }
 0x15f   : > { %v4067_v58 = vpop.f32.mrf.mxu1 }
 0x160   : > { %v1027_v23 = vmul.f32 %v971_v20, %v4067_v58 }
 0x162   : > { %3294 = vmatmul.msk.f32.gmra.mxu1 %vm372_vm1, %v1015_v57  ;;  %v1023_v57 = vmul.f32 %v967_v55, %v4051_v38  ;;  %v976_v55 = vld [vmem:[#allocation4 + $0xe8] sm:$0xff] }
 0x164   : > { %3260 = vmatmul.msk.f32.gmra.mxu2 %vm593_vm2, %v572_v59 }
 0x167   : > { %v4071_v62 = vpop.f32.mrf.mxu1 }
 0x16a   : > { %3295 = vmatmul.msk.f32.gmra.mxu1 %vm372_vm1, %v1016_v61  ;;  %v968_v61 = vld [vmem:[#allocation4 + $0xa8] sm:$0xff] }
 0x16b   : > { %v1024_v2 = vmul.f32 %v968_v61, %v4055_v43 }
 0x16c   : > { %3261 = vmatmul.msk.f32.gmra.mxu2 %vm593_vm2, %v573_v0 }
 0x16f   : > { %v4075_v6 = vpop.f32.mrf.mxu1 }
 0x172   : > { %3296 = vmatmul.msk.f32.gmra.mxu1 %vm372_vm1, %v1017_v4 }
 0x174   : > { %3262 = vmatmul.msk.f32.gmra.mxu2 %vm593_vm2, %v574_v9 }
 0x177   : > { %v4079_v17 = vpop.f32.mrf.mxu1 }
 0x17a   : > { %3297 = vmatmul.msk.f32.gmra.mxu1 %vm372_vm1, %v1018_v15 }
 0x17c   : > { %3263 = vmatmul.msk.f32.gmra.mxu2 %vm593_vm2, %v575_v21 }
 0x17f   : > { %v1250_v32 = vpop.f32.mrf.mxu1 }
 0x180   : > { %v1251_v24 = vadd.f32 %v4093_v49, %v1250_v32 }
 0x182   : > { %3298 = vmatmul.msk.f32.gmra.mxu1 %vm372_vm1, %v1019_v31  ;;  %v1418_v54 = vmax.f32 %v1251_v24, 0.0  ;;  %v1028_v31 = vmul.f32 %v972_v27, %v4071_v62  ;;  %v975_v24 = vld [vmem:[#allocation4 + $0xe0] sm:$0xff] }
 0x184   : > { %3264 = vmatmul.msk.f32.gmra.mxu2 %vm593_vm2, %v576_v35  ;;  %v973_v35 = vld [vmem:[#allocation4 + $0xd0] sm:$0xff] }
 0x185   : > { %v1029_v39 = vmul.f32 %v973_v35, %v4075_v6 }
 0x187   : > { %v1253_v40 = vpop.f32.mrf.mxu1 }
 0x188   : > { %v1254_v29 = vadd.f32 %v4093_v49, %v1253_v40 }
 0x18a   : > { %3299 = vmatmul.msk.f32.gmra.mxu1 %vm372_vm1, %v1020_v42  ;;  %v1419_v59 = vmax.f32 %v1254_v29, 0.0  ;;  %v974_v42 = vld [vmem:[#allocation4 + $0xd8] sm:$0xff]  ;;  %v585_v29 = vld [vmem:[#allocation2 + $0x180] sm:$0xff] }
 0x18c   : > { %3265 = vmatmul.msk.f32.gmra.mxu2 %vm593_vm2, %v577_v44 }
 0x18f   : > { %v1256_v46 = vpop.f32.mrf.mxu1 }
 0x190   : > { %v1257_v60 = vadd.f32 %v4093_v49, %v1256_v46  ;;  %v1030_v46 = vmul.f32 %v974_v42, %v4079_v17 }
 0x192   : > { %3300 = vmatmul.msk.f32.gmra.mxu1 %vm372_vm1, %v1021_v47  ;;  %v1420_v3 = vmax.f32 %v1257_v60, 0.0 }
 0x194   : > { %3266 = vmatmul.msk.f32.gmra.mxu2 %vm593_vm2, %v578_v50  ;;  %v584_v50 = vld [vmem:[#allocation2 + $0x178] sm:$0xff] }
 0x197   : > { %v1259_v1 = vpop.f32.mrf.mxu1 }
 0x198   : > { %v1260_v38 = vadd.f32 %v4093_v49, %v1259_v1 }
 0x19a   : > { %3301 = vmatmul.msk.f32.gmra.mxu1 %vm372_vm1, %v1022_v52  ;;  %v1421_v11 = vmax.f32 %v1260_v38, 0.0 }
 0x19c   : > { %3338 = vmatmul.msk.f32.vlgmr.msra.gmra.mxu2 %vm411_vm3, %v1418_v54 }
 0x19f   : > { %v1262_v56 = vpop.f32.mrf.mxu1 }
 0x1a0   : > { %v1263_v43 = vadd.f32 %v4093_v49, %v1262_v56 }
 0x1a2   : > { %3302 = vmatmul.msk.f32.gmra.mxu1 %vm372_vm1, %v1023_v57  ;;  %v1422_v18 = vmax.f32 %v1263_v43, 0.0 }
 0x1a4   : > { %3339 = vmatmul.msk.f32.gmra.mxu2 %vm411_vm3, %v1419_v59 }
 0x1a7   : > { %v466_v63 = vpop.f32.mrf.mxu2  ;;  %v1265_v0 = vpop.f32.mrf.mxu1 }
 0x1a8   : > { %v467_v4 = vadd.f32 %v3591_v34, %v466_v63  ;;  %v1266_v48 = vadd.f32 %v4093_v49, %v1265_v0  ;;  %v586_v34 = vld [vmem:[#allocation2 + $0x188] sm:$0xff]  ;;  %v977_v63 = vld [vmem:[#allocation4 + $0xf0] sm:$0xff] }
 0x1aa   : > { %v469_v5 = vmax.f32 %v467_v4, 0.0  ;;  %3303 = vmatmul.msk.f32.gmra.mxu1 %vm372_vm1, %v1024_v2  ;;  %v1423_v25 = vmax.f32 %v1266_v48, 0.0  ;;  %v1895_v48 = vld [vmem:[#allocation6 + $0x50] sm:$0xff] }
 0x1ac   : > { %3224 = vmatmul.msk.f32.vlgmr.msra.gmra.mxu3 %vm411_vm3, %v469_v5  ;;  %3340 = vmatmul.msk.f32.gmra.mxu2 %vm411_vm3, %v1420_v3  ;;  %v587_v5 = vld [vmem:[#allocation2 + $0x190] sm:$0xff] }
 0x1ad   : > { %2079 = vmatpush.msra.mxu3 %v1900_v7 }
 0x1af   : > { %v863_v8 = vpop.f32.mrf.mxu2  ;;  %v1268_v9 = vpop.f32.mrf.mxu1 }
 0x1b0   : > { %v1269_v53 = vadd.f32 %v4093_v49, %v1268_v9  ;;  %v1031_v52 = vmul.f32 %v975_v24, %v863_v8  ;;  %v978_v8 = vld [vmem:[#allocation4 + $0xf8] sm:$0xff]  ;;  %v1899_v9 = vld [vmem:[#allocation6 + $0x70] sm:$0xff]  ;;  %v4205_v24 = vld [vmem:[%s4954_s7 + $0x1] ss:$0 sm:$0xff] }
 0x1b1   : > { %2080 = vmatpush.msra.mxu3 %v1899_v9 }
 0x1b2   : > { %3304 = vmatmul.msk.f32.gmra.mxu1 %vm372_vm1, %v1025_v10  ;;  %v1424_v32 = vmax.f32 %v1269_v53, 0.0  ;;  %v1893_v53 = vld [vmem:[#allocation6 + $0x40] sm:$0xff] }
 0x1b3   : > { %2081 = vmatpush.msra.mxu3 %v1898_v13  ;;  %v986_v13 = vld [vmem:[#allocation4 + $0x138] sm:$0xff] }
 0x1b4   : > { %3267 = vmatmul.msk.f32.vlgmr.msrb.gmra.mxu3 %vm593_vm2, %v579_v12  ;;  %3341 = vmatmul.msk.f32.gmra.mxu2 %vm411_vm3, %v1421_v11 }
 0x1b7   : > { %v866_v14 = vpop.f32.mrf.mxu2  ;;  %v1271_v15 = vpop.f32.mrf.mxu1 }
 0x1b8   : > { %v1272_v58 = vadd.f32 %v4093_v49, %v1271_v15  ;;  %v1032_v59 = vmul.f32 %v976_v55, %v866_v14  ;;  %v588_v14 = vld [vmem:[#allocation2 + $0x198] sm:$0xff]  ;;  %v1897_v15 = vld [vmem:[#allocation6 + $0x60] sm:$0xff] }
 0x1b9   : > { %2082 = vmatpush.msra.mxu3 %v1897_v15 }
 0x1ba   : > { %3305 = vmatmul.msk.f32.gmra.mxu1 %vm372_vm1, %v1026_v16  ;;  %v1425_v40 = vmax.f32 %v1272_v58, 0.0  ;;  %v590_v58 = vld [vmem:[#allocation2 + $0x1a8] sm:$0xff] }
 0x1bc   : > { %3268 = vmatmul.msk.f32.gmra.mxu3 %vm593_vm2, %v580_v19  ;;  %3342 = vmatmul.msk.f32.gmra.mxu2 %vm411_vm3, %v1422_v18  ;;  %v1896_v18 = vld [vmem:[#allocation6 + $0x58] sm:$0xff]  ;;  %v979_v19 = vld [vmem:[#allocation4 + $0x100] sm:$0xff] }
 0x1bd   : > { %2083 = vmatpush.msra.mxu3 %v1896_v18 }
 0x1bf   : > { %v869_v21 = vpop.f32.mrf.mxu2  ;;  %v1274_v22 = vpop.f32.mrf.mxu1  ;;  %2084 = vmatpush.msra.mxu3 %v1895_v48 }
 0x1c0   : > { %v1275_v62 = vadd.f32 %v4093_v49, %v1274_v22  ;;  %v1033_v3 = vmul.f32 %v977_v63, %v869_v21 }
 0x1c2   : > { %3306 = vmatmul.msk.f32.gmra.mxu1 %vm372_vm1, %v1027_v23  ;;  %v1426_v47 = vmax.f32 %v1275_v62, 0.0  ;;  %v591_v62 = vld [vmem:[#allocation2 + $0x1b0] sm:$0xff] }
 0x1c4   : > { %3269 = vmatmul.msk.f32.gmra.mxu3 %vm593_vm2, %v581_v26  ;;  %3343 = vmatmul.msk.f32.gmra.mxu2 %vm411_vm3, %v1423_v25  ;;  %v1894_v25 = vld [vmem:[#allocation6 + $0x48] sm:$0xff]  ;;  %v589_v26 = vld [vmem:[#allocation2 + $0x1a0] sm:$0xff] }
 0x1c5   : > { %2085 = vmatpush.msra.mxu3 %v1894_v25 }
 0x1c7   : > { %v4129_v28 = vpop.f32.mrf.mxu2  ;;  %v1277_v30 = vpop.f32.mrf.mxu1  ;;  %2086 = vmatpush.msra.mxu3 %v1893_v53 }
 0x1c8   : > { %v1278_v6 = vadd.f32 %v4093_v49, %v1277_v30  ;;  %v1034_v12 = vmul.f32 %v978_v8, %v4129_v28  ;;  %v980_v28 = vld [vmem:[#allocation4 + $0x108] sm:$0xff] }
 0x1ca   : > { %3307 = vmatmul.msk.f32.gmra.mxu1 %vm372_vm1, %v1028_v31  ;;  %v1427_v54 = vmax.f32 %v1278_v6, 0.0  ;;  %v592_v6 = vld [vmem:[#allocation2 + $0x1b8] sm:$0xff] }
 0x1cc   : > { %3270 = vmatmul.msk.f32.gmra.mxu3 %vm593_vm2, %v582_v33  ;;  %3344 = vmatmul.msk.f32.gmra.mxu2 %vm411_vm3, %v1424_v32 }
 0x1cf   : > { %v4136_v36 = vpop.f32.mrf.mxu2  ;;  %v1280_v37 = vpop.f32.mrf.mxu1 }
 0x1d0   : > { %v1281_v17 = vadd.f32 %v4093_v49, %v1280_v37  ;;  %v1035_v22 = vmul.f32 %v979_v19, %v4136_v36  ;;  %v981_v36 = vld [vmem:[#allocation4 + $0x110] sm:$0xff] }
 0x1d2   : > { %3308 = vmatmul.msk.f32.gmra.mxu1 %vm372_vm1, %v1029_v39  ;;  %v1428_v60 = vmax.f32 %v1281_v17, 0.0 }
 0x1d4   : > { %3271 = vmatmul.msk.f32.gmra.mxu3 %vm593_vm2, %v583_v41  ;;  %3345 = vmatmul.msk.f32.gmra.mxu2 %vm411_vm3, %v1425_v40 }
 0x1d7   : > { %v4143_v44 = vpop.f32.mrf.mxu2  ;;  %v1283_v45 = vpop.f32.mrf.mxu1 }
 0x1d8   : > { %v1284_v61 = vadd.f32 %v4093_v49, %v1283_v45  ;;  %v1036_v32 = vmul.f32 %v980_v28, %v4143_v44  ;;  %v982_v44 = vld [vmem:[#allocation4 + $0x118] sm:$0xff] }
 0x1da   : > { %3309 = vmatmul.msk.f32.gmra.mxu1 %vm372_vm1, %v1030_v46  ;;  %v1429_v4 = vmax.f32 %v1284_v61, 0.0 }
 0x1dc   : > { %3272 = vmatmul.msk.f32.gmra.mxu3 %vm593_vm2, %v584_v50  ;;  %3346 = vmatmul.msk.f32.gmra.mxu2 %vm411_vm3, %v1426_v47 }
 0x1df   : > { %v4150_v51 = vpop.f32.mrf.mxu2  ;;  %v1286_v1 = vpop.f32.mrf.mxu1 }
 0x1e0   : > { %v1287_v38 = vadd.f32 %v4093_v49, %v1286_v1  ;;  %v1037_v40 = vmul.f32 %v981_v36, %v4150_v51  ;;  %v983_v51 = vld [vmem:[#allocation4 + $0x120] sm:$0xff] }
 0x1e2   : > { %3310 = vmatmul.msk.f32.gmra.mxu1 %vm372_vm1, %v1031_v52  ;;  %v1430_v43 = vmax.f32 %v1287_v38, 0.0 }
 0x1e4   : > { %3273 = vmatmul.msk.f32.gmra.mxu3 %vm593_vm2, %v585_v29  ;;  %3347 = vmatmul.msk.f32.gmra.mxu2 %vm411_vm3, %v1427_v54 }
 0x1e7   : > { %v4156_v56 = vpop.f32.mrf.mxu2  ;;  %v1289_v57 = vpop.f32.mrf.mxu1 }
 0x1e8   : > { %v1290_v16 = vadd.f32 %v4093_v49, %v1289_v57  ;;  %v1038_v47 = vmul.f32 %v982_v44, %v4156_v56  ;;  %v984_v57 = vld [vmem:[#allocation4 + $0x128] sm:$0xff] }
 0x1ea   : > { %3311 = vmatmul.msk.f32.gmra.mxu1 %vm372_vm1, %v1032_v59  ;;  %v1431_v23 = vmax.f32 %v1290_v16, 0.0 }
 0x1ec   : > { %3274 = vmatmul.msk.f32.gmra.mxu3 %vm593_vm2, %v586_v34  ;;  %3348 = vmatmul.msk.f32.gmra.mxu2 %vm411_vm3, %v1428_v60 }
 0x1ef   : > { %v4162_v0 = vpop.f32.mrf.mxu2  ;;  %v1292_v2 = vpop.f32.mrf.mxu1 }
 0x1f0   : > { %v1293_v27 = vadd.f32 %v4093_v49, %v1292_v2  ;;  %v1039_v29 = vmul.f32 %v983_v51, %v4162_v0 }
 0x1f2   : > { %3312 = vmatmul.msk.f32.gmra.mxu1 %vm372_vm1, %v1033_v3  ;;  %v1432_v33 = vmax.f32 %v1293_v27, 0.0  ;;  %v3593_v3 = vld [vmem:[%s4954_s7 + $0x7] ss:$0 sm:$0xff] }
 0x1f4   : > { %3275 = vmatmul.msk.f32.gmra.mxu3 %vm593_vm2, %v587_v5  ;;  %3349 = vmatmul.msk.f32.gmra.mxu2 %vm411_vm3, %v1429_v4  ;;  %v985_v4 = vld [vmem:[#allocation4 + $0x130] sm:$0xff] }
 0x1f7   : > { %v4168_v10 = vpop.f32.mrf.mxu2  ;;  %v1295_v11 = vpop.f32.mrf.mxu1 }
 0x1f8   : > { %v1296_v35 = vadd.f32 %v4093_v49, %v1295_v11  ;;  %v1040_v61 = vmul.f32 %v984_v57, %v4168_v10 }
 0x1fa   : > { %3313 = vmatmul.msk.f32.gmra.mxu1 %vm372_vm1, %v1034_v12  ;;  %v1433_v41 = vmax.f32 %v1296_v35, 0.0 }
 0x1fc   : > { %3276 = vmatmul.msk.f32.gmra.mxu3 %vm593_vm2, %v588_v14  ;;  %3350 = vmatmul.msk.f32.gmra.mxu2 %vm411_vm3, %v1430_v43 }
 0x1ff   : > { %v4175_v20 = vpop.f32.mrf.mxu2  ;;  %v1298_v21 = vpop.f32.mrf.mxu1 }
 0x200   : > { %v1299_v42 = vadd.f32 %v4093_v49, %v1298_v21  ;;  %v1041_v8 = vmul.f32 %v985_v4, %v4175_v20 }
 0x202   : > { %3314 = vmatmul.msk.f32.gmra.mxu1 %vm372_vm1, %v1035_v22  ;;  %v1434_v50 = vmax.f32 %v1299_v42, 0.0  ;;  %v987_v22 = vld [vmem:[#allocation4 + $0x140] sm:$0xff] }
 0x204   : > { %3277 = vmatmul.msk.f32.gmra.mxu3 %vm593_vm2, %v589_v26  ;;  %3351 = vmatmul.msk.f32.gmra.mxu2 %vm411_vm3, %v1431_v23 }
 0x207   : > { %v4182_v30 = vpop.f32.mrf.mxu2  ;;  %v1301_v31 = vpop.f32.mrf.mxu1 }
 0x208   : > { %v1302_v1 = vadd.f32 %v4093_v49, %v1301_v31  ;;  %v1042_v18 = vmul.f32 %v986_v13, %v4182_v30 }
 0x20a   : > { %3315 = vmatmul.msk.f32.gmra.mxu1 %vm372_vm1, %v1036_v32  ;;  %v1435_v55 = vmax.f32 %v1302_v1, 0.0  ;;  %v988_v32 = vld [vmem:[#allocation4 + $0x148] sm:$0xff]  ;;  %v990_v1 = vld [vmem:[#allocation4 + $0x158] sm:$0xff] }
 0x20c   : > { %3278 = vmatmul.msk.f32.gmra.mxu3 %vm593_vm2, %v590_v58  ;;  %3352 = vmatmul.msk.f32.gmra.mxu2 %vm411_vm3, %v1432_v33 }
 0x20f   : > { %v4189_v37 = vpop.f32.mrf.mxu2  ;;  %v1304_v39 = vpop.f32.mrf.mxu1 }
 0x210   : > { %v1305_v59 = vadd.f32 %v4093_v49, %v1304_v39  ;;  %v1043_v53 = vmul.f32 %v987_v22, %v4189_v37 }
 0x212   : > { %3316 = vmatmul.msk.f32.gmra.mxu1 %vm372_vm1, %v1037_v40  ;;  %v1436_v0 = vmax.f32 %v1305_v59, 0.0 }
 0x214   : > { %3279 = vmatmul.msk.f32.gmra.mxu3 %vm593_vm2, %v591_v62  ;;  %3353 = vmatmul.msk.f32.gmra.mxu2 %vm411_vm3, %v1433_v41  ;;  %v989_v62 = vld [vmem:[#allocation4 + $0x150] sm:$0xff] }
 0x217   : > { %v4196_v45 = vpop.f32.mrf.mxu2  ;;  %v1307_v46 = vpop.f32.mrf.mxu1 }
 0x218   : > { %v1308_v5 = vadd.f32 %v4093_v49, %v1307_v46  ;;  %v1044_v36 = vmul.f32 %v988_v32, %v4196_v45 }
 0x21a   : > { %3317 = vmatmul.msk.f32.gmra.mxu1 %vm372_vm1, %v1038_v47  ;;  %v1437_v12 = vmax.f32 %v1308_v5, 0.0 }
 0x21c   : > { %3280 = vmatmul.msk.f32.gmra.mxu3 %vm593_vm2, %v592_v6  ;;  %3354 = vmatmul.msk.f32.gmra.mxu2 %vm411_vm3, %v1434_v50 }
 0x21f   : > { %v1310_v52 = vpop.f32.mrf.mxu1  ;;  %v1669_v54 = vpop.f32.mrf.mxu2 }
 0x220   : > { %v1670_v17 = vadd.f32 %v4205_v24, %v1669_v54  ;;  %v1311_v14 = vadd.f32 %v4093_v49, %v1310_v52 }
 0x222   : > { %v1837_v56 = vmax.f32 %v1670_v17, 0.0  ;;  %3318 = vmatmul.msk.f32.gmra.mxu1 %vm372_vm1, %v1039_v29  ;;  %v1438_v20 = vmax.f32 %v1311_v14, 0.0 }
 0x224   : > { %3355 = vmatmul.msk.f32.gmra.mxu2 %vm411_vm3, %v1435_v55  ;;  %3394 = vmatmul.msk.f32.vlgmr.msra.gmra.mxu3 %vm411_vm3, %v1837_v56 }
 0x227   : > { %v1313_v60 = vpop.f32.mrf.mxu1  ;;  %v1672_v34 = vpop.f32.mrf.mxu2 }
 0x228   : > { %v1673_v63 = vadd.f32 %v4205_v24, %v1672_v34  ;;  %v1314_v23 = vadd.f32 %v4093_v49, %v1313_v60  ;;  %v991_v60 = vld [vmem:[#allocation4 + $0x160] sm:$0xff] }
 0x22a   : > { %v1838_v2 = vmax.f32 %v1673_v63, 0.0  ;;  %3319 = vmatmul.msk.f32.gmra.mxu1 %vm372_vm1, %v1040_v61  ;;  %v1439_v30 = vmax.f32 %v1314_v23, 0.0 }
 0x22c   : > { %3356 = vmatmul.msk.f32.gmra.mxu2 %vm411_vm3, %v1436_v0  ;;  %3395 = vmatmul.msk.f32.gmra.mxu3 %vm411_vm3, %v1838_v2 }
 0x22f   : > { %v532_v38 = vpop.f32.mrf.mxu3  ;;  %v1316_v7 = vpop.f32.mrf.mxu1 }
 0x230   : > { %v4224_v9 = vadd.f32 %v3593_v3, %v532_v38  ;;  %v1675_v10 = vpop.f32.mrf.mxu2  ;;  %v1317_v33 = vadd.f32 %v4093_v49, %v1316_v7  ;;  %v992_v38 = vld [vmem:[#allocation4 + $0x168] sm:$0xff] }
 0x231   : > { %v1676_v11 = vadd.f32 %v4205_v24, %v1675_v10 }
 0x232   : > { %3320 = vmatmul.msk.f32.gmra.mxu1 %vm372_vm1, %v1041_v8  ;;  %3102 = vrot.lane.b32.xlu0 %v4224_v9, %s3862_s13  ;;  %v1440_v40 = vmax.f32 %v1317_v33, 0.0 }
 0x233   : > { %v1839_v43 = vmax.f32 %v1676_v11, 0.0 }
 0x234   : > { %3357 = vmatmul.msk.f32.gmra.mxu2 %vm411_vm3, %v1437_v12 }
 0x235   : > { %3396 = vmatmul.msk.f32.gmra.mxu3 %vm411_vm3, %v1839_v43 }
 0x237   : > { %v905_v15 = vpop.f32.mrf.mxu3  ;;  %v1319_v16 = vpop.f32.mrf.mxu1 }
 0x238   : > { %v1678_v19 = vpop.f32.mrf.mxu2  ;;  %v1320_v42 = vadd.f32 %v4093_v49, %v1319_v16  ;;  %v1045_v47 = vmul.f32 %v989_v62, %v905_v15  ;;  %v993_v15 = vld [vmem:[#allocation4 + $0x170] sm:$0xff] }
 0x239   : > { %v1679_v48 = vadd.f32 %v4205_v24, %v1678_v19 }
 0x23a   : > { %3321 = vmatmul.msk.f32.gmra.mxu1 %vm372_vm1, %v1042_v18  ;;  %v1441_v6 = vmax.f32 %v1320_v42, 0.0 }
 0x23b   : > { %v1840_v21 = vmax.f32 %v1679_v48, 0.0 }
 0x23c   : > { %3358 = vmatmul.msk.f32.gmra.mxu2 %vm411_vm3, %v1438_v20 }
 0x23d   : > { %3397 = vmatmul.msk.f32.gmra.mxu3 %vm411_vm3, %v1840_v21 }
 0x23f   : > { %v908_v25 = vpop.f32.mrf.mxu3  ;;  %v1322_v26 = vpop.f32.mrf.mxu1 }
 0x240   : > { %v1681_v27 = vpop.f32.mrf.mxu2  ;;  %v1323_v52 = vadd.f32 %v4093_v49, %v1322_v26  ;;  %v1046_v17 = vmul.f32 %v990_v1, %v908_v25  ;;  %v994_v25 = vld [vmem:[#allocation4 + $0x178] sm:$0xff] }
 0x241   : > { %v1682_v28 = vadd.f32 %v4205_v24, %v1681_v27 }
 0x242   : > { %3322 = vmatmul.msk.f32.gmra.mxu1 %vm372_vm1, %v1043_v53  ;;  %v1442_v57 = vmax.f32 %v1323_v52, 0.0 }
 0x243   : > { %v1841_v31 = vmax.f32 %v1682_v28, 0.0 }
 0x244   : > { %3359 = vmatmul.msk.f32.gmra.mxu2 %vm411_vm3, %v1439_v30 }
 0x245   : > { %3398 = vmatmul.msk.f32.gmra.mxu3 %vm411_vm3, %v1841_v31 }
 0x247   : > { %v911_v58 = vpop.f32.mrf.mxu3  ;;  %v1325_v35 = vpop.f32.mrf.mxu1 }
 0x248   : > { %v1684_v39 = vpop.f32.mrf.mxu2  ;;  %v1326_v34 = vadd.f32 %v4093_v49, %v1325_v35  ;;  %v1047_v0 = vmul.f32 %v991_v60, %v911_v58  ;;  %v995_v58 = vld [vmem:[#allocation4 + $0x180] sm:$0xff] }
 0x249   : > { %v1685_v37 = vadd.f32 %v4205_v24, %v1684_v39 }
 0x24a   : > { %3323 = vmatmul.msk.f32.gmra.mxu1 %vm372_vm1, %v1044_v36  ;;  %v1443_v4 = vmax.f32 %v1326_v34, 0.0 }
 0x24b   : > { %v1842_v41 = vmax.f32 %v1685_v37, 0.0 }
 0x24c   : > { %3360 = vmatmul.msk.f32.gmra.mxu2 %vm411_vm3, %v1440_v40 }
 0x24d   : > { %3399 = vmatmul.msk.f32.gmra.mxu3 %vm411_vm3, %v1842_v41 }
 0x24f   : > { %v914_v44 = vpop.f32.mrf.mxu3  ;;  %v1328_v46 = vpop.f32.mrf.mxu1 }
 0x250   : > { %v1687_v50 = vpop.f32.mrf.mxu2  ;;  %v1329_v7 = vadd.f32 %v4093_v49, %v1328_v46  ;;  %v1048_v11 = vmul.f32 %v992_v38, %v914_v44  ;;  %v996_v44 = vld [vmem:[#allocation4 + $0x188] sm:$0xff] }
 0x251   : > { %v1688_v45 = vadd.f32 %v4205_v24, %v1687_v50 }
 0x252   : > { %3324 = vmatmul.msk.f32.gmra.mxu1 %vm372_vm1, %v1045_v47  ;;  %v1444_v13 = vmax.f32 %v1329_v7, 0.0 }
 0x253   : > { %v1843_v51 = vmax.f32 %v1688_v45, 0.0 }
 0x254   : > { %3361 = vmatmul.msk.f32.gmra.mxu2 %vm411_vm3, %v1441_v6 }
 0x255   : > { %3400 = vmatmul.msk.f32.gmra.mxu3 %vm411_vm3, %v1843_v51 }
 0x257   : > { %v917_v54 = vpop.f32.mrf.mxu3  ;;  %v1331_v29 = vpop.f32.mrf.mxu1 }
 0x258   : > { %v1690_v55 = vpop.f32.mrf.mxu2  ;;  %v1332_v16 = vadd.f32 %v4093_v49, %v1331_v29  ;;  %v1049_v48 = vmul.f32 %v993_v15, %v917_v54  ;;  %v997_v54 = vld [vmem:[#allocation4 + $0x190] sm:$0xff] }
 0x259   : > { %v1691_v56 = vadd.f32 %v4205_v24, %v1690_v55 }
 0x25a   : > { %3325 = vmatmul.msk.f32.gmra.mxu1 %vm372_vm1, %v1046_v17  ;;  %v1445_v22 = vmax.f32 %v1332_v16, 0.0 }
 0x25b   : > { %v1844_v59 = vmax.f32 %v1691_v56, 0.0 }
 0x25c   : > { %3362 = vmatmul.msk.f32.gmra.mxu2 %vm411_vm3, %v1442_v57 }
 0x25d   : > { %3401 = vmatmul.msk.f32.gmra.mxu3 %vm411_vm3, %v1844_v59 }
 0x25f   : > { %v920_v61 = vpop.f32.mrf.mxu3  ;;  %v1334_v63 = vpop.f32.mrf.mxu1 }
 0x260   : > { %v1693_v2 = vpop.f32.mrf.mxu2  ;;  %v1335_v26 = vadd.f32 %v4093_v49, %v1334_v63  ;;  %v1050_v28 = vmul.f32 %v994_v25, %v920_v61  ;;  %v998_v61 = vld [vmem:[#allocation4 + $0x198] sm:$0xff] }
 0x261   : > { %v1694_v3 = vadd.f32 %v4205_v24, %v1693_v2 }
 0x262   : > { %3326 = vmatmul.msk.f32.gmra.mxu1 %vm372_vm1, %v1047_v0  ;;  %v1446_v32 = vmax.f32 %v1335_v26, 0.0 }
 0x263   : > { %v1845_v5 = vmax.f32 %v1694_v3, 0.0 }
 0x264   : > { %3363 = vmatmul.msk.f32.gmra.mxu2 %vm411_vm3, %v1443_v4 }
 0x265   : > { %3402 = vmatmul.msk.f32.gmra.mxu3 %vm411_vm3, %v1845_v5 }
 0x267   : > { %v923_v8 = vpop.f32.mrf.mxu3  ;;  %v1337_v10 = vpop.f32.mrf.mxu1 }
 0x268   : > { %v1696_v12 = vpop.f32.mrf.mxu2  ;;  %v1338_v35 = vadd.f32 %v4093_v49, %v1337_v10  ;;  %v1051_v37 = vmul.f32 %v995_v58, %v923_v8  ;;  %v999_v8 = vld [vmem:[#allocation4 + $0x1a0] sm:$0xff] }
 0x269   : > { %v1697_v43 = vadd.f32 %v4205_v24, %v1696_v12 }
 0x26a   : > { %3327 = vmatmul.msk.f32.gmra.mxu1 %vm372_vm1, %v1048_v11  ;;  %v1447_v62 = vmax.f32 %v1338_v35, 0.0 }
 0x26b   : > { %v1846_v14 = vmax.f32 %v1697_v43, 0.0 }
 0x26c   : > { %3364 = vmatmul.msk.f32.gmra.mxu2 %vm411_vm3, %v1444_v13 }
 0x26d   : > { %3403 = vmatmul.msk.f32.gmra.mxu3 %vm411_vm3, %v1846_v14 }
 0x26f   : > { %v926_v18 = vpop.f32.mrf.mxu3  ;;  %v1340_v19 = vpop.f32.mrf.mxu1 }
 0x270   : > { %v1699_v20 = vpop.f32.mrf.mxu2  ;;  %v1341_v46 = vadd.f32 %v4093_v49, %v1340_v19  ;;  %v1052_v45 = vmul.f32 %v996_v44, %v926_v18  ;;  %v4307_v18 = vld [vmem:[%s4954_s7 + $0x2] ss:$0 sm:$0xff]  ;;  %v1000_v19 = vld [vmem:[#allocation4 + $0x1a8] sm:$0xff] }
 0x271   : > { %v1700_v21 = vadd.f32 %v4205_v24, %v1699_v20 }
 0x272   : > { %3328 = vmatmul.msk.f32.gmra.mxu1 %vm372_vm1, %v1049_v48  ;;  %v1448_v1 = vmax.f32 %v1341_v46, 0.0 }
 0x273   : > { %v1847_v23 = vmax.f32 %v1700_v21, 0.0 }
 0x274   : > { %3365 = vmatmul.msk.f32.gmra.mxu2 %vm411_vm3, %v1445_v22 }
 0x275   : > { %3404 = vmatmul.msk.f32.gmra.mxu3 %vm411_vm3, %v1847_v23 }
 0x277   : > { %v929_v53 = vpop.f32.mrf.mxu3  ;;  %v1343_v27 = vpop.f32.mrf.mxu1 }
 0x278   : > { %v1702_v30 = vpop.f32.mrf.mxu2  ;;  %v1344_v29 = vadd.f32 %v4093_v49, %v1343_v27  ;;  %v1053_v56 = vmul.f32 %v997_v54, %v929_v53 }
 0x279   : > { %v1703_v31 = vadd.f32 %v4205_v24, %v1702_v30  ;;  %v1001_v30 = vld [vmem:[#allocation4 + $0x1b0] sm:$0xff] }
 0x27a   : > { %3329 = vmatmul.msk.f32.gmra.mxu1 %vm372_vm1, %v1050_v28  ;;  %v1449_v60 = vmax.f32 %v1344_v29, 0.0 }
 0x27b   : > { %v1848_v33 = vmax.f32 %v1703_v31, 0.0 }
 0x27c   : > { %3366 = vmatmul.msk.f32.gmra.mxu2 %vm411_vm3, %v1446_v32 }
 0x27d   : > { %3405 = vmatmul.msk.f32.gmra.mxu3 %vm411_vm3, %v1848_v33 }
 0x27f   : > { %v932_v36 = vpop.f32.mrf.mxu3  ;;  %v1346_v39 = vpop.f32.mrf.mxu1 }
 0x280   : > { %v1705_v40 = vpop.f32.mrf.mxu2  ;;  %v1347_v63 = vadd.f32 %v4093_v49, %v1346_v39  ;;  %v1054_v3 = vmul.f32 %v998_v61, %v932_v36 }
 0x281   : > { %v1706_v41 = vadd.f32 %v4205_v24, %v1705_v40 }
 0x282   : > { %3330 = vmatmul.msk.f32.gmra.mxu1 %vm372_vm1, %v1051_v37  ;;  %v1450_v38 = vmax.f32 %v1347_v63, 0.0 }
 0x283   : > { %v1849_v42 = vmax.f32 %v1706_v41, 0.0 }
 0x284   : > { %3367 = vmatmul.msk.f32.gmra.mxu2 %vm411_vm3, %v1447_v62  ;;  %v1002_v62 = vld [vmem:[#allocation4 + $0x1b8] sm:$0xff] }
 0x285   : > { %3406 = vmatmul.msk.f32.gmra.mxu3 %vm411_vm3, %v1849_v42 }
 0x287   : > { %v935_v47 = vpop.f32.mrf.mxu3  ;;  %v1349_v50 = vpop.f32.mrf.mxu1 }
 0x288   : > { %v1708_v6 = vpop.f32.mrf.mxu2  ;;  %v1350_v10 = vadd.f32 %v4093_v49, %v1349_v50  ;;  %v1055_v43 = vmul.f32 %v999_v8, %v935_v47 }
 0x289   : > { %v1709_v51 = vadd.f32 %v4205_v24, %v1708_v6 }
 0x28a   : > { %3331 = vmatmul.msk.f32.gmra.mxu1 %vm372_vm1, %v1052_v45  ;;  %v1451_v15 = vmax.f32 %v1350_v10, 0.0 }
 0x28b   : > { %v1850_v52 = vmax.f32 %v1709_v51, 0.0 }
 0x28c   : > { %3368 = vmatmul.msk.f32.gmra.mxu2 %vm411_vm3, %v1448_v1 }
 0x28d   : > { %3407 = vmatmul.msk.f32.gmra.mxu3 %vm411_vm3, %v1850_v52 }
 0x28f   : > { %v938_v17 = vpop.f32.mrf.mxu3  ;;  %v1352_v55 = vpop.f32.mrf.mxu1 }
 0x290   : > { %v1711_v57 = vpop.f32.mrf.mxu2  ;;  %v1353_v48 = vadd.f32 %v4093_v49, %v1352_v55  ;;  %v1056_v22 = vmul.f32 %v1000_v19, %v938_v17 }
 0x291   : > { %v1712_v59 = vadd.f32 %v4205_v24, %v1711_v57 }
 0x292   : > { %3332 = vmatmul.msk.f32.gmra.mxu1 %vm372_vm1, %v1053_v56  ;;  %v1452_v53 = vmax.f32 %v1353_v48, 0.0 }
 0x293   : > { %v1851_v34 = vmax.f32 %v1712_v59, 0.0 }
 0x294   : > { %3369 = vmatmul.msk.f32.gmra.mxu2 %vm411_vm3, %v1449_v60 }
 0x295   : > { %3408 = vmatmul.msk.f32.gmra.mxu3 %vm411_vm3, %v1851_v34 }
 0x297   : > { %v941_v0 = vpop.f32.mrf.mxu3  ;;  %v1355_v2 = vpop.f32.mrf.mxu1 }
 0x298   : > { %v1714_v4 = vpop.f32.mrf.mxu2  ;;  %v1356_v31 = vadd.f32 %v4093_v49, %v1355_v2  ;;  %v1057_v58 = vmul.f32 %v1001_v30, %v941_v0 }
 0x299   : > { %v1715_v5 = vadd.f32 %v4205_v24, %v1714_v4 }
 0x29a   : > { %3333 = vmatmul.msk.f32.gmra.mxu1 %vm372_vm1, %v1054_v3  ;;  %v1453_v37 = vmax.f32 %v1356_v31, 0.0 }
 0x29b   : > { %v1852_v7 = vmax.f32 %v1715_v5, 0.0 }
 0x29c   : > { %3370 = vmatmul.msk.f32.gmra.mxu2 %vm411_vm3, %v1450_v38 }
 0x29d   : > { %3409 = vmatmul.msk.f32.gmra.mxu3 %vm411_vm3, %v1852_v7 }
 0x29f   : > { %v944_v11 = vpop.f32.mrf.mxu3  ;;  %v1358_v12 = vpop.f32.mrf.mxu1 }
 0x2a0   : > { %v1717_v13 = vpop.f32.mrf.mxu2  ;;  %v1359_v42 = vadd.f32 %v4093_v49, %v1358_v12  ;;  %v1058_v46 = vmul.f32 %v1002_v62, %v944_v11 }
 0x2a1   : > { %v1718_v14 = vadd.f32 %v4205_v24, %v1717_v13 }
 0x2a2   : > { %3334 = vmatmul.msk.f32.gmra.mxu1 %vm372_vm1, %v1055_v43  ;;  %v1454_v51 = vmax.f32 %v1359_v42, 0.0 }
 0x2a3   : > { %v1853_v16 = vmax.f32 %v1718_v14, 0.0 }
 0x2a4   : > { %3371 = vmatmul.msk.f32.gmra.mxu2 %vm411_vm3, %v1451_v15 }
 0x2a5   : > { %3410 = vmatmul.msk.f32.gmra.mxu3 %vm411_vm3, %v1853_v16 }
 0x2a7   : > { %v1361_v20 = vpop.f32.mrf.mxu1  ;;  %v2088_v21 = vpop.f32.mrf.mxu3 }
 0x2a8   : > { %v1720_v23 = vpop.f32.mrf.mxu2  ;;  %v2089_v25 = vadd.f32 %v4307_v18, %v2088_v21  ;;  %v1362_v54 = vadd.f32 %v4093_v49, %v1361_v20 }
 0x2a9   : > { %v1721_v26 = vadd.f32 %v4205_v24, %v1720_v23 }
 0x2aa   : > { %v2256_v27 = vmax.f32 %v2089_v25, 0.0  ;;  %3335 = vmatmul.msk.f32.gmra.mxu1 %vm372_vm1, %v1056_v22  ;;  %v1455_v59 = vmax.f32 %v1362_v54, 0.0 }
 0x2ab   : > { %v1854_v28 = vmax.f32 %v1721_v26, 0.0 }
 0x2ac   : > { %3372 = vmatmul.msk.f32.gmra.mxu2 %vm411_vm3, %v1452_v53  ;;  %3450 = vmatmul.msk.f32.vlgmr.msrb.gmra.mxu0 %vm411_vm3, %v2256_v27 }
 0x2ad   : > { %3411 = vmatmul.msk.f32.gmra.mxu3 %vm411_vm3, %v1854_v28 }
 0x2af   : > { %v1364_v32 = vpop.f32.mrf.mxu1  ;;  %v2091_v33 = vpop.f32.mrf.mxu3 }
 0x2b0   : > { %v1723_v35 = vpop.f32.mrf.mxu2  ;;  %v2092_v36 = vadd.f32 %v4307_v18, %v2091_v33  ;;  %v1365_v61 = vadd.f32 %v4093_v49, %v1364_v32 }
 0x2b1   : > { %v1724_v39 = vadd.f32 %v4205_v24, %v1723_v35 }
 0x2b2   : > { %v2257_v40 = vmax.f32 %v2092_v36, 0.0  ;;  %3336 = vmatmul.msk.f32.gmra.mxu1 %vm372_vm1, %v1057_v58  ;;  %v1456_v5 = vmax.f32 %v1365_v61, 0.0 }
 0x2b3   : > { %v1855_v41 = vmax.f32 %v1724_v39, 0.0 }
 0x2b4   : > { %3373 = vmatmul.msk.f32.gmra.mxu2 %vm411_vm3, %v1453_v37  ;;  %3451 = vmatmul.msk.f32.gmra.mxu0 %vm411_vm3, %v2257_v40 }
 0x2b5   : > { %3412 = vmatmul.msk.f32.gmra.mxu3 %vm411_vm3, %v1855_v41 }
 0x2b7   : > { %v1367_v44 = vpop.f32.mrf.mxu1 }
 0x2b8   : > { %v1726_v47 = vpop.f32.mrf.mxu2  ;;  %v2094_v50 = vpop.f32.mrf.mxu3  ;;  %v1368_v8 = vadd.f32 %v4093_v49, %v1367_v44 }
 0x2b9   : > { %v1727_v45 = vadd.f32 %v4205_v24, %v1726_v47  ;;  %v2095_v6 = vadd.f32 %v4307_v18, %v2094_v50 }
 0x2ba   : > { %3337 = vmatmul.msk.f32.gmra.mxu1 %vm372_vm1, %v1058_v46  ;;  %v1457_v14 = vmax.f32 %v1368_v8, 0.0 }
 0x2bb   : > { %v1856_v1 = vmax.f32 %v1727_v45, 0.0  ;;  %v2258_v52 = vmax.f32 %v2095_v6, 0.0 }
 0x2bc   : > { %3374 = vmatmul.msk.f32.gmra.mxu2 %vm411_vm3, %v1454_v51 }
 0x2bd   : > { %3413 = vmatmul.msk.f32.gmra.mxu3 %vm411_vm3, %v1856_v1  ;;  %3452 = vmatmul.msk.f32.gmra.mxu0 %vm411_vm3, %v2258_v52 }
 0x2bf   : > { %v1370_v29 = vpop.f32.mrf.mxu1 }
 0x2c0   : > { %v1729_v17 = vpop.f32.mrf.mxu2  ;;  %v2097_v55 = vpop.f32.mrf.mxu3  ;;  %v1371_v19 = vadd.f32 %v4093_v49, %v1370_v29 }
 0x2c1   : > { %v1730_v56 = vadd.f32 %v4205_v24, %v1729_v17  ;;  %v2098_v57 = vadd.f32 %v4307_v18, %v2097_v55 }
 0x2c2   : > { %v1458_v25 = vmax.f32 %v1371_v19, 0.0 }
 0x2c3   : > { %v1857_v60 = vmax.f32 %v1730_v56, 0.0  ;;  %v2259_v34 = vmax.f32 %v2098_v57, 0.0 }
 0x2c4   : > { %3375 = vmatmul.msk.f32.gmra.mxu2 %vm411_vm3, %v1455_v59 }
 0x2c5   : > { %3414 = vmatmul.msk.f32.gmra.mxu3 %vm411_vm3, %v1857_v60  ;;  %3453 = vmatmul.msk.f32.gmra.mxu0 %vm411_vm3, %v2259_v34 }
 0x2c7   : > { %v1373_v63 = vpop.f32.mrf.mxu1 }
 0x2c8   : > { %v1732_v0 = vpop.f32.mrf.mxu2  ;;  %v2100_v2 = vpop.f32.mrf.mxu3  ;;  %v1374_v27 = vadd.f32 %v4093_v49, %v1373_v63 }
 0x2c9   : > { %v1733_v3 = vadd.f32 %v4205_v24, %v1732_v0  ;;  %v2101_v4 = vadd.f32 %v4307_v18, %v2100_v2 }
 0x2ca   : > { %v1459_v58 = vmax.f32 %v1374_v27, 0.0 }
 0x2cb   : > { %v1858_v38 = vmax.f32 %v1733_v3, 0.0  ;;  %v2260_v7 = vmax.f32 %v2101_v4, 0.0 }
 0x2cc   : > { %3376 = vmatmul.msk.f32.gmra.mxu2 %vm411_vm3, %v1456_v5 }
 0x2cd   : > { %3415 = vmatmul.msk.f32.gmra.mxu3 %vm411_vm3, %v1858_v38  ;;  %3454 = vmatmul.msk.f32.gmra.mxu0 %vm411_vm3, %v2260_v7 }
 0x2cf   : > { %v1376_v10 = vpop.f32.mrf.mxu1 }
 0x2d0   : > { %v1735_v11 = vpop.f32.mrf.mxu2  ;;  %v2103_v12 = vpop.f32.mrf.mxu3  ;;  %v1377_v39 = vadd.f32 %v4093_v49, %v1376_v10 }
 0x2d1   : > { %v1736_v43 = vadd.f32 %v4205_v24, %v1735_v11  ;;  %v2104_v13 = vadd.f32 %v4307_v18, %v2103_v12 }
 0x2d2   : > { %v1460_v44 = vmax.f32 %v1377_v39, 0.0 }
 0x2d3   : > { %v1859_v15 = vmax.f32 %v1736_v43, 0.0  ;;  %v2261_v16 = vmax.f32 %v2104_v13, 0.0 }
 0x2d4   : > { %3377 = vmatmul.msk.f32.gmra.mxu2 %vm411_vm3, %v1457_v14 }
 0x2d5   : > { %3416 = vmatmul.msk.f32.gmra.mxu3 %vm411_vm3, %v1859_v15  ;;  %3455 = vmatmul.msk.f32.gmra.mxu0 %vm411_vm3, %v2261_v16 }
 0x2d7   : > { %v1379_v48 = vpop.f32.mrf.mxu1 }
 0x2d8   : > { %v1738_v20 = vpop.f32.mrf.mxu2  ;;  %v2106_v21 = vpop.f32.mrf.mxu3  ;;  %v1380_v50 = vadd.f32 %v4093_v49, %v1379_v48  ;;  %v4376_v49 = vld [vmem:[%s4954_s7] ss:$0 sm:$0xff] }
 0x2d9   : > { %v1739_v22 = vadd.f32 %v4205_v24, %v1738_v20  ;;  %v2107_v23 = vadd.f32 %v4307_v18, %v2106_v21 }
 0x2da   : > { %v1461_v54 = vmax.f32 %v1380_v50, 0.0 }
 0x2db   : > { %v1860_v26 = vmax.f32 %v1739_v22, 0.0  ;;  %v2262_v53 = vmax.f32 %v2107_v23, 0.0 }
 0x2dc   : > { %3378 = vmatmul.msk.f32.gmra.mxu2 %vm411_vm3, %v1458_v25 }
 0x2dd   : > { %3417 = vmatmul.msk.f32.gmra.mxu3 %vm411_vm3, %v1860_v26  ;;  %3456 = vmatmul.msk.f32.gmra.mxu0 %vm411_vm3, %v2262_v53 }
 0x2df   : > { %v1382_v28 = vpop.f32.mrf.mxu1 }
 0x2e0   : > { %v1741_v30 = vpop.f32.mrf.mxu2  ;;  %v2109_v31 = vpop.f32.mrf.mxu3  ;;  %v1383_v55 = vadd.f32 %v4376_v49, %v1382_v28 }
 0x2e1   : > { %v1742_v32 = vadd.f32 %v4205_v24, %v1741_v30  ;;  %v2110_v33 = vadd.f32 %v4307_v18, %v2109_v31 }
 0x2e2   : > { %v1462_v34 = vmax.f32 %v1383_v55, 0.0 }
 0x2e3   : > { %v1861_v35 = vmax.f32 %v1742_v32, 0.0  ;;  %v2263_v36 = vmax.f32 %v2110_v33, 0.0 }
 0x2e4   : > { %3379 = vmatmul.msk.f32.gmra.mxu2 %vm411_vm3, %v1459_v58 }
 0x2e5   : > { %3418 = vmatmul.msk.f32.gmra.mxu3 %vm411_vm3, %v1861_v35  ;;  %3457 = vmatmul.msk.f32.gmra.mxu0 %vm411_vm3, %v2263_v36 }
 0x2e7   : > { %v1385_v37 = vpop.f32.mrf.mxu1 }
 0x2e8   : > { %v1744_v40 = vpop.f32.mrf.mxu2  ;;  %v2112_v41 = vpop.f32.mrf.mxu3  ;;  %v1386_v2 = vadd.f32 %v4376_v49, %v1385_v37 }
 0x2e9   : > { %v1745_v62 = vadd.f32 %v4205_v24, %v1744_v40  ;;  %v2113_v42 = vadd.f32 %v4307_v18, %v2112_v41 }
 0x2ea   : > { %v1463_v7 = vmax.f32 %v1386_v2, 0.0 }
 0x2eb   : > { %v1862_v46 = vmax.f32 %v1745_v62, 0.0  ;;  %v2264_v47 = vmax.f32 %v2113_v42, 0.0 }
 0x2ec   : > { %3380 = vmatmul.msk.f32.gmra.mxu2 %vm411_vm3, %v1460_v44 }
 0x2ed   : > { %3419 = vmatmul.msk.f32.gmra.mxu3 %vm411_vm3, %v1862_v46  ;;  %3458 = vmatmul.msk.f32.gmra.mxu0 %vm411_vm3, %v2264_v47 }
 0x2ef   : > { %v1388_v51 = vpop.f32.mrf.mxu1 }
 0x2f0   : > { %v1747_v45 = vpop.f32.mrf.mxu2  ;;  %v2115_v6 = vpop.f32.mrf.mxu3  ;;  %v1389_v12 = vadd.f32 %v4376_v49, %v1388_v51 }
 0x2f1   : > { %v1748_v1 = vadd.f32 %v4205_v24, %v1747_v45  ;;  %v2116_v52 = vadd.f32 %v4307_v18, %v2115_v6 }
 0x2f2   : > { %v1464_v16 = vmax.f32 %v1389_v12, 0.0 }
 0x2f3   : > { %v1863_v29 = vmax.f32 %v1748_v1, 0.0  ;;  %v2265_v17 = vmax.f32 %v2116_v52, 0.0 }
 0x2f4   : > { %3381 = vmatmul.msk.f32.gmra.mxu2 %vm411_vm3, %v1461_v54 }
 0x2f5   : > { %3420 = vmatmul.msk.f32.gmra.mxu3 %vm411_vm3, %v1863_v29  ;;  %3459 = vmatmul.msk.f32.gmra.mxu0 %vm411_vm3, %v2265_v17 }
 0x2f7   : > { %v1391_v61 = vpop.f32.mrf.mxu1 }
 0x2f8   : > { %v1750_v56 = vpop.f32.mrf.mxu2  ;;  %v2118_v57 = vpop.f32.mrf.mxu3  ;;  %v1392_v20 = vadd.f32 %v4376_v49, %v1391_v61 }
 0x2f9   : > { %v1751_v59 = vadd.f32 %v4205_v24, %v1750_v56  ;;  %v2119_v60 = vadd.f32 %v4307_v18, %v2118_v57 }
 0x2fa   : > { %v1465_v53 = vmax.f32 %v1392_v20, 0.0 }
 0x2fb   : > { %v1864_v63 = vmax.f32 %v1751_v59, 0.0  ;;  %v2266_v0 = vmax.f32 %v2119_v60, 0.0 }
 0x2fc   : > { %3382 = vmatmul.msk.f32.gmra.mxu2 %vm411_vm3, %v1462_v34 }
 0x2fd   : > { %3421 = vmatmul.msk.f32.gmra.mxu3 %vm411_vm3, %v1864_v63  ;;  %3460 = vmatmul.msk.f32.gmra.mxu0 %vm411_vm3, %v2266_v0 }
 0x2ff   : > { %v1394_v11 = vpop.f32.mrf.mxu1 }
 0x300   : > { %v1753_v3 = vpop.f32.mrf.mxu2  ;;  %v2121_v4 = vpop.f32.mrf.mxu3  ;;  %v1395_v30 = vadd.f32 %v4376_v49, %v1394_v11 }
 0x301   : > { %v1754_v5 = vadd.f32 %v4205_v24, %v1753_v3  ;;  %v2122_v38 = vadd.f32 %v4307_v18, %v2121_v4 }
 0x302   : > { %v1466_v36 = vmax.f32 %v1395_v30, 0.0 }
 0x303   : > { %v1865_v8 = vmax.f32 %v1754_v5, 0.0  ;;  %v2267_v10 = vmax.f32 %v2122_v38, 0.0 }
 0x304   : > { %3383 = vmatmul.msk.f32.gmra.mxu2 %vm411_vm3, %v1463_v7 }
 0x305   : > { %3422 = vmatmul.msk.f32.gmra.mxu3 %vm411_vm3, %v1865_v8  ;;  %3461 = vmatmul.msk.f32.gmra.mxu0 %vm411_vm3, %v2267_v10 }
 0x307   : > { %v1397_v21 = vpop.f32.mrf.mxu1 }
 0x308   : > { %v1756_v43 = vpop.f32.mrf.mxu2  ;;  %v2124_v13 = vpop.f32.mrf.mxu3  ;;  %v1398_v40 = vadd.f32 %v4376_v49, %v1397_v21 }
 0x309   : > { %v1757_v14 = vadd.f32 %v4205_v24, %v1756_v43  ;;  %v2125_v15 = vadd.f32 %v4307_v18, %v2124_v13 }
 0x30a   : > { %v1467_v46 = vmax.f32 %v1398_v40, 0.0 }
 0x30b   : > { %v1866_v19 = vmax.f32 %v1757_v14, 0.0  ;;  %v2268_v48 = vmax.f32 %v2125_v15, 0.0 }
 0x30c   : > { %3384 = vmatmul.msk.f32.gmra.mxu2 %vm411_vm3, %v1464_v16 }
 0x30d   : > { %3423 = vmatmul.msk.f32.gmra.mxu3 %vm411_vm3, %v1866_v19  ;;  %3462 = vmatmul.msk.f32.gmra.mxu0 %vm411_vm3, %v2268_v48 }
 0x30f   : > { %v1400_v33 = vpop.f32.mrf.mxu1 }
 0x310   : > { %v1759_v22 = vpop.f32.mrf.mxu2  ;;  %v2127_v23 = vpop.f32.mrf.mxu3  ;;  %v1401_v6 = vadd.f32 %v4376_v49, %v1400_v33 }
 0x311   : > { %v1760_v25 = vadd.f32 %v4205_v24, %v1759_v22  ;;  %v2128_v26 = vadd.f32 %v4307_v18, %v2127_v23 }
 0x312   : > { %v1468_v17 = vmax.f32 %v1401_v6, 0.0 }
 0x313   : > { %v1867_v27 = vmax.f32 %v1760_v25, 0.0  ;;  %v2269_v28 = vmax.f32 %v2128_v26, 0.0 }
 0x314   : > { %3385 = vmatmul.msk.f32.gmra.mxu2 %vm411_vm3, %v1465_v53 }
 0x315   : > { %3424 = vmatmul.msk.f32.gmra.mxu3 %vm411_vm3, %v1867_v27  ;;  %3463 = vmatmul.msk.f32.gmra.mxu0 %vm411_vm3, %v2269_v28 }
 0x317   : > { %v1403_v47 = vpop.f32.mrf.mxu1 }
 0x318   : > { %v1762_v31 = vpop.f32.mrf.mxu2  ;;  %v2130_v32 = vpop.f32.mrf.mxu3  ;;  %v1404_v59 = vadd.f32 %v4376_v49, %v1403_v47 }
 0x319   : > { %v1763_v58 = vadd.f32 %v4205_v24, %v1762_v31  ;;  %v2131_v35 = vadd.f32 %v4307_v18, %v2130_v32 }
 0x31a   : > { %v1469_v2 = vmax.f32 %v1404_v59, 0.0 }
 0x31b   : > { %v1868_v39 = vmax.f32 %v1763_v58, 0.0  ;;  %v2270_v37 = vmax.f32 %v2131_v35, 0.0 }
 0x31c   : > { %3386 = vmatmul.msk.f32.gmra.mxu2 %vm411_vm3, %v1466_v36 }
 0x31d   : > { %3425 = vmatmul.msk.f32.gmra.mxu3 %vm411_vm3, %v1868_v39  ;;  %3464 = vmatmul.msk.f32.gmra.mxu0 %vm411_vm3, %v2270_v37 }
 0x31f   : > { %v1406_v57 = vpop.f32.mrf.mxu1 }
 0x320   : > { %v1765_v41 = vpop.f32.mrf.mxu2  ;;  %v2133_v62 = vpop.f32.mrf.mxu3  ;;  %v1407_v5 = vadd.f32 %v4376_v49, %v1406_v57 }
 0x321   : > { %v1766_v42 = vadd.f32 %v4205_v24, %v1765_v41  ;;  %v2134_v44 = vadd.f32 %v4307_v18, %v2133_v62 }
 0x322   : > { %v1470_v12 = vmax.f32 %v1407_v5, 0.0 }
 0x323   : > { %v1869_v50 = vmax.f32 %v1766_v42, 0.0  ;;  %v2271_v45 = vmax.f32 %v2134_v44, 0.0 }
 0x324   : > { %3387 = vmatmul.msk.f32.gmra.mxu2 %vm411_vm3, %v1467_v46 }
 0x325   : > { %3426 = vmatmul.msk.f32.gmra.mxu3 %vm411_vm3, %v1869_v50  ;;  %3465 = vmatmul.msk.f32.gmra.mxu0 %vm411_vm3, %v2271_v45 }
 0x327   : > { %v1409_v38 = vpop.f32.mrf.mxu1 }
 0x328   : > { %v1768_v51 = vpop.f32.mrf.mxu2  ;;  %v2136_v1 = vpop.f32.mrf.mxu3  ;;  %v1410_v15 = vadd.f32 %v4376_v49, %v1409_v38 }
 0x329   : > { %v1769_v52 = vadd.f32 %v4205_v24, %v1768_v51  ;;  %v2137_v54 = vadd.f32 %v4307_v18, %v2136_v1  ;;  %v4417_v29 = vpop.f32.mrf.mxu0 }
 0x32a   : > { %v1471_v22 = vmax.f32 %v1410_v15, 0.0 }
 0x32b   : > { %v1870_v55 = vmax.f32 %v1769_v52, 0.0  ;;  %v2272_v56 = vmax.f32 %v2137_v54, 0.0 }
 0x32c   : > { %3388 = vmatmul.msk.f32.gmra.mxu2 %vm411_vm3, %v1468_v17 }
 0x32d   : > { %3427 = vmatmul.msk.f32.gmra.mxu3 %vm411_vm3, %v1870_v55  ;;  %3466 = vmatmul.msk.f32.gmra.mxu0 %vm411_vm3, %v2272_v56 }
 0x32f   : > { %v1412_v48 = vpop.f32.mrf.mxu1 }
 0x330   : > { %v1771_v60 = vpop.f32.mrf.mxu2  ;;  %v2139_v34 = vpop.f32.mrf.mxu3  ;;  %v1413_v53 = vadd.f32 %v4376_v49, %v1412_v48 }
 0x331   : > { %v1772_v61 = vadd.f32 %v4205_v24, %v1771_v60  ;;  %v2140_v63 = vadd.f32 %v4307_v18, %v2139_v34  ;;  %v4425_v0 = vpop.f32.mrf.mxu0 }
 0x332   : > { %v1472_v32 = vmax.f32 %v1413_v53, 0.0 }
 0x333   : > { %v1871_v3 = vmax.f32 %v1772_v61, 0.0  ;;  %v2273_v4 = vmax.f32 %v2140_v63, 0.0 }
 0x334   : > { %3389 = vmatmul.msk.f32.gmra.mxu2 %vm411_vm3, %v1469_v2 }
 0x335   : > { %3428 = vmatmul.msk.f32.gmra.mxu3 %vm411_vm3, %v1871_v3  ;;  %3467 = vmatmul.msk.f32.gmra.mxu0 %vm411_vm3, %v2273_v4 }
 0x337   : > { %v1415_v58 = vpop.f32.mrf.mxu1 }
 0x338   : > { %v1774_v7 = vpop.f32.mrf.mxu2  ;;  %v2142_v8 = vpop.f32.mrf.mxu3  ;;  %v1416_v39 = vadd.f32 %v4376_v49, %v1415_v58 }
 0x339   : > { %v1775_v10 = vadd.f32 %v4205_v24, %v1774_v7  ;;  %v2143_v11 = vadd.f32 %v4307_v18, %v2142_v8  ;;  %v4483_v8 = vld [vmem:[%s4954_s7 + $0x1] ss:$0 sm:$0xff] }
 0x33a   : > { %v4433_v43 = vpop.f32.mrf.mxu0  ;;  %v1473_v42 = vmax.f32 %v1416_v39, 0.0 }
 0x33b   : > { %v1872_v13 = vmax.f32 %v1775_v10, 0.0  ;;  %v2274_v14 = vmax.f32 %v2143_v11, 0.0 }
 0x33c   : > { %3390 = vmatmul.msk.f32.gmra.mxu2 %vm411_vm3, %v1470_v12 }
 0x33d   : > { %3429 = vmatmul.msk.f32.gmra.mxu3 %vm411_vm3, %v1872_v13  ;;  %3468 = vmatmul.msk.f32.gmra.mxu0 %vm411_vm3, %v2274_v14 }
 0x340   : > { %v1777_v16 = vpop.f32.mrf.mxu2  ;;  %v2145_v19 = vpop.f32.mrf.mxu3 }
 0x341   : > { %v1778_v20 = vadd.f32 %v4205_v24, %v1777_v16  ;;  %v2146_v21 = vadd.f32 %v4307_v18, %v2145_v19 }
 0x342   : > { %v4441_v23 = vpop.f32.mrf.mxu0 }
 0x343   : > { %v1873_v25 = vmax.f32 %v1778_v20, 0.0  ;;  %v2275_v26 = vmax.f32 %v2146_v21, 0.0 }
 0x344   : > { %3391 = vmatmul.msk.f32.gmra.mxu2 %vm411_vm3, %v1471_v22 }
 0x345   : > { %3430 = vmatmul.msk.f32.gmra.mxu3 %vm411_vm3, %v1873_v25  ;;  %3469 = vmatmul.msk.f32.gmra.mxu0 %vm411_vm3, %v2275_v26 }
 0x348   : > { %v1780_v27 = vpop.f32.mrf.mxu2  ;;  %v2148_v28 = vpop.f32.mrf.mxu3 }
 0x349   : > { %v1781_v30 = vadd.f32 %v4205_v24, %v1780_v27  ;;  %v2149_v31 = vadd.f32 %v4307_v18, %v2148_v28 }
 0x34a   : > { %v4449_v33 = vpop.f32.mrf.mxu0 }
 0x34b   : > { %v1874_v35 = vmax.f32 %v1781_v30, 0.0  ;;  %v2276_v36 = vmax.f32 %v2149_v31, 0.0 }
 0x34c   : > { %3392 = vmatmul.msk.f32.gmra.mxu2 %vm411_vm3, %v1472_v32 }
 0x34d   : > { %3431 = vmatmul.msk.f32.gmra.mxu3 %vm411_vm3, %v1874_v35  ;;  %3470 = vmatmul.msk.f32.gmra.mxu0 %vm411_vm3, %v2276_v36 }
 0x350   : > { %v1783_v37 = vpop.f32.mrf.mxu2  ;;  %v2151_v40 = vpop.f32.mrf.mxu3 }
 0x351   : > { %v1784_v41 = vadd.f32 %v4205_v24, %v1783_v37  ;;  %v2152_v62 = vadd.f32 %v4307_v18, %v2151_v40 }
 0x352   : > { %v4457_v44 = vpop.f32.mrf.mxu0 }
 0x353   : > { %v1875_v46 = vmax.f32 %v1784_v41, 0.0  ;;  %v2277_v47 = vmax.f32 %v2152_v62, 0.0 }
 0x354   : > { %3393 = vmatmul.msk.f32.gmra.mxu2 %vm411_vm3, %v1473_v42 }
 0x355   : > { %3432 = vmatmul.msk.f32.gmra.mxu3 %vm411_vm3, %v1875_v46  ;;  %3471 = vmatmul.msk.f32.gmra.mxu0 %vm411_vm3, %v2277_v47 }
 0x358   : > { %v1786_v50 = vpop.f32.mrf.mxu2  ;;  %v2154_v45 = vpop.f32.mrf.mxu3 }
 0x359   : > { %v1787_v49 = vadd.f32 %v4205_v24, %v1786_v50  ;;  %v2155_v6 = vadd.f32 %v4307_v18, %v2154_v45 }
 0x35a   : > { %v4464_v51 = vpop.f32.mrf.mxu0 }
 0x35b   : > { %v1876_v1 = vmax.f32 %v1787_v49, 0.0  ;;  %v2278_v52 = vmax.f32 %v2155_v6, 0.0 }
 0x35d   : > { %3433 = vmatmul.msk.f32.gmra.mxu3 %vm411_vm3, %v1876_v1  ;;  %3472 = vmatmul.msk.f32.gmra.mxu0 %vm411_vm3, %v2278_v52  ;;  %v4512_v52 = vld [vmem:[%s4954_s7 + $0x6] ss:$0 sm:$0xff] }
 0x360   : > { %v1789_v54 = vpop.f32.mrf.mxu2  ;;  %v2157_v17 = vpop.f32.mrf.mxu3 }
 0x361   : > { %v1790_v55 = vadd.f32 %v4205_v24, %v1789_v54  ;;  %v2158_v56 = vadd.f32 %v4307_v18, %v2157_v17 }
 0x362   : > { %v4470_v57 = vpop.f32.mrf.mxu0 }
 0x363   : > { %v1877_v59 = vmax.f32 %v1790_v55, 0.0  ;;  %v2279_v60 = vmax.f32 %v2158_v56, 0.0 }
 0x365   : > { %3434 = vmatmul.msk.f32.gmra.mxu3 %vm411_vm3, %v1877_v59  ;;  %3473 = vmatmul.msk.f32.gmra.mxu0 %vm411_vm3, %v2279_v60 }
 0x368   : > { %v1792_v34 = vpop.f32.mrf.mxu2  ;;  %v2160_v61 = vpop.f32.mrf.mxu3 }
 0x369   : > { %v1793_v63 = vadd.f32 %v4205_v24, %v1792_v34  ;;  %v2161_v2 = vadd.f32 %v4307_v18, %v2160_v61 }
 0x36a   : > { %v4476_v3 = vpop.f32.mrf.mxu0 }
 0x36b   : > { %v1878_v4 = vmax.f32 %v1793_v63, 0.0  ;;  %v2280_v5 = vmax.f32 %v2161_v2, 0.0 }
 0x36d   : > { %3435 = vmatmul.msk.f32.gmra.mxu3 %vm411_vm3, %v1878_v4  ;;  %3474 = vmatmul.msk.f32.gmra.mxu0 %vm411_vm3, %v2280_v5 }
 0x370   : > { %v1795_v38 = vpop.f32.mrf.mxu2  ;;  %v2163_v7 = vpop.f32.mrf.mxu3 }
 0x371   : > { %v1796_v10 = vadd.f32 %v4483_v8, %v1795_v38  ;;  %v2164_v24 = vadd.f32 %v4307_v18, %v2163_v7 }
 0x372   : > { %v4487_v11 = vpop.f32.mrf.mxu0 }
 0x373   : > { %v1879_v12 = vmax.f32 %v1796_v10, 0.0  ;;  %v2281_v13 = vmax.f32 %v2164_v24, 0.0 }
 0x375   : > { %3436 = vmatmul.msk.f32.gmra.mxu3 %vm411_vm3, %v1879_v12  ;;  %3475 = vmatmul.msk.f32.gmra.mxu0 %vm411_vm3, %v2281_v13 }
 0x378   : > { %v1798_v14 = vpop.f32.mrf.mxu2  ;;  %v2166_v15 = vpop.f32.mrf.mxu3 }
 0x379   : > { %v1799_v16 = vadd.f32 %v4483_v8, %v1798_v14  ;;  %v2167_v19 = vadd.f32 %v4307_v18, %v2166_v15 }
 0x37a   : > { %v2529_v48 = vpop.f32.mrf.mxu0 }
 0x37b   : > { %v1880_v20 = vmax.f32 %v1799_v16, 0.0  ;;  %v2282_v21 = vmax.f32 %v2167_v19, 0.0  ;;  %v4536_v15 = vadd.f32 %v4512_v52, %v2529_v48  ;;  %v4548_v48 = vadd.f32 %v4512_v52, %v4476_v3 }
 0x37d   : > { %3437 = vmatmul.msk.f32.gmra.mxu3 %vm411_vm3, %v1880_v20  ;;  %3476 = vmatmul.msk.f32.gmra.mxu0 %vm411_vm3, %v2282_v21  ;;  %v4541_v20 = vadd.f32 %v4512_v52, %v4487_v11  ;;  %vm2677_vm9 = vcmp.gt.f32.partialorder %v4536_v15, 0.0  ;;  %vm2675_vm11 = vcmp.gt.f32.partialorder %v4548_v48, 0.0 }
 0x37f   : > { %vm2676_vm10 = vcmp.gt.f32.partialorder %v4541_v20, 0.0 }
 0x380   : > { %v1801_v22 = vpop.f32.mrf.mxu2  ;;  %v2169_v25 = vpop.f32.mrf.mxu3 }
 0x381   : > { %v1802_v26 = vadd.f32 %v4483_v8, %v1801_v22  ;;  %v2170_v53 = vadd.f32 %v4307_v18, %v2169_v25 }
 0x382   : > { %v2532_v27 = vpop.f32.mrf.mxu0 }
 0x383   : > { %v1881_v28 = vmax.f32 %v1802_v26, 0.0  ;;  %v2283_v30 = vmax.f32 %v2170_v53, 0.0  ;;  %v4530_v24 = vadd.f32 %v4512_v52, %v2532_v27 }
 0x385   : > { %3438 = vmatmul.msk.f32.gmra.mxu3 %vm411_vm3, %v1881_v28  ;;  %3477 = vmatmul.msk.f32.gmra.mxu0 %vm411_vm3, %v2283_v30  ;;  %v2790_v21 = vmin.f32 %v4530_v24, 0.0  ;;  %v2789_v28 = vmin.f32 %v4536_v15, 0.0  ;;  %vm2678_vm8 = vcmp.gt.f32.partialorder %v4530_v24, 0.0 }
 0x388   : > { %v1804_v31 = vpop.f32.mrf.mxu2  ;;  %v2172_v32 = vpop.f32.mrf.mxu3 }
 0x389   : > { %v1805_v58 = vadd.f32 %v4483_v8, %v1804_v31  ;;  %v2173_v35 = vadd.f32 %v4307_v18, %v2172_v32  ;;  %v4555_v31 = vadd.f32 %v4512_v52, %v4470_v57 }
 0x38a   : > { %v2535_v36 = vpop.f32.mrf.mxu0 }
 0x38b   : > { %v1882_v39 = vmax.f32 %v1805_v58, 0.0  ;;  %v2284_v37 = vmax.f32 %v2173_v35, 0.0  ;;  %v4526_v4 = vadd.f32 %v4512_v52, %v2535_v36  ;;  %v2788_v35 = vmin.f32 %v4541_v20, 0.0 }
 0x38c   : > { %v2857_v36 = vmul.f32 1.442695, %v2790_v21  ;;  %vm2674_vm12 = vcmp.gt.f32.partialorder %v4555_v31, 0.0 }
 0x38d   : > { %3439 = vmatmul.msk.f32.gmra.mxu3 %vm411_vm3, %v1882_v39  ;;  %3478 = vmatmul.msk.f32.gmra.mxu0 %vm411_vm3, %v2284_v37  ;;  %v2791_v16 = vmin.f32 %v4526_v4, 0.0  ;;  %v4560_v39 = vadd.f32 %v4512_v52, %v4464_v51  ;;  %v2787_v37 = vmin.f32 %v4548_v48, 0.0  ;;  %v2853_v51 = vmul.f32 1.442695, %v2788_v35 }
 0x38e   : > { %vm2679_vm7 = vcmp.gt.f32.partialorder %v4526_v4, 0.0 }
 0x38f   : > { %v2859_v30 = vmul.f32 1.442695, %v2791_v16  ;;  %v2734_v16 = vadd.f32 1.0, %v4530_v24  ;;  %vm2673_vm13 = vcmp.gt.f32.partialorder %v4560_v39, 0.0 }
 0x390   : > { %v1807_v40 = vpop.f32.mrf.mxu2  ;;  %v2175_v41 = vpop.f32.mrf.mxu3 }
 0x391   : > { %v1808_v62 = vadd.f32 %v4483_v8, %v1807_v40  ;;  %v2176_v42 = vadd.f32 %v4307_v18, %v2175_v41  ;;  %v2855_v40 = vmul.f32 1.442695, %v2789_v28 }
 0x392   : > { %v2538_v46 = vpop.f32.mrf.mxu0 }
 0x393   : > { %v1883_v47 = vmax.f32 %v1808_v62, 0.0  ;;  %v2285_v50 = vmax.f32 %v2176_v42, 0.0  ;;  %v4520_v59 = vadd.f32 %v4512_v52, %v2538_v46  ;;  %v4567_v62 = vadd.f32 %v4512_v52, %v4457_v44 }
 0x394   : > { %v2786_v42 = vmin.f32 %v4555_v31, 0.0 }
 0x395   : > { %3440 = vmatmul.msk.f32.gmra.mxu3 %vm411_vm3, %v1883_v47  ;;  %3479 = vmatmul.msk.f32.gmra.mxu0 %vm411_vm3, %v2285_v50  ;;  %v2792_v12 = vmin.f32 %v4520_v59, 0.0  ;;  %vm2680_vm6 = vcmp.gt.f32.partialorder %v4520_v59, 0.0  ;;  %vm2672_vm14 = vcmp.gt.f32.partialorder %v4567_v62, 0.0 }
 0x397   : > { %v2861_v22 = vmul.f32 1.442695, %v2792_v12 }
 0x398   : > { %v1810_v45 = vpop.f32.mrf.mxu2  ;;  %v2178_v49 = vpop.f32.mrf.mxu3 }
 0x399   : > { %v1811_v6 = vadd.f32 %v4483_v8, %v1810_v45  ;;  %v2179_v1 = vadd.f32 %v4307_v18, %v2178_v49  ;;  %v4573_v49 = vadd.f32 %v4512_v52, %v4449_v33 }
 0x39a   : > { %v2541_v54 = vpop.f32.mrf.mxu0 }
 0x39b   : > { %v1884_v17 = vmax.f32 %v1811_v6, 0.0  ;;  %v2286_v55 = vmax.f32 %v2179_v1, 0.0  ;;  %v4515_v56 = vadd.f32 %v4512_v52, %v2541_v54  ;;  %v2785_v54 = vmin.f32 %v4560_v39, 0.0 }
 0x39c   : > { %v2783_v12 = vmin.f32 %v4573_v49, 0.0  ;;  %vm2671_vm15 = vcmp.gt.f32.partialorder %v4573_v49, 0.0 }
 0x39d   : > { %3441 = vmatmul.msk.f32.gmra.mxu3 %vm411_vm3, %v1884_v17  ;;  %3480 = vmatmul.msk.f32.gmra.mxu0 %vm411_vm3, %v2286_v55  ;;  %v2793_v60 = vmin.f32 %v4515_v56, 0.0  ;;  %v2737_v45 = vadd.f32 1.0, %v4515_v56  ;;  %vm2681_vm5 = vcmp.gt.f32.partialorder %v4515_v56, 0.0  ;;  %v2851_v17 = vmul.f32 1.442695, %v2787_v37 }
 0x39e   : > { %v2784_v56 = vmin.f32 %v4567_v62, 0.0 }
 0x39f   : > { %v2863_v13 = vmul.f32 1.442695, %v2793_v60 }
 0x3a0   : > { %v1813_v34 = vpop.f32.mrf.mxu2  ;;  %v2181_v61 = vpop.f32.mrf.mxu3 }
 0x3a1   : > { %v1814_v63 = vadd.f32 %v4483_v8, %v1813_v34  ;;  %v2182_v2 = vadd.f32 %v4307_v18, %v2181_v61  ;;  %3596 = vpow2.f32 %v2863_v13  ;;  %v4583_v34 = vadd.f32 %v4512_v52, %v4441_v23 }
 0x3a2   : > { %v2544_v5 = vpop.f32.mrf.mxu0  ;;  %v2847_v13 = vmul.f32 1.442695, %v2785_v54 }
 0x3a3   : > { %v1885_v38 = vmax.f32 %v1814_v63, 0.0  ;;  %v2287_v7 = vmax.f32 %v2182_v2, 0.0  ;;  %v2545_v10 = vadd.f32 %v4512_v52, %v2544_v5  ;;  %v2736_v63 = vadd.f32 1.0, %v4520_v59 }
 0x3a4   : > { %v2849_v5 = vmul.f32 1.442695, %v2786_v42  ;;  %v4599_v59 = vadd.f32 %v4512_v52, %v4417_v29  ;;  %v2782_v21 = vmin.f32 %v4583_v34, 0.0  ;;  %vm2670_vm0 = vcmp.gt.f32.partialorder %v4583_v34, 0.0 }
 0x3a5   : > { %v2794_v14 = vmin.f32 %v2545_v10, 0.0  ;;  %3442 = vmatmul.msk.f32.gmra.mxu3 %vm411_vm3, %v1885_v38  ;;  %3481 = vmatmul.msk.f32.gmra.mxu0 %vm411_vm3, %v2287_v7  ;;  %v2738_v57 = vadd.f32 1.0, %v2545_v10  ;;  %vm2682_vm4 = vcmp.gt.f32.partialorder %v2545_v10, 0.0  ;;  %v4590_v38 = vadd.f32 %v4512_v52, %v4433_v43 }
 0x3a6   : > { %v2735_v7 = vadd.f32 1.0, %v4526_v4  ;;  %v4603_v43 = vadd.f32 %v4512_v52, %v4425_v0  ;;  %v2733_v0 = vadd.f32 1.0, %v4536_v15  ;;  %v2731_v15 = vadd.f32 1.0, %v4548_v48 }
 0x3a7   : > { %v2865_v19 = vmul.f32 1.442695, %v2794_v14  ;;  %v3597_v3 = vpop.eup %3596  ;;  %v2781_v28 = vmin.f32 %v4590_v38, 0.0  ;;  %v2779_v42 = vmin.f32 %v4599_v59, 0.0  ;;  %vm2669_vm2 = vcmp.gt.f32.partialorder %v4590_v38, 0.0 }
 0x3a8   : > { %v1816_v25 = vpop.f32.mrf.mxu2  ;;  %v2184_v26 = vpop.f32.mrf.mxu3  ;;  %v2961_v60 = vsel %vm2681_vm5, %v2737_v45, %v3597_v3  ;;  %v2780_v37 = vmin.f32 %v4603_v43, 0.0  ;;  %vm2667_vm5 = vcmp.gt.f32.partialorder %v4599_v59, 0.0 }
 0x3a9   : > { %3598 = vpow2.f32 %v2865_v19  ;;  %v1817_v53 = vadd.f32 %v4483_v8, %v1816_v25  ;;  %v2185_v27 = vadd.f32 %v4307_v18, %v2184_v26  ;;  %v2835_v48 = vmul.f32 1.442695, %v2779_v42 }
 0x3aa   : > { %v4551_v11 = vpop.f32.mrf.mxu0  ;;  %3600 = vpow2.f32 %v2861_v22  ;;  %v2845_v22 = vmul.f32 1.442695, %v2784_v56 }
 0x3ab   : > { %v1886_v32 = vmax.f32 %v1817_v53, 0.0  ;;  %v2288_v58 = vmax.f32 %v2185_v27, 0.0  ;;  %3602 = vpow2.f32 %v2859_v30  ;;  %v2843_v30 = vmul.f32 1.442695, %v2783_v12 }
 0x3ac   : > { %3604 = vpow2.f32 %v2857_v36  ;;  %v2732_v36 = vadd.f32 1.0, %v4541_v20  ;;  %v2837_v20 = vmul.f32 1.442695, %v2780_v37 }
 0x3ad   : > { %3443 = vmatmul.msk.f32.gmra.mxu3 %vm411_vm3, %v1886_v32  ;;  %3482 = vmatmul.msk.f32.gmra.mxu0 %vm411_vm3, %v2288_v58  ;;  %3606 = vpow2.f32 %v2855_v40  ;;  %v2841_v40 = vmul.f32 1.442695, %v2782_v21 }
 0x3ae   : > { %3608 = vpow2.f32 %v2853_v51  ;;  %v2839_v51 = vmul.f32 1.442695, %v2781_v28 }
 0x3af   : > { %v3599_v41 = vpop.eup %3598  ;;  %3610 = vpow2.f32 %v2851_v17  ;;  %v2729_v17 = vadd.f32 1.0, %v4560_v39 }
 0x3b0   : > { %v1819_v46 = vpop.f32.mrf.mxu2  ;;  %v2187_v47 = vpop.f32.mrf.mxu3  ;;  %v2962_v50 = vsel %vm2682_vm4, %v2738_v57, %v3599_v41  ;;  %3612 = vpow2.f32 %v2849_v5  ;;  %v2727_v5 = vadd.f32 1.0, %v4573_v49  ;;  %v2725_v49 = vadd.f32 1.0, %v4590_v38 }
 0x3b1   : > { %v1820_v6 = vadd.f32 %v4483_v8, %v1819_v46  ;;  %v2188_v1 = vadd.f32 %v4307_v18, %v2187_v47  ;;  %3010 = vmatpush.msra.mxu1 %v2962_v50  ;;  %v3601_v44 = vpop.eup %3600  ;;  %3614 = vpow2.f32 %v2847_v13  ;;  %v2730_v47 = vadd.f32 1.0, %v4555_v31 }
 0x3b2   : > { %v4579_v55 = vpop.f32.mrf.mxu0  ;;  %v3603_v2 = vpop.eup %3602  ;;  %v2960_v23 = vsel %vm2680_vm6, %v2736_v63, %v3601_v44  ;;  %3616 = vpow2.f32 %v2845_v22  ;;  %v2728_v31 = vadd.f32 1.0, %v4567_v62  ;;  %vm2668_vm4 = vcmp.gt.f32.partialorder %v4603_v43, 0.0 }
 0x3b3   : > { %v1887_v33 = vmax.f32 %v1820_v6, 0.0  ;;  %v2289_v61 = vmax.f32 %v2188_v1, 0.0  ;;  %3011 = vmatpush.msra.mxu1 %v2961_v60  ;;  %v3605_v10 = vpop.eup %3604  ;;  %v2959_v14 = vsel %vm2679_vm7, %v2735_v7, %v3603_v2  ;;  %3618 = vpow2.f32 %v2843_v30 }
 0x3b4   : > { %v3607_v19 = vpop.eup %3606  ;;  %v2958_v53 = vsel %vm2678_vm8, %v2734_v16, %v3605_v10  ;;  %3620 = vpow2.f32 %v2841_v40  ;;  %v2726_v7 = vadd.f32 1.0, %v4583_v34 }
 0x3b5   : > { %3444 = vmatmul.msk.f32.gmra.mxu3 %vm411_vm3, %v1887_v33  ;;  %3483 = vmatmul.msk.f32.gmra.mxu0 %vm411_vm3, %v2289_v61  ;;  %v3609_v27 = vpop.eup %3608  ;;  %v2957_v24 = vsel %vm2677_vm9, %v2733_v0, %v3607_v19  ;;  %3622 = vpow2.f32 %v2839_v51  ;;  %v2723_v0 = vadd.f32 1.0, %v4599_v59 }
 0x3b6   : > { %3012 = vmatpush.msra.mxu1 %v2960_v23  ;;  %v3611_v3 = vpop.eup %3610  ;;  %v2956_v57 = vsel %vm2676_vm10, %v2732_v36, %v3609_v27  ;;  %3624 = vpow2.f32 %v2837_v20 }
 0x3b7   : > { %v3613_v41 = vpop.eup %3612  ;;  %v2955_v46 = vsel %vm2675_vm11, %v2731_v15, %v3611_v3  ;;  %3626 = vpow2.f32 %v2835_v48 }
 0x3b8   : > { %3013 = vmatpush.msra.mxu1 %v2959_v14  ;;  %v1822_v25 = vpop.f32.mrf.mxu2  ;;  %v2190_v26 = vpop.f32.mrf.mxu3  ;;  %v2954_v54 = vsel %vm2674_vm12, %v2730_v47, %v3613_v41  ;;  %v4643_v14 = vld [vmem:[%s4954_s7 + $0x2] ss:$0 sm:$0xff] }
 0x3b9   : > { %v1823_v29 = vadd.f32 %v4483_v8, %v1822_v25  ;;  %v2191_v4 = vadd.f32 %v4307_v18, %v2190_v26  ;;  %v3615_v50 = vpop.eup %3614 }
 0x3ba   : > { %3014 = vmatpush.msra.mxu1 %v2958_v53  ;;  %v4612_v32 = vpop.f32.mrf.mxu0  ;;  %v3617_v60 = vpop.eup %3616  ;;  %v2953_v2 = vsel %vm2673_vm13, %v2729_v17, %v3615_v50 }
 0x3bb   : > { %v1888_v58 = vmax.f32 %v1823_v29, 0.0  ;;  %v2290_v35 = vmax.f32 %v2191_v4, 0.0  ;;  %v3619_v56 = vpop.eup %3618  ;;  %v2724_v29 = vadd.f32 1.0, %v4603_v43 }
 0x3bc   : > { %3015 = vmatpush.msra.mxu1 %v2957_v24  ;;  %v3621_v23 = vpop.eup %3620  ;;  %v2951_v39 = vsel %vm2671_vm15, %v2727_v5, %v3619_v56 }
 0x3bd   : > { %3445 = vmatmul.msk.f32.gmra.mxu3 %vm411_vm3, %v1888_v58  ;;  %3484 = vmatmul.msk.f32.gmra.mxu0 %vm411_vm3, %v2290_v35  ;;  %v3623_v10 = vpop.eup %3622  ;;  %v2950_v19 = vsel %vm2670_vm0, %v2726_v7, %v3621_v23 }
 0x3be   : > { %3016 = vmatpush.msra.mxu1 %v2956_v57  ;;  %v3625_v21 = vpop.eup %3624  ;;  %v2949_v26 = vsel %vm2669_vm2, %v2725_v49, %v3623_v10 }
 0x3bf   : > { %v3627_v4 = vpop.eup %3626  ;;  %v2948_v53 = vsel %vm2668_vm4, %v2724_v29, %v3625_v21 }
 0x3c0   : > { %3017 = vmatpush.msra.mxu1 %v2955_v46  ;;  %v1825_v45 = vpop.f32.mrf.mxu2  ;;  %v2193_v6 = vpop.f32.mrf.mxu3  ;;  %v2947_v38 = vsel %vm2667_vm5, %v2723_v0, %v3627_v4 }
 0x3c1   : > { %v1826_v1 = vadd.f32 %v4483_v8, %v1825_v45  ;;  %v2194_v44 = vadd.f32 %v4307_v18, %v2193_v6  ;;  %v2952_v18 = vsel %vm2672_vm14, %v2728_v31, %v3617_v60 }
 0x3c2   : > { %3018 = vmatpush.msra.mxu1 %v2954_v54  ;;  %v4628_v33 = vpop.f32.mrf.mxu0 }
 0x3c3   : > { %v1889_v61 = vmax.f32 %v1826_v1, 0.0  ;;  %v2291_v63 = vmax.f32 %v2194_v44, 0.0 }
 0x3c4   : > { %3019 = vmatpush.msra.mxu1 %v2953_v2 }
 0x3c5   : > { %3446 = vmatmul.msk.f32.gmra.mxu3 %vm411_vm3, %v1889_v61  ;;  %3485 = vmatmul.msk.f32.gmra.mxu0 %vm411_vm3, %v2291_v63 }
 0x3c6   : > { %3020 = vmatpush.msra.mxu1 %v2952_v18 }
 0x3c8   : > { %3021 = vmatpush.msra.mxu1 %v2951_v39  ;;  %v1828_v12 = vpop.f32.mrf.mxu2  ;;  %v2196_v13 = vpop.f32.mrf.mxu3 }
 0x3c9   : > { %v1829_v62 = vadd.f32 %v4483_v8, %v1828_v12  ;;  %v2197_v16 = vadd.f32 %v4643_v14, %v2196_v13 }
 0x3ca   : > { %3022 = vmatpush.msra.mxu1 %v2950_v19  ;;  %v4647_v22 = vpop.f32.mrf.mxu0 }
 0x3cb   : > { %v1890_v25 = vmax.f32 %v1829_v62, 0.0  ;;  %v2292_v34 = vmax.f32 %v2197_v16, 0.0 }
 0x3cc   : > { %3023 = vmatpush.msra.mxu1 %v2949_v26 }
 0x3cd   : > { %3447 = vmatmul.msk.f32.gmra.mxu3 %vm411_vm3, %v1890_v25  ;;  %3486 = vmatmul.msk.f32.gmra.mxu0 %vm411_vm3, %v2292_v34 }
 0x3ce   : > { %3024 = vmatpush.msra.mxu1 %v2948_v53 }
 0x3d0   : > { %3025 = vmatpush.msra.mxu1 %v2947_v38  ;;  %v1831_v27 = vpop.f32.mrf.mxu2  ;;  %v2199_v28 = vpop.f32.mrf.mxu3 }
 0x3d1   : > { %v1832_v30 = vadd.f32 %v4483_v8, %v1831_v27  ;;  %v2200_v58 = vadd.f32 %v4643_v14, %v2199_v28 }
 0x3d2   : > { %v4658_v35 = vpop.f32.mrf.mxu0 }
 0x3d3   : > { %v1891_v43 = vmax.f32 %v1832_v30, 0.0  ;;  %v2293_v24 = vmax.f32 %v2200_v58, 0.0 }
 0x3d5   : > { %3448 = vmatmul.msk.f32.gmra.mxu3 %vm411_vm3, %v1891_v43  ;;  %3487 = vmatmul.msk.f32.gmra.mxu0 %vm411_vm3, %v2293_v24 }
 0x3d8   : > { %v1834_v36 = vpop.f32.mrf.mxu2  ;;  %v2202_v3 = vpop.f32.mrf.mxu3 }
 0x3d9   : > { %v1835_v59 = vadd.f32 %v4483_v8, %v1834_v36  ;;  %v2203_v37 = vadd.f32 %v4643_v14, %v2202_v3 }
 0x3da   : > { %v4664_v40 = vpop.f32.mrf.mxu0 }
 0x3db   : > { %v1892_v57 = vmax.f32 %v1835_v59, 0.0  ;;  %v2294_v15 = vmax.f32 %v2203_v37, 0.0 }
 0x3dd   : > { %3449 = vmatmul.msk.f32.gmra.mxu3 %vm411_vm3, %v1892_v57  ;;  %3488 = vmatmul.msk.f32.gmra.mxu0 %vm411_vm3, %v2294_v15 }
 0x3e0   : > { %v2205_v41 = vpop.f32.mrf.mxu3 }
 0x3e1   : > { %v2206_v42 = vadd.f32 %v4643_v14, %v2205_v41 }
 0x3e2   : > { %v4669_v51 = vpop.f32.mrf.mxu0 }
 0x3e3   : > { %v2295_v46 = vmax.f32 %v2206_v42, 0.0 }
 0x3e5   : > { %3489 = vmatmul.msk.f32.gmra.mxu0 %vm411_vm3, %v2295_v46  ;;  %v4718_v46 = vadd.f32 %v4512_v52, %v4669_v51  ;;  %v4731_v51 = vadd.f32 %v4512_v52, %v4658_v35 }
 0x3e7   : > { %vm2690_vm14 = vcmp.gt.f32.partialorder %v4718_v46, 0.0  ;;  %vm2688_vm0 = vcmp.gt.f32.partialorder %v4731_v51, 0.0 }
 0x3e8   : > { %v2208_v47 = vpop.f32.mrf.mxu3 }
 0x3e9   : > { %v2209_v8 = vadd.f32 %v4643_v14, %v2208_v47 }
 0x3ea   : > { %v2571_v50 = vpop.f32.mrf.mxu0 }
 0x3eb   : > { %v2296_v20 = vmax.f32 %v2209_v8, 0.0  ;;  %v4712_v37 = vadd.f32 %v4512_v52, %v2571_v50 }
 0x3ed   : > { %3490 = vmatmul.msk.f32.gmra.mxu0 %vm411_vm3, %v2296_v20  ;;  %vm2691_vm13 = vcmp.gt.f32.partialorder %v4712_v37, 0.0 }
 0x3f0   : > { %v2211_v45 = vpop.f32.mrf.mxu3 }
 0x3f1   : > { %v2212_v6 = vadd.f32 %v4643_v14, %v2211_v45  ;;  %v4725_v45 = vadd.f32 %v4512_v52, %v4664_v40  ;;  %v4736_v40 = vadd.f32 %v4512_v52, %v4647_v22  ;;  %v2800_v22 = vmin.f32 %v4731_v51, 0.0 }
 0x3f2   : > { %v2574_v1 = vpop.f32.mrf.mxu0 }
 0x3f3   : > { %v2297_v44 = vmax.f32 %v2212_v6, 0.0  ;;  %v4708_v24 = vadd.f32 %v4512_v52, %v2574_v1  ;;  %v2803_v6 = vmin.f32 %v4712_v37, 0.0  ;;  %vm2689_vm15 = vcmp.gt.f32.partialorder %v4725_v45, 0.0 }
 0x3f4   : > { %vm2687_vm2 = vcmp.gt.f32.partialorder %v4736_v40, 0.0 }
 0x3f5   : > { %3491 = vmatmul.msk.f32.gmra.mxu0 %vm411_vm3, %v2297_v44  ;;  %v2804_v8 = vmin.f32 %v4708_v24, 0.0  ;;  %v2883_v35 = vmul.f32 1.442695, %v2803_v6  ;;  %vm2692_vm12 = vcmp.gt.f32.partialorder %v4708_v24, 0.0 }
 0x3f8   : > { %v2214_v54 = vpop.f32.mrf.mxu3 }
 0x3f9   : > { %v2215_v17 = vadd.f32 %v4643_v14, %v2214_v54 }
 0x3fa   : > { %v2577_v60 = vpop.f32.mrf.mxu0 }
 0x3fb   : > { %v2298_v48 = vmax.f32 %v2215_v17, 0.0  ;;  %v4703_v30 = vadd.f32 %v4512_v52, %v2577_v60  ;;  %v2802_v60 = vmin.f32 %v4718_v46, 0.0 }
 0x3fd   : > { %3492 = vmatmul.msk.f32.gmra.mxu0 %vm411_vm3, %v2298_v48  ;;  %v2805_v15 = vmin.f32 %v4703_v30, 0.0  ;;  %v2885_v48 = vmul.f32 1.442695, %v2804_v8  ;;  %vm2693_vm11 = vcmp.gt.f32.partialorder %v4703_v30, 0.0  ;;  %v2747_v8 = vadd.f32 1.0, %v4712_v37 }
 0x3ff   : > { %v2887_v1 = vmul.f32 1.442695, %v2805_v15 }
 0x400   : > { %v2217_v61 = vpop.f32.mrf.mxu3 }
 0x401   : > { %v2218_v63 = vadd.f32 %v4643_v14, %v2217_v61  ;;  %v2801_v61 = vmin.f32 %v4725_v45, 0.0 }
 0x402   : > { %v2580_v2 = vpop.f32.mrf.mxu0 }
 0x403   : > { %v2299_v31 = vmax.f32 %v2218_v63, 0.0  ;;  %v4698_v53 = vadd.f32 %v4512_v52, %v2580_v2 }
 0x405   : > { %3493 = vmatmul.msk.f32.gmra.mxu0 %vm411_vm3, %v2299_v31  ;;  %v2806_v36 = vmin.f32 %v4698_v53, 0.0  ;;  %vm2694_vm10 = vcmp.gt.f32.partialorder %v4698_v53, 0.0 }
 0x407   : > { %v2889_v20 = vmul.f32 1.442695, %v2806_v36 }
 0x408   : > { %v2220_v56 = vpop.f32.mrf.mxu3 }
 0x409   : > { %v2221_v18 = vadd.f32 %v4643_v14, %v2220_v56 }
 0x40a   : > { %v2583_v5 = vpop.f32.mrf.mxu0 }
 0x40b   : > { %v2300_v23 = vmax.f32 %v2221_v18, 0.0  ;;  %v4694_v26 = vadd.f32 %v4512_v52, %v2583_v5  ;;  %v4744_v5 = vadd.f32 %v4512_v52, %v4628_v33 }
 0x40d   : > { %3494 = vmatmul.msk.f32.gmra.mxu0 %vm411_vm3, %v2300_v23  ;;  %v2807_v58 = vmin.f32 %v4694_v26, 0.0  ;;  %vm2695_vm9 = vcmp.gt.f32.partialorder %v4694_v26, 0.0  ;;  %vm2686_vm4 = vcmp.gt.f32.partialorder %v4744_v5, 0.0 }
 0x40f   : > { %v2891_v41 = vmul.f32 1.442695, %v2807_v58 }
 0x410   : > { %v2223_v39 = vpop.f32.mrf.mxu3 }
 0x411   : > { %v2224_v7 = vadd.f32 %v4643_v14, %v2223_v39 }
 0x412   : > { %v2586_v10 = vpop.f32.mrf.mxu0 }
 0x413   : > { %v2301_v12 = vmax.f32 %v2224_v7, 0.0  ;;  %v4690_v21 = vadd.f32 %v4512_v52, %v2586_v10 }
 0x415   : > { %3495 = vmatmul.msk.f32.gmra.mxu0 %vm411_vm3, %v2301_v12  ;;  %v2808_v0 = vmin.f32 %v4690_v21, 0.0  ;;  %v2752_v7 = vadd.f32 1.0, %v4690_v21  ;;  %v2881_v12 = vmul.f32 1.442695, %v2802_v60  ;;  %vm2696_vm8 = vcmp.gt.f32.partialorder %v4690_v21, 0.0 }
 0x416   : > { %v4761_v21 = vadd.f32 %v4512_v52, %v4579_v55  ;;  %v2745_v60 = vadd.f32 1.0, %v4725_v45 }
 0x417   : > { %v2893_v3 = vmul.f32 1.442695, %v2808_v0  ;;  %v2877_v0 = vmul.f32 1.442695, %v2800_v22 }
 0x418   : > { %v2226_v13 = vpop.f32.mrf.mxu3 }
 0x419   : > { %v2227_v62 = vadd.f32 %v4643_v14, %v2226_v13 }
 0x41a   : > { %v2589_v16 = vpop.f32.mrf.mxu0 }
 0x41b   : > { %v2302_v19 = vmax.f32 %v2227_v62, 0.0  ;;  %v4686_v49 = vadd.f32 %v4512_v52, %v2589_v16  ;;  %v4753_v62 = vadd.f32 %v4512_v52, %v4612_v32  ;;  %v2751_v16 = vadd.f32 1.0, %v4694_v26 }
 0x41c   : > { %v2750_v32 = vadd.f32 1.0, %v4698_v53  ;;  %v2796_v53 = vmin.f32 %v4761_v21, 0.0 }
 0x41d   : > { %3496 = vmatmul.msk.f32.gmra.mxu0 %vm411_vm3, %v2302_v19  ;;  %v2809_v25 = vmin.f32 %v4686_v49, 0.0  ;;  %v2753_v31 = vadd.f32 1.0, %v4686_v49  ;;  %vm2697_vm7 = vcmp.gt.f32.partialorder %v4686_v49, 0.0  ;;  %v2799_v49 = vmin.f32 %v4736_v40, 0.0 }
 0x41e   : > { %v2797_v26 = vmin.f32 %v4753_v62, 0.0  ;;  %vm2685_vm5 = vcmp.gt.f32.partialorder %v4753_v62, 0.0 }
 0x41f   : > { %v2895_v28 = vmul.f32 1.442695, %v2809_v25  ;;  %v2879_v25 = vmul.f32 1.442695, %v2801_v61 }
 0x420   : > { %v2229_v34 = vpop.f32.mrf.mxu3 }
 0x421   : > { %v2230_v29 = vadd.f32 %v4643_v14, %v2229_v34  ;;  %3628 = vpow2.f32 %v2895_v28  ;;  %v2749_v28 = vadd.f32 1.0, %v4703_v30 }
 0x422   : > { %v2592_v4 = vpop.f32.mrf.mxu0 }
 0x423   : > { %v2303_v38 = vmax.f32 %v2230_v29, 0.0  ;;  %v2593_v27 = vadd.f32 %v4512_v52, %v2592_v4  ;;  %v2798_v4 = vmin.f32 %v4744_v5, 0.0 }
 0x425   : > { %v2810_v43 = vmin.f32 %v2593_v27, 0.0  ;;  %3497 = vmatmul.msk.f32.gmra.mxu0 %vm411_vm3, %v2303_v38  ;;  %v2754_v54 = vadd.f32 1.0, %v2593_v27  ;;  %vm2698_vm6 = vcmp.gt.f32.partialorder %v2593_v27, 0.0  ;;  %v4768_v38 = vadd.f32 %v4512_v52, %v4551_v11 }
 0x426   : > { %v2873_v15 = vmul.f32 1.442695, %v2798_v4 }
 0x427   : > { %v2897_v59 = vmul.f32 1.442695, %v2810_v43  ;;  %v3629_v44 = vpop.eup %3628  ;;  %v2875_v43 = vmul.f32 1.442695, %v2799_v49  ;;  %v2795_v30 = vmin.f32 %v4768_v38, 0.0 }
 0x428   : > { %v2232_v57 = vpop.f32.mrf.mxu3  ;;  %v2977_v39 = vsel %vm2697_vm7, %v2753_v31, %v3629_v44  ;;  %v2744_v31 = vadd.f32 1.0, %v4731_v51  ;;  %v2741_v51 = vadd.f32 1.0, %v4753_v62  ;;  %vm2683_vm7 = vcmp.gt.f32.partialorder %v4768_v38, 0.0 }
 0x429   : > { %3630 = vpow2.f32 %v2897_v59  ;;  %v2233_v42 = vadd.f32 %v4643_v14, %v2232_v57  ;;  %v2748_v59 = vadd.f32 1.0, %v4708_v24  ;;  %v2867_v61 = vmul.f32 1.442695, %v2795_v30 }
 0x42a   : > { %v4720_v47 = vpop.f32.mrf.mxu0  ;;  %3632 = vpow2.f32 %v2893_v3 }
 0x42b   : > { %v2304_v50 = vmax.f32 %v2233_v42, 0.0  ;;  %3634 = vpow2.f32 %v2891_v41 }
 0x42c   : > { %3636 = vpow2.f32 %v2889_v20 }
 0x42d   : > { %3498 = vmatmul.msk.f32.gmra.mxu0 %vm411_vm3, %v2304_v50  ;;  %3638 = vpow2.f32 %v2887_v1  ;;  %v2871_v50 = vmul.f32 1.442695, %v2797_v26  ;;  %v2746_v1 = vadd.f32 1.0, %v4718_v46 }
 0x42e   : > { %3640 = vpow2.f32 %v2885_v48 }
 0x42f   : > { %v3631_v17 = vpop.eup %3630  ;;  %3642 = vpow2.f32 %v2883_v35 }
 0x430   : > { %v2235_v63 = vpop.f32.mrf.mxu3  ;;  %v2978_v2 = vsel %vm2698_vm6, %v2754_v54, %v3631_v17  ;;  %v3633_v56 = vpop.eup %3632  ;;  %3644 = vpow2.f32 %v2881_v12  ;;  %v2869_v54 = vmul.f32 1.442695, %v2796_v53  ;;  %vm2684_vm6 = vcmp.gt.f32.partialorder %v4761_v21, 0.0 }
 0x431   : > { %v2236_v18 = vadd.f32 %v4643_v14, %v2235_v63  ;;  %3030 = vmatpush.msrb.mxu2 %v2978_v2  ;;  %v3635_v10 = vpop.eup %3634  ;;  %v2976_v33 = vsel %vm2696_vm8, %v2752_v7, %v3633_v56  ;;  %3646 = vpow2.f32 %v2879_v25 }
 0x432   : > { %v4747_v23 = vpop.f32.mrf.mxu0  ;;  %v3637_v19 = vpop.eup %3636  ;;  %v2975_v34 = vsel %vm2695_vm9, %v2751_v16, %v3635_v10  ;;  %3648 = vpow2.f32 %v2877_v0 }
 0x433   : > { %v2305_v13 = vmax.f32 %v2236_v18, 0.0  ;;  %3031 = vmatpush.msrb.mxu2 %v2977_v39  ;;  %v3639_v29 = vpop.eup %3638  ;;  %v2974_v55 = vsel %vm2694_vm10, %v2750_v32, %v3637_v19  ;;  %3650 = vpow2.f32 %v2875_v43  ;;  %v2743_v18 = vadd.f32 1.0, %v4736_v40 }
 0x434   : > { %v3641_v58 = vpop.eup %3640  ;;  %v2973_v11 = vsel %vm2693_vm11, %v2749_v28, %v3639_v29  ;;  %3652 = vpow2.f32 %v2873_v15  ;;  %v2742_v39 = vadd.f32 1.0, %v4744_v5  ;;  %v2740_v19 = vadd.f32 1.0, %v4761_v21 }
 0x435   : > { %3499 = vmatmul.msk.f32.gmra.mxu0 %vm411_vm3, %v2305_v13  ;;  %3032 = vmatpush.msrb.mxu2 %v2976_v33  ;;  %v3643_v57 = vpop.eup %3642  ;;  %v2972_v42 = vsel %vm2692_vm12, %v2748_v59, %v3641_v58  ;;  %3654 = vpow2.f32 %v2871_v50 }
 0x436   : > { %v3645_v20 = vpop.eup %3644  ;;  %v2971_v6 = vsel %vm2691_vm13, %v2747_v8, %v3643_v57  ;;  %3656 = vpow2.f32 %v2869_v54 }
 0x437   : > { %3033 = vmatpush.msrb.mxu2 %v2975_v34  ;;  %v3647_v44 = vpop.eup %3646  ;;  %v2970_v17 = vsel %vm2690_vm14, %v2746_v1, %v3645_v20  ;;  %3658 = vpow2.f32 %v2867_v61  ;;  %v2739_v34 = vadd.f32 1.0, %v4768_v38 }
 0x438   : > { %v2238_v27 = vpop.f32.mrf.mxu3  ;;  %v3649_v48 = vpop.eup %3648  ;;  %v2969_v2 = vsel %vm2689_vm15, %v2745_v60, %v3647_v44 }
 0x439   : > { %v2239_v36 = vadd.f32 %v4643_v14, %v2238_v27  ;;  %3034 = vmatpush.msrb.mxu2 %v2974_v55  ;;  %v3651_v56 = vpop.eup %3650  ;;  %v2968_v35 = vsel %vm2688_vm0, %v2744_v31, %v3649_v48 }
 0x43a   : > { %v4775_v3 = vpop.f32.mrf.mxu0  ;;  %v3653_v22 = vpop.eup %3652  ;;  %v2967_v45 = vsel %vm2687_vm2, %v2743_v18, %v3651_v56 }
 0x43b   : > { %v2306_v41 = vmax.f32 %v2239_v36, 0.0  ;;  %3035 = vmatpush.msrb.mxu2 %v2973_v11  ;;  %v3655_v7 = vpop.eup %3654  ;;  %v2966_v12 = vsel %vm2686_vm4, %v2742_v39, %v3653_v22 }
 0x43c   : > { %v3657_v13 = vpop.eup %3656  ;;  %v2965_v40 = vsel %vm2685_vm5, %v2741_v51, %v3655_v7 }
 0x43d   : > { %3500 = vmatmul.msk.f32.gmra.mxu0 %vm411_vm3, %v2306_v41  ;;  %3036 = vmatpush.msrb.mxu2 %v2972_v42  ;;  %v3659_v49 = vpop.eup %3658  ;;  %v2964_v5 = vsel %vm2684_vm6, %v2740_v19, %v3657_v13 }
 0x43e   : > { %v2963_v32 = vsel %vm2683_vm7, %v2739_v34, %v3659_v49 }
 0x43f   : > { %3037 = vmatpush.msrb.mxu2 %v2971_v6 }
 0x440   : > { %v2241_v24 = vpop.f32.mrf.mxu3 }
 0x441   : > { %v2242_v63 = vadd.f32 %v4643_v14, %v2241_v24  ;;  %3038 = vmatpush.msrb.mxu2 %v2970_v17 }
 0x442   : > { %v4788_v37 = vpop.f32.mrf.mxu0 }
 0x443   : > { %v2307_v46 = vmax.f32 %v2242_v63, 0.0  ;;  %3039 = vmatpush.msrb.mxu2 %v2969_v2 }
 0x445   : > { %3501 = vmatmul.msk.f32.gmra.mxu0 %vm411_vm3, %v2307_v46  ;;  %3040 = vmatpush.msrb.mxu2 %v2968_v35 }
 0x447   : > { %3041 = vmatpush.msrb.mxu2 %v2967_v45 }
 0x448   : > { %v2244_v10 = vpop.f32.mrf.mxu3 }
 0x449   : > { %v2245_v33 = vadd.f32 %v4643_v14, %v2244_v10  ;;  %3042 = vmatpush.msrb.mxu2 %v2966_v12 }
 0x44a   : > { %v4800_v16 = vpop.f32.mrf.mxu0 }
 0x44b   : > { %v2308_v25 = vmax.f32 %v2245_v33, 0.0  ;;  %3043 = vmatpush.msrb.mxu2 %v2965_v40  ;;  %v4850_v19 = vadd.f32 %v4512_v52, %v4800_v16 }
 0x44d   : > { %3502 = vmatmul.msk.f32.gmra.mxu0 %vm411_vm3, %v2308_v25  ;;  %3044 = vmatpush.msrb.mxu2 %v2964_v5  ;;  %vm2703_vm5 = vcmp.gt.f32.partialorder %v4850_v19, 0.0 }
 0x44f   : > { %3045 = vmatpush.msrb.mxu2 %v2963_v32 }
 0x450   : > { %v2247_v62 = vpop.f32.mrf.mxu3 }
 0x451   : > { %v2248_v29 = vadd.f32 %v4643_v14, %v2247_v62  ;;  %v4855_v62 = vadd.f32 %v4512_v52, %v4788_v37 }
 0x452   : > { %v2610_v4 = vpop.f32.mrf.mxu0 }
 0x453   : > { %v2309_v0 = vmax.f32 %v2248_v29, 0.0  ;;  %v4845_v12 = vadd.f32 %v4512_v52, %v2610_v4  ;;  %vm2702_vm6 = vcmp.gt.f32.partialorder %v4855_v62, 0.0 }
 0x455   : > { %3503 = vmatmul.msk.f32.gmra.mxu0 %vm411_vm3, %v2309_v0  ;;  %v2816_v16 = vmin.f32 %v4845_v12, 0.0  ;;  %vm2704_vm4 = vcmp.gt.f32.partialorder %v4845_v12, 0.0 }
 0x458   : > { %v2250_v26 = vpop.f32.mrf.mxu3 }
 0x459   : > { %v2251_v21 = vadd.f32 %v4643_v14, %v2250_v26 }
 0x45a   : > { %v2613_v27 = vpop.f32.mrf.mxu0 }
 0x45b   : > { %v2310_v55 = vmax.f32 %v2251_v21, 0.0  ;;  %v4841_v45 = vadd.f32 %v4512_v52, %v2613_v27  ;;  %v4863_v27 = vld [vmem:[%s4954_s7 + $0x6] ss:$0 sm:$0xff] }
 0x45d   : > { %3504 = vmatmul.msk.f32.gmra.mxu0 %vm411_vm3, %v2310_v55  ;;  %v2817_v34 = vmin.f32 %v4841_v45, 0.0  ;;  %vm2705_vm2 = vcmp.gt.f32.partialorder %v4841_v45, 0.0 }
 0x460   : > { %v2253_v28 = vpop.f32.mrf.mxu3 }
 0x461   : > { %v2254_v58 = vadd.f32 %v4643_v14, %v2253_v28 }
 0x462   : > { %v2616_v38 = vpop.f32.mrf.mxu0 }
 0x463   : > { %v2311_v43 = vmax.f32 %v2254_v58, 0.0  ;;  %v4837_v35 = vadd.f32 %v4512_v52, %v2616_v38  ;;  %v2815_v58 = vmin.f32 %v4850_v19, 0.0  ;;  %v2911_v38 = vmul.f32 1.442695, %v2817_v34 }
 0x465   : > { %3505 = vmatmul.msk.f32.gmra.mxu0 %vm411_vm3, %v2311_v43  ;;  %v2818_v33 = vmin.f32 %v4837_v35, 0.0  ;;  %v4874_v43 = vadd.f32 %v4863_v27, %v4747_v23  ;;  %vm2706_vm0 = vcmp.gt.f32.partialorder %v4837_v35, 0.0 }
 0x467   : > { %v2913_v21 = vmul.f32 1.442695, %v2818_v33  ;;  %v2758_v33 = vadd.f32 1.0, %v4855_v62 }
 0x46a   : > { %v2619_v36 = vpop.f32.mrf.mxu0 }
 0x46b   : > { %v4831_v2 = vadd.f32 %v4512_v52, %v2619_v36 }
 0x46d   : > { %v2819_v39 = vmin.f32 %v4831_v2, 0.0  ;;  %vm2707_vm15 = vcmp.gt.f32.partialorder %v4831_v2, 0.0 }
 0x46f   : > { %v2915_v32 = vmul.f32 1.442695, %v2819_v39 }
 0x472   : > { %v2622_v53 = vpop.f32.mrf.mxu0 }
 0x473   : > { %v4827_v60 = vadd.f32 %v4512_v52, %v2622_v53 }
 0x475   : > { %v2820_v18 = vmin.f32 %v4827_v60, 0.0  ;;  %vm2708_vm14 = vcmp.gt.f32.partialorder %v4827_v60, 0.0 }
 0x477   : > { %v2917_v40 = vmul.f32 1.442695, %v2820_v18 }
 0x47a   : > { %v2625_v11 = vpop.f32.mrf.mxu0 }
 0x47b   : > { %v4823_v54 = vadd.f32 %v4512_v52, %v2625_v11  ;;  %v2814_v11 = vmin.f32 %v4855_v62, 0.0 }
 0x47d   : > { %v2821_v31 = vmin.f32 %v4823_v54, 0.0  ;;  %vm2709_vm13 = vcmp.gt.f32.partialorder %v4823_v54, 0.0 }
 0x47f   : > { %v2919_v7 = vmul.f32 1.442695, %v2821_v31 }
 0x482   : > { %v2628_v59 = vpop.f32.mrf.mxu0 }
 0x483   : > { %v4819_v50 = vadd.f32 %v4512_v52, %v2628_v59  ;;  %v2909_v59 = vmul.f32 1.442695, %v2816_v16  ;;  %v3004_v16 = vld [vmem:[%s4950_s3 + $0x8] sm:$0xff] }
 0x484   : > { %3046 = vmatmul.f32.vlgmr.msrb.gmra.mxu2 %v3004_v16 }
 0x485   : > { %v2822_v48 = vmin.f32 %v4819_v50, 0.0  ;;  %v2766_v36 = vadd.f32 1.0, %v4819_v50  ;;  %vm2710_vm12 = vcmp.gt.f32.partialorder %v4819_v50, 0.0 }
 0x487   : > { %v2921_v22 = vmul.f32 1.442695, %v2822_v48  ;;  %v2762_v48 = vadd.f32 1.0, %v4837_v35  ;;  %v2759_v35 = vadd.f32 1.0, %v4850_v19 }
 0x48a   : > { %v2631_v57 = vpop.f32.mrf.mxu0 }
 0x48b   : > { %v4816_v30 = vadd.f32 %v4512_v52, %v2631_v57  ;;  %v4881_v57 = vadd.f32 %v4863_v27, %v4720_v47  ;;  %v2812_v47 = vmin.f32 %v4874_v43, 0.0 }
 0x48d   : > { %v2823_v24 = vmin.f32 %v4816_v30, 0.0  ;;  %v2767_v37 = vadd.f32 1.0, %v4816_v30  ;;  %vm2711_vm11 = vcmp.gt.f32.partialorder %v4816_v30, 0.0  ;;  %v2901_v31 = vmul.f32 1.442695, %v2812_v47 }
 0x48e   : > { %v2755_v19 = vadd.f32 1.0, %v4881_v57 }
 0x48f   : > { %v2923_v56 = vmul.f32 1.442695, %v2823_v24 }
 0x492   : > { %v2634_v15 = vpop.f32.mrf.mxu0 }
 0x493   : > { %v2635_v8 = vadd.f32 %v4512_v52, %v2634_v15  ;;  %v2765_v15 = vadd.f32 1.0, %v4823_v54 }
 0x495   : > { %v2824_v6 = vmin.f32 %v2635_v8, 0.0  ;;  %v2768_v29 = vadd.f32 1.0, %v2635_v8  ;;  %vm2712_vm10 = vcmp.gt.f32.partialorder %v2635_v8, 0.0  ;;  %v2907_v8 = vmul.f32 1.442695, %v2815_v58 }
 0x497   : > { %v2925_v61 = vmul.f32 1.442695, %v2824_v6  ;;  %v2905_v6 = vmul.f32 1.442695, %v2814_v11 }
 0x49a   : > { %v2637_v41 = vpop.f32.mrf.mxu0 }
 0x49b   : > { %v2638_v42 = vadd.f32 %v4512_v52, %v2637_v41 }
 0x49d   : > { %v2825_v20 = vmin.f32 %v2638_v42, 0.0  ;;  %v2769_v49 = vadd.f32 1.0, %v2638_v42  ;;  %vm2713_vm9 = vcmp.gt.f32.partialorder %v2638_v42, 0.0 }
 0x49f   : > { %v2927_v44 = vmul.f32 1.442695, %v2825_v20  ;;  %v2764_v20 = vadd.f32 1.0, %v4827_v60  ;;  %v2761_v60 = vadd.f32 1.0, %v4841_v45 }
 0x4a1   : > { %3660 = vpow2.f32 %v2927_v44 }
 0x4a2   : > { %v2640_v14 = vpop.f32.mrf.mxu0 }
 0x4a3   : > { %v2641_v1 = vadd.f32 %v4512_v52, %v2640_v14  ;;  %v4867_v52 = vadd.f32 %v4863_v27, %v4775_v3 }
 0x4a5   : > { %v2826_v17 = vmin.f32 %v2641_v1, 0.0  ;;  %v2770_v51 = vadd.f32 1.0, %v2641_v1  ;;  %vm2714_vm8 = vcmp.gt.f32.partialorder %v2641_v1, 0.0  ;;  %v2813_v42 = vmin.f32 %v4867_v52, 0.0 }
 0x4a6   : > { %v2763_v1 = vadd.f32 1.0, %v4831_v2  ;;  %v2760_v2 = vadd.f32 1.0, %v4845_v12  ;;  %vm2701_vm7 = vcmp.gt.f32.partialorder %v4867_v52, 0.0  ;;  %v2756_v12 = vadd.f32 1.0, %v4874_v43 }
 0x4a7   : > { %v2929_v63 = vmul.f32 1.442695, %v2826_v17  ;;  %v3661_v10 = vpop.eup %3660  ;;  %v2811_v17 = vmin.f32 %v4881_v57, 0.0  ;;  %v2903_v54 = vmul.f32 1.442695, %v2813_v42 }
 0x4a8   : > { %v2993_v0 = vsel %vm2713_vm9, %v2769_v49, %v3661_v10  ;;  %v2757_v49 = vadd.f32 1.0, %v4867_v52  ;;  %vm2699_vm9 = vcmp.gt.f32.partialorder %v4881_v57, 0.0  ;;  %v3003_v52 = vld [vmem:[%s4950_s3] sm:$0xff] }
 0x4a9   : > { %3662 = vpow2.f32 %v2929_v63  ;;  %3026 = vmatmul.f32.vlgmr.msra.gmra.mxu1 %v3003_v52 }
 0x4aa   : > { %v4834_v46 = vpop.f32.mrf.mxu0  ;;  %3664 = vpow2.f32 %v2925_v61 }
 0x4ab   : > { %3666 = vpow2.f32 %v2923_v56 }
 0x4ac   : > { %3668 = vpow2.f32 %v2921_v22  ;;  %v2899_v22 = vmul.f32 1.442695, %v2811_v17 }
 0x4ad   : > { %3670 = vpow2.f32 %v2919_v7 }
 0x4ae   : > { %3672 = vpow2.f32 %v2917_v40 }
 0x4af   : > { %v3663_v13 = vpop.eup %3662  ;;  %3674 = vpow2.f32 %v2915_v32 }
 0x4b0   : > { %v2994_v25 = vsel %vm2714_vm8, %v2770_v51, %v3663_v13  ;;  %v3665_v5 = vpop.eup %3664  ;;  %3676 = vpow2.f32 %v2913_v21  ;;  %vm2700_vm8 = vcmp.gt.f32.partialorder %v4874_v43, 0.0  ;;  %v3005_v21 = vld [vmem:[%s4950_s3 + $0x10] sm:$0xff]  ;;  %v3863_v43 = vmov 0  }
 0x4b1   : > { %3050 = vmatpush.msrb.mxu3 %v2994_v25  ;;  %v3667_v26 = vpop.eup %3666  ;;  %v2992_v55 = vsel %vm2712_vm10, %v2768_v29, %v3665_v5  ;;  %3678 = vpow2.f32 %v2911_v38  ;;  %3586 = vset.pattern.permute.xlu2 %v3863_v43 }
 0x4b2   : > { %v4857_v4 = vpop.f32.mrf.mxu0  ;;  %v3669_v28 = vpop.eup %3668  ;;  %v2991_v53 = vsel %vm2711_vm11, %v2767_v37, %v3667_v26  ;;  %3680 = vpow2.f32 %v2909_v59  ;;  %3587 = vset.pattern.permute.xlu0 %v3863_v43 }
 0x4b3   : > { %3051 = vmatpush.msrb.mxu3 %v2993_v0  ;;  %v3671_v3 = vpop.eup %3670  ;;  %v2990_v41 = vsel %vm2710_vm12, %v2766_v36, %v3669_v28  ;;  %3682 = vpow2.f32 %v2907_v8  ;;  %v2647_v42 = vadd.f32 %v4863_v27, %v4857_v4 }
 0x4b4   : > { %v3673_v23 = vpop.eup %3672  ;;  %v2989_v14 = vsel %vm2709_vm13, %v2765_v15, %v3671_v3  ;;  %3684 = vpow2.f32 %v2905_v6 }
 0x4b5   : > { %3052 = vmatpush.msrb.mxu3 %v2992_v55  ;;  %v3675_v50 = vpop.eup %3674  ;;  %v2988_v44 = vsel %vm2708_vm14, %v2764_v20, %v3673_v23  ;;  %3686 = vpow2.f32 %v2903_v54 }
 0x4b6   : > { %v3677_v24 = vpop.eup %3676  ;;  %v2987_v61 = vsel %vm2707_vm15, %v2763_v1, %v3675_v50  ;;  %3688 = vpow2.f32 %v2901_v31  ;;  %v2644_v50 = vadd.f32 %v4863_v27, %v4834_v46  ;;  %v2828_v1 = vmin.f32 %v2647_v42, 0.0 }
 0x4b7   : > { %3053 = vmatpush.msrb.mxu3 %v2991_v53  ;;  %v3679_v63 = vpop.eup %3678  ;;  %v2986_v56 = vsel %vm2706_vm0, %v2762_v48, %v3677_v24  ;;  %3690 = vpow2.f32 %v2899_v22  ;;  %v3714_v53 = vld [vmem:[%s3976_s14] sm:$0xff]  ;;  %vm2716_vm0 = vcmp.gt.f32.partialorder %v2647_v42, 0.0 }
 0x4b8   : > { %v3681_v18 = vpop.eup %3680  ;;  %v2985_v7 = vsel %vm2705_vm2, %v2761_v60, %v3679_v63  ;;  %3091 = vperm.xlu2 %3586, %v3714_v53   ;;  %v2827_v24 = vmin.f32 %v2644_v50, 0.0  ;;  %v2933_v4 = vmul.f32 1.442695, %v2828_v1  ;;  %vm2715_vm2 = vcmp.gt.f32.partialorder %v2644_v50, 0.0 }
 0x4b9   : > { %3054 = vmatpush.msrb.mxu3 %v2990_v41  ;;  %v3683_v10 = vpop.eup %3682  ;;  %v2984_v51 = vsel %vm2704_vm4, %v2760_v2, %v3681_v18 }
 0x4ba   : > { %v4887_v30 = vpop.f32.mrf.mxu0  ;;  %v3685_v13 = vpop.eup %3684  ;;  %v2983_v45 = vsel %vm2703_vm5, %v2759_v35, %v3683_v10  ;;  %v2931_v60 = vmul.f32 1.442695, %v2827_v24 }
 0x4bb   : > { %3055 = vmatpush.msrb.mxu3 %v2989_v14  ;;  %v3687_v40 = vpop.eup %3686  ;;  %v2982_v25 = vsel %vm2702_vm6, %v2758_v33, %v3685_v13  ;;  %v2650_v15 = vadd.f32 %v4863_v27, %v4887_v30  ;;  %v2772_v33 = vadd.f32 1.0, %v2647_v42 }
 0x4bc   : > { %v3689_v5 = vpop.eup %3688  ;;  %v2981_v32 = vsel %vm2701_vm7, %v2757_v49, %v3687_v40  ;;  %v2771_v49 = vadd.f32 1.0, %v2644_v50 }
 0x4bd   : > { %3056 = vmatpush.msrb.mxu3 %v2988_v44  ;;  %v3691_v29 = vpop.eup %3690  ;;  %v2980_v0 = vsel %vm2700_vm8, %v2756_v12, %v3689_v5  ;;  %v2829_v47 = vmin.f32 %v2650_v15, 0.0  ;;  %v2773_v35 = vadd.f32 1.0, %v2650_v15  ;;  %vm2717_vm15 = vcmp.gt.f32.partialorder %v2650_v15, 0.0  ;;  %v3006_v5 = vld [vmem:[%s4950_s3 + $0x18] sm:$0xff] }
 0x4be   : > { %v2979_v62 = vsel %vm2699_vm9, %v2755_v19, %v3691_v29 }
 0x4bf   : > { %3057 = vmatpush.msrb.mxu3 %v2987_v61  ;;  %v2935_v30 = vmul.f32 1.442695, %v2829_v47 }
 0x4c1   : > { %3058 = vmatpush.msrb.mxu3 %v2986_v56 }
 0x4c2   : > { %v2652_v39 = vpop.f32.mrf.mxu0 }
 0x4c3   : > { %3059 = vmatpush.msrb.mxu3 %v2985_v7  ;;  %v2653_v3 = vadd.f32 %v4863_v27, %v2652_v39 }
 0x4c5   : > { %3060 = vmatpush.msrb.mxu3 %v2984_v51  ;;  %v2830_v8 = vmin.f32 %v2653_v3, 0.0  ;;  %v2774_v39 = vadd.f32 1.0, %v2653_v3  ;;  %vm2718_vm14 = vcmp.gt.f32.partialorder %v2653_v3, 0.0 }
 0x4c7   : > { %3061 = vmatpush.msrb.mxu3 %v2983_v45  ;;  %v2937_v44 = vmul.f32 1.442695, %v2830_v8 }
 0x4c9   : > { %3062 = vmatpush.msrb.mxu3 %v2982_v25 }
 0x4ca   : > { %v2655_v34 = vpop.f32.mrf.mxu0 }
 0x4cb   : > { %3063 = vmatpush.msrb.mxu3 %v2981_v32  ;;  %v2656_v38 = vadd.f32 %v4863_v27, %v2655_v34 }
 0x4cd   : > { %3064 = vmatpush.msrb.mxu3 %v2980_v0  ;;  %v2831_v41 = vmin.f32 %v2656_v38, 0.0  ;;  %v2775_v18 = vadd.f32 1.0, %v2656_v38  ;;  %vm2719_vm13 = vcmp.gt.f32.partialorder %v2656_v38, 0.0  ;;  %v3103_v38 = vpop.permute.xlu0 %3102 }
 0x4cf   : > { %3065 = vmatpush.msrb.mxu3 %v2979_v62  ;;  %v2939_v6 = vmul.f32 1.442695, %v2831_v41 }
 0x4d0   : > { %3066 = vmatmul.f32.vlgmr.msrb.gmra.mxu3 %v3005_v21 }
 0x4d2   : > { %v2658_v26 = vpop.f32.mrf.mxu0 }
 0x4d3   : > { %v2659_v28 = vadd.f32 %v4863_v27, %v2658_v26 }
 0x4d5   : > { %v2832_v11 = vmin.f32 %v2659_v28, 0.0  ;;  %v2776_v46 = vadd.f32 1.0, %v2659_v28  ;;  %vm2720_vm12 = vcmp.gt.f32.partialorder %v2659_v28, 0.0 }
 0x4d7   : > { %v2941_v20 = vmul.f32 1.442695, %v2832_v11 }
 0x4da   : > { %v2661_v37 = vpop.f32.mrf.mxu0 }
 0x4db   : > { %v2662_v55 = vadd.f32 %v4863_v27, %v2661_v37  ;;  %v535_v37 = vmul.f32 1.442695, %v4224_v9 }
 0x4dd   : > { %v2833_v58 = vmin.f32 %v2662_v55, 0.0  ;;  %v2777_v61 = vadd.f32 1.0, %v2662_v55  ;;  %vm2721_vm11 = vcmp.gt.f32.partialorder %v2662_v55, 0.0 }
 0x4df   : > { %v2943_v57 = vmul.f32 1.442695, %v2833_v58 }
 0x4e1   : > { %3692 = vpow2.f32 %v2943_v57 }
 0x4e2   : > { %v2664_v36 = vpop.f32.mrf.mxu0 }
 0x4e3   : > { %v2665_v59 = vadd.f32 %v4863_v27, %v2664_v36 }
 0x4e5   : > { %v2834_v23 = vmin.f32 %v2665_v59, 0.0  ;;  %v2778_v54 = vadd.f32 1.0, %v2665_v59  ;;  %vm2722_vm10 = vcmp.gt.f32.partialorder %v2665_v59, 0.0 }
 0x4e7   : > { %v2945_v14 = vmul.f32 1.442695, %v2834_v23  ;;  %v3693_v17 = vpop.eup %3692 }
 0x4e8   : > { %v3001_v27 = vsel %vm2721_vm11, %v2777_v61, %v3693_v17 }
 0x4e9   : > { %3694 = vpow2.f32 %v2945_v14 }
 0x4ea   : > { %3696 = vpow2.f32 %v2941_v20 }
 0x4eb   : > { %3698 = vpow2.f32 %v2939_v6 }
 0x4ec   : > { %3700 = vpow2.f32 %v2937_v44 }
 0x4ed   : > { %3702 = vpow2.f32 %v2935_v30 }
 0x4ee   : > { %3704 = vpow2.f32 %v2933_v4 }
 0x4ef   : > { %v3695_v48 = vpop.eup %3694  ;;  %3706 = vpow2.f32 %v2931_v60 }
 0x4f0   : > { %v3002_v63 = vsel %vm2722_vm10, %v2778_v54, %v3695_v48  ;;  %v3697_v31 = vpop.eup %3696  ;;  %3708 = vpow2.f32 %v535_v37 }
 0x4f1   : > { %3078 = vmatpush.msrb.mxu1 %v3002_v63  ;;  %v3699_v56 = vpop.eup %3698  ;;  %v3000_v22 = vsel %vm2720_vm12, %v2776_v46, %v3697_v31 }
 0x4f2   : > { %v3701_v2 = vpop.eup %3700  ;;  %v2999_v7 = vsel %vm2719_vm13, %v2775_v18, %v3699_v56 }
 0x4f3   : > { %3079 = vmatpush.msrb.mxu1 %v3001_v27  ;;  %v3703_v10 = vpop.eup %3702  ;;  %v2998_v51 = vsel %vm2718_vm14, %v2774_v39, %v3701_v2 }
 0x4f4   : > { %v3705_v13 = vpop.eup %3704  ;;  %v2997_v45 = vsel %vm2717_vm15, %v2773_v35, %v3703_v10 }
 0x4f5   : > { %3080 = vmatpush.msrb.mxu1 %v3000_v22  ;;  %v3707_v40 = vpop.eup %3706  ;;  %v2996_v25 = vsel %vm2716_vm0, %v2772_v33, %v3705_v13 }
 0x4f6   : > { %v2995_v12 = vsel %vm2715_vm2, %v2771_v49, %v3707_v40  ;;  %v3709_v55 = vpop.eup %3708 }
 0x4f7   : > { %3081 = vmatpush.msrb.mxu1 %v2999_v7 }
 0x4f9   : > { %3082 = vmatpush.msrb.mxu1 %v2998_v51 }
 0x4fb   : > { %3083 = vmatpush.msrb.mxu1 %v2997_v45 }
 0x4fd   : > { %3084 = vmatpush.msrb.mxu1 %v2996_v25 }
 0x4ff   : > { %3085 = vmatpush.msrb.mxu1 %v2995_v12 }
 0x500   : > { %3506 = vmatmul.msk.f32.vlgmr.msrb.gmra.mxu1 %vm411_vm3, %v3006_v5 }
 0x507   : > { %v3047_v32 = vpop.f32.mrf.mxu2 }
 0x512   : > { %v3092_v26 = vpop.permute.xlu2 %3091 }
 0x526   : > { %v3027_v34 = vpop.f32.mrf.mxu1 }
 0x527   : > { %v3048_v29 = vadd.f32 %v3047_v32, %v3027_v34 }
 0x553   : > { %v3067_v19 = vpop.f32.mrf.mxu3 }
 0x554   : > { %v3068_v0 = vadd.f32 %v3067_v19, %v3048_v29 }
 0x57d   : > { %v3087_v62 = vpop.f32.mrf.mxu1 }
 0x57e   : > { %v3088_v16 = vadd.f32 %v3087_v62, %v3068_v0 }
 0x580   : > { %v3094_v21 = vmul.f32 %v3092_v26, %v3088_v16 }
 0x582   : > { %v3095_v52 = vmul.f32 0.5, %v3094_v21 }
 0x584   : > { %3097 = vrot.lane.b32.xlu2 %v3095_v52, %s3862_s13 }
 0x5de   : > { %v3098_v28 = vpop.permute.xlu2 %3097 }
 0x5df   : > { %v3100_v58 = vmul.f32 %v3709_v55, %v3098_v28 }
 0x5e1   : > { %v3105_v43 = vadd.f32 %v3103_v38, %v3100_v58 }
 0x5e3   : > { %3107 = vrot.lane.b32.xlu1 %v3105_v43, %s3861_s21 }
 0x655   : > { %v3108_v36 = vpop.permute.xlu1 %3107 }
 0x656   : > { %3110 = vst.msk [vmem:[%s367_s20] sm:$0xff] %vm372_vm1, %v3108_v36 }
 0x657 PF: > { %s21_s27 = sadd.s32 1, %s3853_s27  }
 0x658   : > { %p18_p7 = scmp.ge.s32.totalorder %s21_s27, 4  }
 0x65a   :  { %20 = sbr.rel (!%p18_p7) target bundleno = 3 (0x3), region = 99 }
 0x65f   :  { %3130 = vsyncpa [#allocation3], 1 }
 0x660   :  { %3132 = vsyncpa [#allocation3 + $0x1], 1 }
 0x661   :  { %3133 = vsyncpa [#allocation5], 1 }
 0x662   :  { %3134 = vsyncpa [#allocation8], 1 }

</bundles_post_ra>
